<compile_context>
chip_gen: v5e
topology: v5e:2x2
jax: 0.10.0
libtpu: 0.0.40
codegen_flags: <defaults>
</compile_context>

<pallas_src>
import jax
import jax.numpy as jnp
import numpy as np
from jax.experimental import pallas as pl
from jax.experimental.pallas import tpu as pltpu

NUM_NODES = 16      # nodes per graph
NINP = 2            # MNISTSuperpixels intensity + degree (PPGNAddDegree adddegree=True)
NINP_PAD = 8        # zero-padded feature dim (padded weight rows zeroed -> exact)
HIDDEN = 64
FC_HIDDEN = 32
NUM_CLASSES = 10
OUT_PAD = 128       # lane-dense class axis (sliced back to NUM_CLASSES in wrapper)
K_CHEB = 5
BN_EPS = 1e-5
GBLK = 8            # graphs per grid step (block-diagonal L tile = 128x128)


def _cheb_conv_loop(L, x, w, b):
    # ChebConv, accumulation form (used for layer 1 where Cin is tiny):
    #   out = sum_k T_k(L_hat) @ W_k + b ;  T_k = 2 L_hat T_{k-1} - T_{k-2}
    t0 = x
    out = jnp.dot(t0, w[0], preferred_element_type=jnp.float32)
    t1 = jnp.dot(L, t0, preferred_element_type=jnp.float32)
    out = out + jnp.dot(t1, w[1], preferred_element_type=jnp.float32)
    for k in range(2, K_CHEB):
        t2 = 2.0 * jnp.dot(L, t1, preferred_element_type=jnp.float32) - t0
        out = out + jnp.dot(t2, w[k], preferred_element_type=jnp.float32)
        t0, t1 = t1, t2
    return out + b


def _cheb_conv_fused(L, x, w_stacked, b):
    # Fused ChebConv: concatenate T_0..T_{K-1} along the lane axis and do ONE
    # wide matmul against W stacked as (K*Cin, Cout).
    ts = [x, jnp.dot(L, x, preferred_element_type=jnp.float32)]
    for _ in range(2, K_CHEB):
        ts.append(2.0 * jnp.dot(L, ts[-1], preferred_element_type=jnp.float32) - ts[-2])
    T = jnp.concatenate(ts, axis=-1)                      # (GBLK*N, K*Cin)
    return jnp.dot(T, w_stacked, preferred_element_type=jnp.float32) + b


def chebnet_kernel(l_ref, x_ref, pool_ref,
                   w1_ref, b1_ref, w2s_ref, b2_ref, w3s_ref, b3_ref,
                   bn_scale_ref, bn_shift_ref,
                   fc1w_ref, fc1b_ref, fc2w_ref, fc2b_ref,
                   out_ref):
    L = l_ref[0]              # (GBLK*N, GBLK*N) block-diagonal over GBLK graphs
    x = x_ref[0]              # (GBLK*N, NINP_PAD)

    # F.dropout(p=0.1) is identity in eval mode.
    # TODO(synk): training-mode dropout / batch-statistics BatchNorm not implemented (eval forward).
    h = jax.nn.relu(_cheb_conv_loop(L, x, w1_ref[...], b1_ref[...]))
    h = jax.nn.relu(_cheb_conv_fused(L, h, w2s_ref[...], b2_ref[...]))
    h = jax.nn.relu(_cheb_conv_fused(L, h, w3s_ref[...], b3_ref[...]))

    # global_mean_pool: (GBLK, GBLK*N) @ (GBLK*N, HIDDEN) with 1/N weights per graph
    pooled = jnp.dot(pool_ref[...], h, preferred_element_type=jnp.float32)   # (GBLK, HIDDEN)

    # Folded BatchNorm1d (eval mode, running statistics folded in wrapper)
    pooled = pooled * bn_scale_ref[...] + bn_shift_ref[...]

    h1 = jax.nn.relu(jnp.dot(pooled, fc1w_ref[...],
                             preferred_element_type=jnp.float32) + fc1b_ref[...])
    logits = jnp.dot(h1, fc2w_ref[...],
                     preferred_element_type=jnp.float32) + fc2b_ref[...]      # (GBLK, OUT_PAD)

    # mask padded class lanes so log_softmax runs over the real NUM_CLASSES only
    lane = jax.lax.broadcasted_iota(jnp.int32, (GBLK, OUT_PAD), 1)
    logits = jnp.where(lane < NUM_CLASSES, logits, -1e30)

    m = jnp.max(logits, axis=-1, keepdims=True)
    z = logits - m
    lse = jnp.log(jnp.sum(jnp.exp(z), axis=-1, keepdims=True))
    out_ref[...] = z - lse                                                    # lane-dense store


def chebnet_forward(L_hat, x, params):
    B, N, _ = L_hat.shape
    assert N == NUM_NODES and B % GBLK == 0
    nb = B // GBLK
    M = GBLK * N

    # Block-diagonal packing of the scaled Laplacians: (B, N, N) -> (nb, M, M)
    Lr = L_hat.reshape(nb, GBLK, N, N)
    eye = jnp.eye(GBLK, dtype=L_hat.dtype)
    L_blk = jnp.einsum('bgij,gh->bgihj', Lr, eye).reshape(nb, M, M)

    x_blk = x.reshape(nb, M, NINP_PAD)

    # Per-graph mean-pool matrix: pool[g, g*N:(g+1)*N] = 1/N
    pool = jnp.kron(jnp.eye(GBLK, dtype=jnp.float32),
                    jnp.full((1, N), 1.0 / N, jnp.float32))                   # (GBLK, M)

    (w1, b1, w2, b2, w3, b3, bn_g, bn_b, bn_m, bn_v, f1w, f1b, f2w, f2b) = params

    # Stack Chebyshev weights for the fused matmuls; fold BatchNorm; pad fc2 to 128 lanes.
    w2s = w2.reshape(K_CHEB * HIDDEN, HIDDEN)
    w3s = w3.reshape(K_CHEB * HIDDEN, HIDDEN)
    bn_scale = bn_g * jax.lax.rsqrt(bn_v + BN_EPS)
    bn_shift = bn_b - bn_m * bn_scale
    f2w_pad = jnp.zeros((FC_HIDDEN, OUT_PAD), jnp.float32).at[:, :NUM_CLASSES].set(f2w)
    f2b_pad = jnp.zeros((1, OUT_PAD), jnp.float32).at[:, :NUM_CLASSES].set(f2b)

    def full(shape):
        return pl.BlockSpec(shape, lambda *_: (0,) * len(shape))

    in_specs = [
        pl.BlockSpec((1, M, M), lambda g: (g, 0, 0)),           # block-diagonal L tile
        pl.BlockSpec((1, M, NINP_PAD), lambda g: (g, 0, 0)),    # packed node features
        full((GBLK, M)),                                        # pooling matrix
        full((K_CHEB, NINP_PAD, HIDDEN)), full((1, HIDDEN)),    # conv1
        full((K_CHEB * HIDDEN, HIDDEN)), full((1, HIDDEN)),     # conv2 (stacked)
        full((K_CHEB * HIDDEN, HIDDEN)), full((1, HIDDEN)),     # conv3 (stacked)
        full((1, HIDDEN)), full((1, HIDDEN)),                   # folded BN scale/shift
        full((HIDDEN, FC_HIDDEN)), full((1, FC_HIDDEN)),        # fc1
        full((FC_HIDDEN, OUT_PAD)), full((1, OUT_PAD)),         # fc2 (lane-padded)
    ]

    out_full = pl.pallas_call(
        chebnet_kernel,
        out_shape=jax.ShapeDtypeStruct((B, OUT_PAD), jnp.float32),
        grid_spec=pltpu.PrefetchScalarGridSpec(
            num_scalar_prefetch=0,
            grid=(nb,),
            in_specs=in_specs,
            out_specs=pl.BlockSpec((GBLK, OUT_PAD), lambda g: (g, 0)),
        ),
        compiler_params=pltpu.CompilerParams(dimension_semantics=("parallel",)),
    )(L_blk, x_blk, pool,
      w1, b1, w2s, b2, w3s, b3,
      bn_scale, bn_shift, f1w, f1b, f2w_pad, f2b_pad)

    return out_full[:, :NUM_CLASSES]


def init_params(key):
    ks = jax.random.split(key, 6)

    def glorot(k, shape):
        fan_in, fan_out = shape[-2], shape[-1]
        s = float(np.sqrt(6.0 / (fan_in + fan_out)))
        return jax.random.uniform(k, shape, jnp.float32, -s, s)

    w1 = glorot(ks[0], (K_CHEB, NINP_PAD, HIDDEN))
    # zero the padded input rows so feature padding is an exact no-op
    w1 = w1 * (jnp.arange(NINP_PAD) < NINP)[None, :, None].astype(jnp.float32)
    b1 = jnp.zeros((1, HIDDEN), jnp.float32)
    w2 = glorot(ks[1], (K_CHEB, HIDDEN, HIDDEN))
    b2 = jnp.zeros((1, HIDDEN), jnp.float32)
    w3 = glorot(ks[2], (K_CHEB, HIDDEN, HIDDEN))
    b3 = jnp.zeros((1, HIDDEN), jnp.float32)
    bn_g = jnp.ones((1, HIDDEN), jnp.float32)
    bn_b = jnp.zeros((1, HIDDEN), jnp.float32)
    bn_m = jnp.zeros((1, HIDDEN), jnp.float32)
    bn_v = jnp.ones((1, HIDDEN), jnp.float32)
    f1w = glorot(ks[3], (HIDDEN, FC_HIDDEN))
    f1b = jnp.zeros((1, FC_HIDDEN), jnp.float32)
    f2w = glorot(ks[4], (FC_HIDDEN, NUM_CLASSES))
    f2b = jnp.zeros((1, NUM_CLASSES), jnp.float32)
    return (w1, b1, w2, b2, w3, b3, bn_g, bn_b, bn_m, bn_v, f1w, f1b, f2w, f2b)


def make_graphs(key, B, N):
    kA, kx = jax.random.split(key)
    # random symmetric adjacency (no self loops) + ring so every degree >= 1
    u = jax.random.bernoulli(kA, 0.3, (B, N, N)).astype(jnp.float32)
    iu = jnp.triu(jnp.ones((N, N), jnp.float32), k=1)
    A = u * iu
    A = A + jnp.swapaxes(A, 1, 2)
    ring = np.zeros((N, N), np.float32)
    for i in range(N):
        ring[i, (i + 1) % N] = 1.0
        ring[(i + 1) % N, i] = 1.0
    A = jnp.clip(A + ring[None], 0.0, 1.0)

    A_np = np.asarray(A)
    I = np.eye(N, dtype=np.float32)
    L_hat = np.zeros((B, N, N), np.float32)
    for b in range(B):
        deg = A_np[b].sum(-1)
        dinv = 1.0 / np.sqrt(deg)
        L = I - dinv[:, None] * A_np[b] * dinv[None, :]
        lmax = float(np.linalg.eigvalsh(L).max())   # data.lmax
        L_hat[b] = (2.0 / lmax) * L - I

    x = jax.random.normal(kx, (B, N, NINP), jnp.float32)
    x_pad = jnp.concatenate(
        [x, jnp.zeros((B, N, NINP_PAD - NINP), jnp.float32)], axis=-1)
    return jnp.asarray(L_hat), x_pad


def reference_forward(L_hat, x, params):
    (w1, b1, w2, b2, w3, b3, g, beta, rm, rv, f1w, f1b, f2w, f2b) = params

    def cheb(L, x, W, b):
        tx0 = x
        out = tx0 @ W[0]
        tx1 = L @ tx0
        out = out + tx1 @ W[1]
        for k in range(2, K_CHEB):
            tx2 = 2.0 * (L @ tx1) - tx0
            out = out + tx2 @ W[k]
            tx0, tx1 = tx1, tx2
        return out + b

    def per_graph(L, x):
        h = jax.nn.relu(cheb(L, x, w1, b1))
        h = jax.nn.relu(cheb(L, h, w2, b2))
        h = jax.nn.relu(cheb(L, h, w3, b3))
        p = jnp.mean(h, axis=0, keepdims=True)
        p = (p - rm) / jnp.sqrt(rv + BN_EPS) * g + beta
        h1 = jax.nn.relu(p @ f1w + f1b)
        logits = h1 @ f2w + f2b
        return jax.nn.log_softmax(logits, axis=-1)[0]

    return jax.vmap(per_graph)(L_hat, x)


if __name__ == "__main__":
    key = jax.random.PRNGKey(0)
    kg, kp = jax.random.split(key)
    B = 16                       # 2 grid steps of GBLK=8 graphs each
    L_hat, x = make_graphs(kg, B, NUM_NODES)
    params = init_params(kp)

    out = jax.block_until_ready(chebnet_forward(L_hat, x, params))
    ref = jax.block_until_ready(reference_forward(L_hat, x, params))
    assert out.shape == (B, NUM_CLASSES)
    assert np.allclose(np.asarray(out), np.asarray(ref), atol=1e-4, rtol=1e-4), \
        "Pallas kernel disagrees with reference"
    print("KERNEL_OK")
</pallas_src>

<mosaic_0001>
module attributes {stable_mosaic.version = 11 : i64} {
  func.func @chebnet_kernel(%arg0: i32, %arg1: memref<1x128x128xf32, #tpu.memory_space<vmem>>, %arg2: memref<1x128x8xf32, #tpu.memory_space<vmem>>, %arg3: memref<8x128xf32, #tpu.memory_space<vmem>>, %arg4: memref<5x8x64xf32, #tpu.memory_space<vmem>>, %arg5: memref<1x64xf32, #tpu.memory_space<vmem>>, %arg6: memref<320x64xf32, #tpu.memory_space<vmem>>, %arg7: memref<1x64xf32, #tpu.memory_space<vmem>>, %arg8: memref<320x64xf32, #tpu.memory_space<vmem>>, %arg9: memref<1x64xf32, #tpu.memory_space<vmem>>, %arg10: memref<1x64xf32, #tpu.memory_space<vmem>>, %arg11: memref<1x64xf32, #tpu.memory_space<vmem>>, %arg12: memref<64x32xf32, #tpu.memory_space<vmem>>, %arg13: memref<1x32xf32, #tpu.memory_space<vmem>>, %arg14: memref<32x128xf32, #tpu.memory_space<vmem>>, %arg15: memref<1x128xf32, #tpu.memory_space<vmem>>, %arg16: memref<8x128xf32, #tpu.memory_space<vmem>>) attributes {dimension_semantics = [#tpu.dimension_semantics<parallel>], iteration_bounds = array<i64: 2>, scalar_prefetch = 0 : i64, scratch_operands = 0 : i64, tpu.core_type = #tpu.core_type<tc>, window_params = [{transform_indices = @transform_0, window_bounds = array<i64: 1, 128, 128>}, {transform_indices = @transform_1, window_bounds = array<i64: 1, 128, 8>}, {pipeline_mode = #tpu.pipeline_mode<synchronous>, transform_indices = @transform_2, window_bounds = array<i64: 8, 128>}, {pipeline_mode = #tpu.pipeline_mode<synchronous>, transform_indices = @transform_3, window_bounds = array<i64: 5, 8, 64>}, {pipeline_mode = #tpu.pipeline_mode<synchronous>, transform_indices = @transform_4, window_bounds = array<i64: 1, 64>}, {pipeline_mode = #tpu.pipeline_mode<synchronous>, transform_indices = @transform_5, window_bounds = array<i64: 320, 64>}, {pipeline_mode = #tpu.pipeline_mode<synchronous>, transform_indices = @transform_6, window_bounds = array<i64: 1, 64>}, {pipeline_mode = #tpu.pipeline_mode<synchronous>, transform_indices = @transform_7, window_bounds = array<i64: 320, 64>}, {pipeline_mode = #tpu.pipeline_mode<synchronous>, transform_indices = @transform_8, window_bounds = array<i64: 1, 64>}, {pipeline_mode = #tpu.pipeline_mode<synchronous>, transform_indices = @transform_9, window_bounds = array<i64: 1, 64>}, {pipeline_mode = #tpu.pipeline_mode<synchronous>, transform_indices = @transform_10, window_bounds = array<i64: 1, 64>}, {pipeline_mode = #tpu.pipeline_mode<synchronous>, transform_indices = @transform_11, window_bounds = array<i64: 64, 32>}, {pipeline_mode = #tpu.pipeline_mode<synchronous>, transform_indices = @transform_12, window_bounds = array<i64: 1, 32>}, {pipeline_mode = #tpu.pipeline_mode<synchronous>, transform_indices = @transform_13, window_bounds = array<i64: 32, 128>}, {pipeline_mode = #tpu.pipeline_mode<synchronous>, transform_indices = @transform_14, window_bounds = array<i64: 1, 128>}, {transform_indices = @transform_15, window_bounds = array<i64: 8, 128>}]} {
    %c0 = arith.constant 0 : index
    %c0_0 = arith.constant 0 : index
    %c0_1 = arith.constant 0 : index
    %0 = vector.load %arg1[%c0, %c0_0, %c0_1] : memref<1x128x128xf32, #tpu.memory_space<vmem>>, vector<1x128x128xf32>
    %1 = vector.shape_cast %0 : vector<1x128x128xf32> to vector<128x128xf32>
    %c0_2 = arith.constant 0 : index
    %c0_3 = arith.constant 0 : index
    %c0_4 = arith.constant 0 : index
    %2 = vector.load %arg2[%c0_2, %c0_3, %c0_4] : memref<1x128x8xf32, #tpu.memory_space<vmem>>, vector<1x128x8xf32>
    %3 = vector.shape_cast %2 : vector<1x128x8xf32> to vector<128x8xf32>
    %c0_5 = arith.constant 0 : index
    %c0_6 = arith.constant 0 : index
    %c0_7 = arith.constant 0 : index
    %4 = vector.load %arg4[%c0_5, %c0_6, %c0_7] : memref<5x8x64xf32, #tpu.memory_space<vmem>>, vector<5x8x64xf32>
    %c0_8 = arith.constant 0 : index
    %c0_9 = arith.constant 0 : index
    %5 = vector.load %arg5[%c0_8, %c0_9] : memref<1x64xf32, #tpu.memory_space<vmem>>, vector<1x64xf32>
    %6 = vector.extract_strided_slice %4 {offsets = [0, 0, 0], sizes = [1, 8, 64], strides = [1, 1, 1]} : vector<5x8x64xf32> to vector<1x8x64xf32>
    %7 = vector.shape_cast %6 : vector<1x8x64xf32> to vector<8x64xf32>
    %cst = arith.constant dense<0.000000e+00> : vector<128x64xf32>
    %8 = tpu.matmul %3, %7, %cst {dimension_numbers = #tpu.dot_dimension_numbers<[1], [0], [0], [1], [0, 0, 1, 1], [], []>} : vector<128x8xf32>, vector<8x64xf32>, vector<128x64xf32> -> vector<128x64xf32>
    %cst_10 = arith.constant dense<0.000000e+00> : vector<128x8xf32>
    %9 = tpu.matmul %1, %3, %cst_10 {dimension_numbers = #tpu.dot_dimension_numbers<[1], [0], [0], [1], [0, 0, 1, 1], [], []>} : vector<128x128xf32>, vector<128x8xf32>, vector<128x8xf32> -> vector<128x8xf32>
    %10 = vector.extract_strided_slice %4 {offsets = [1, 0, 0], sizes = [1, 8, 64], strides = [1, 1, 1]} : vector<5x8x64xf32> to vector<1x8x64xf32>
    %11 = vector.shape_cast %10 : vector<1x8x64xf32> to vector<8x64xf32>
    %cst_11 = arith.constant dense<0.000000e+00> : vector<128x64xf32>
    %12 = tpu.matmul %9, %11, %cst_11 {dimension_numbers = #tpu.dot_dimension_numbers<[1], [0], [0], [1], [0, 0, 1, 1], [], []>} : vector<128x8xf32>, vector<8x64xf32>, vector<128x64xf32> -> vector<128x64xf32>
    %13 = arith.addf %8, %12 : vector<128x64xf32>
    %cst_12 = arith.constant dense<0.000000e+00> : vector<128x8xf32>
    %14 = tpu.matmul %1, %9, %cst_12 {dimension_numbers = #tpu.dot_dimension_numbers<[1], [0], [0], [1], [0, 0, 1, 1], [], []>} : vector<128x128xf32>, vector<128x8xf32>, vector<128x8xf32> -> vector<128x8xf32>
    %cst_13 = arith.constant 2.000000e+00 : f32
    %15 = vector.broadcast %cst_13 : f32 to vector<128x8xf32>
    %16 = arith.mulf %15, %14 : vector<128x8xf32>
    %17 = arith.subf %16, %3 : vector<128x8xf32>
    %18 = vector.extract_strided_slice %4 {offsets = [2, 0, 0], sizes = [1, 8, 64], strides = [1, 1, 1]} : vector<5x8x64xf32> to vector<1x8x64xf32>
    %19 = vector.shape_cast %18 : vector<1x8x64xf32> to vector<8x64xf32>
    %cst_14 = arith.constant dense<0.000000e+00> : vector<128x64xf32>
    %20 = tpu.matmul %17, %19, %cst_14 {dimension_numbers = #tpu.dot_dimension_numbers<[1], [0], [0], [1], [0, 0, 1, 1], [], []>} : vector<128x8xf32>, vector<8x64xf32>, vector<128x64xf32> -> vector<128x64xf32>
    %21 = arith.addf %13, %20 : vector<128x64xf32>
    %cst_15 = arith.constant dense<0.000000e+00> : vector<128x8xf32>
    %22 = tpu.matmul %1, %17, %cst_15 {dimension_numbers = #tpu.dot_dimension_numbers<[1], [0], [0], [1], [0, 0, 1, 1], [], []>} : vector<128x128xf32>, vector<128x8xf32>, vector<128x8xf32> -> vector<128x8xf32>
    %cst_16 = arith.constant 2.000000e+00 : f32
    %23 = vector.broadcast %cst_16 : f32 to vector<128x8xf32>
    %24 = arith.mulf %23, %22 : vector<128x8xf32>
    %25 = arith.subf %24, %9 : vector<128x8xf32>
    %26 = vector.extract_strided_slice %4 {offsets = [3, 0, 0], sizes = [1, 8, 64], strides = [1, 1, 1]} : vector<5x8x64xf32> to vector<1x8x64xf32>
    %27 = vector.shape_cast %26 : vector<1x8x64xf32> to vector<8x64xf32>
    %cst_17 = arith.constant dense<0.000000e+00> : vector<128x64xf32>
    %28 = tpu.matmul %25, %27, %cst_17 {dimension_numbers = #tpu.dot_dimension_numbers<[1], [0], [0], [1], [0, 0, 1, 1], [], []>} : vector<128x8xf32>, vector<8x64xf32>, vector<128x64xf32> -> vector<128x64xf32>
    %29 = arith.addf %21, %28 : vector<128x64xf32>
    %cst_18 = arith.constant dense<0.000000e+00> : vector<128x8xf32>
    %30 = tpu.matmul %1, %25, %cst_18 {dimension_numbers = #tpu.dot_dimension_numbers<[1], [0], [0], [1], [0, 0, 1, 1], [], []>} : vector<128x128xf32>, vector<128x8xf32>, vector<128x8xf32> -> vector<128x8xf32>
    %cst_19 = arith.constant 2.000000e+00 : f32
    %31 = vector.broadcast %cst_19 : f32 to vector<128x8xf32>
    %32 = arith.mulf %31, %30 : vector<128x8xf32>
    %33 = arith.subf %32, %17 : vector<128x8xf32>
    %34 = vector.extract_strided_slice %4 {offsets = [4, 0, 0], sizes = [1, 8, 64], strides = [1, 1, 1]} : vector<5x8x64xf32> to vector<1x8x64xf32>
    %35 = vector.shape_cast %34 : vector<1x8x64xf32> to vector<8x64xf32>
    %cst_20 = arith.constant dense<0.000000e+00> : vector<128x64xf32>
    %36 = tpu.matmul %33, %35, %cst_20 {dimension_numbers = #tpu.dot_dimension_numbers<[1], [0], [0], [1], [0, 0, 1, 1], [], []>} : vector<128x8xf32>, vector<8x64xf32>, vector<128x64xf32> -> vector<128x64xf32>
    %37 = arith.addf %29, %36 : vector<128x64xf32>
    %38 = vector.broadcast %5 : vector<1x64xf32> to vector<128x64xf32>
    %39 = arith.addf %37, %38 : vector<128x64xf32>
    %cst_21 = arith.constant 0.000000e+00 : f32
    %40 = vector.broadcast %cst_21 : f32 to vector<128x64xf32>
    %41 = arith.maximumf %39, %40 : vector<128x64xf32>
    %c0_22 = arith.constant 0 : index
    %c0_23 = arith.constant 0 : index
    %42 = vector.load %arg6[%c0_22, %c0_23] : memref<320x64xf32, #tpu.memory_space<vmem>>, vector<320x64xf32>
    %c0_24 = arith.constant 0 : index
    %c0_25 = arith.constant 0 : index
    %43 = vector.load %arg7[%c0_24, %c0_25] : memref<1x64xf32, #tpu.memory_space<vmem>>, vector<1x64xf32>
    %cst_26 = arith.constant dense<0.000000e+00> : vector<128x64xf32>
    %44 = tpu.matmul %1, %41, %cst_26 {dimension_numbers = #tpu.dot_dimension_numbers<[1], [0], [0], [1], [0, 0, 1, 1], [], []>} : vector<128x128xf32>, vector<128x64xf32>, vector<128x64xf32> -> vector<128x64xf32>
    %cst_27 = arith.constant dense<0.000000e+00> : vector<128x64xf32>
    %45 = tpu.matmul %1, %44, %cst_27 {dimension_numbers = #tpu.dot_dimension_numbers<[1], [0], [0], [1], [0, 0, 1, 1], [], []>} : vector<128x128xf32>, vector<128x64xf32>, vector<128x64xf32> -> vector<128x64xf32>
    %cst_28 = arith.constant 2.000000e+00 : f32
    %46 = vector.broadcast %cst_28 : f32 to vector<128x64xf32>
    %47 = arith.mulf %46, %45 : vector<128x64xf32>
    %48 = arith.subf %47, %41 : vector<128x64xf32>
    %cst_29 = arith.constant dense<0.000000e+00> : vector<128x64xf32>
    %49 = tpu.matmul %1, %48, %cst_29 {dimension_numbers = #tpu.dot_dimension_numbers<[1], [0], [0], [1], [0, 0, 1, 1], [], []>} : vector<128x128xf32>, vector<128x64xf32>, vector<128x64xf32> -> vector<128x64xf32>
    %cst_30 = arith.constant 2.000000e+00 : f32
    %50 = vector.broadcast %cst_30 : f32 to vector<128x64xf32>
    %51 = arith.mulf %50, %49 : vector<128x64xf32>
    %52 = arith.subf %51, %44 : vector<128x64xf32>
    %cst_31 = arith.constant dense<0.000000e+00> : vector<128x64xf32>
    %53 = tpu.matmul %1, %52, %cst_31 {dimension_numbers = #tpu.dot_dimension_numbers<[1], [0], [0], [1], [0, 0, 1, 1], [], []>} : vector<128x128xf32>, vector<128x64xf32>, vector<128x64xf32> -> vector<128x64xf32>
    %cst_32 = arith.constant 2.000000e+00 : f32
    %54 = vector.broadcast %cst_32 : f32 to vector<128x64xf32>
    %55 = arith.mulf %54, %53 : vector<128x64xf32>
    %56 = arith.subf %55, %48 : vector<128x64xf32>
    %57 = tpu.concatenate %41, %44, %48, %52, %56 in 1 : vector<128x64xf32>, vector<128x64xf32>, vector<128x64xf32>, vector<128x64xf32>, vector<128x64xf32> -> vector<128x320xf32>
    %cst_33 = arith.constant dense<0.000000e+00> : vector<128x64xf32>
    %58 = tpu.matmul %57, %42, %cst_33 {dimension_numbers = #tpu.dot_dimension_numbers<[1], [0], [0], [1], [0, 0, 1, 1], [], []>} : vector<128x320xf32>, vector<320x64xf32>, vector<128x64xf32> -> vector<128x64xf32>
    %59 = vector.broadcast %43 : vector<1x64xf32> to vector<128x64xf32>
    %60 = arith.addf %58, %59 : vector<128x64xf32>
    %cst_34 = arith.constant 0.000000e+00 : f32
    %61 = vector.broadcast %cst_34 : f32 to vector<128x64xf32>
    %62 = arith.maximumf %60, %61 : vector<128x64xf32>
    %c0_35 = arith.constant 0 : index
    %c0_36 = arith.constant 0 : index
    %63 = vector.load %arg8[%c0_35, %c0_36] : memref<320x64xf32, #tpu.memory_space<vmem>>, vector<320x64xf32>
    %c0_37 = arith.constant 0 : index
    %c0_38 = arith.constant 0 : index
    %64 = vector.load %arg9[%c0_37, %c0_38] : memref<1x64xf32, #tpu.memory_space<vmem>>, vector<1x64xf32>
    %cst_39 = arith.constant dense<0.000000e+00> : vector<128x64xf32>
    %65 = tpu.matmul %1, %62, %cst_39 {dimension_numbers = #tpu.dot_dimension_numbers<[1], [0], [0], [1], [0, 0, 1, 1], [], []>} : vector<128x128xf32>, vector<128x64xf32>, vector<128x64xf32> -> vector<128x64xf32>
    %cst_40 = arith.constant dense<0.000000e+00> : vector<128x64xf32>
    %66 = tpu.matmul %1, %65, %cst_40 {dimension_numbers = #tpu.dot_dimension_numbers<[1], [0], [0], [1], [0, 0, 1, 1], [], []>} : vector<128x128xf32>, vector<128x64xf32>, vector<128x64xf32> -> vector<128x64xf32>
    %cst_41 = arith.constant 2.000000e+00 : f32
    %67 = vector.broadcast %cst_41 : f32 to vector<128x64xf32>
    %68 = arith.mulf %67, %66 : vector<128x64xf32>
    %69 = arith.subf %68, %62 : vector<128x64xf32>
    %cst_42 = arith.constant dense<0.000000e+00> : vector<128x64xf32>
    %70 = tpu.matmul %1, %69, %cst_42 {dimension_numbers = #tpu.dot_dimension_numbers<[1], [0], [0], [1], [0, 0, 1, 1], [], []>} : vector<128x128xf32>, vector<128x64xf32>, vector<128x64xf32> -> vector<128x64xf32>
    %cst_43 = arith.constant 2.000000e+00 : f32
    %71 = vector.broadcast %cst_43 : f32 to vector<128x64xf32>
    %72 = arith.mulf %71, %70 : vector<128x64xf32>
    %73 = arith.subf %72, %65 : vector<128x64xf32>
    %cst_44 = arith.constant dense<0.000000e+00> : vector<128x64xf32>
    %74 = tpu.matmul %1, %73, %cst_44 {dimension_numbers = #tpu.dot_dimension_numbers<[1], [0], [0], [1], [0, 0, 1, 1], [], []>} : vector<128x128xf32>, vector<128x64xf32>, vector<128x64xf32> -> vector<128x64xf32>
    %cst_45 = arith.constant 2.000000e+00 : f32
    %75 = vector.broadcast %cst_45 : f32 to vector<128x64xf32>
    %76 = arith.mulf %75, %74 : vector<128x64xf32>
    %77 = arith.subf %76, %69 : vector<128x64xf32>
    %78 = tpu.concatenate %62, %65, %69, %73, %77 in 1 : vector<128x64xf32>, vector<128x64xf32>, vector<128x64xf32>, vector<128x64xf32>, vector<128x64xf32> -> vector<128x320xf32>
    %cst_46 = arith.constant dense<0.000000e+00> : vector<128x64xf32>
    %79 = tpu.matmul %78, %63, %cst_46 {dimension_numbers = #tpu.dot_dimension_numbers<[1], [0], [0], [1], [0, 0, 1, 1], [], []>} : vector<128x320xf32>, vector<320x64xf32>, vector<128x64xf32> -> vector<128x64xf32>
    %80 = vector.broadcast %64 : vector<1x64xf32> to vector<128x64xf32>
    %81 = arith.addf %79, %80 : vector<128x64xf32>
    %cst_47 = arith.constant 0.000000e+00 : f32
    %82 = vector.broadcast %cst_47 : f32 to vector<128x64xf32>
    %83 = arith.maximumf %81, %82 : vector<128x64xf32>
    %c0_48 = arith.constant 0 : index
    %c0_49 = arith.constant 0 : index
    %84 = vector.load %arg3[%c0_48, %c0_49] : memref<8x128xf32, #tpu.memory_space<vmem>>, vector<8x128xf32>
    %cst_50 = arith.constant dense<0.000000e+00> : vector<8x64xf32>
    %85 = tpu.matmul %84, %83, %cst_50 {dimension_numbers = #tpu.dot_dimension_numbers<[1], [0], [0], [1], [0, 0, 1, 1], [], []>} : vector<8x128xf32>, vector<128x64xf32>, vector<8x64xf32> -> vector<8x64xf32>
    %c0_51 = arith.constant 0 : index
    %c0_52 = arith.constant 0 : index
    %86 = vector.load %arg10[%c0_51, %c0_52] : memref<1x64xf32, #tpu.memory_space<vmem>>, vector<1x64xf32>
    %87 = vector.broadcast %86 : vector<1x64xf32> to vector<8x64xf32>
    %88 = arith.mulf %85, %87 : vector<8x64xf32>
    %c0_53 = arith.constant 0 : index
    %c0_54 = arith.constant 0 : index
    %89 = vector.load %arg11[%c0_53, %c0_54] : memref<1x64xf32, #tpu.memory_space<vmem>>, vector<1x64xf32>
    %90 = vector.broadcast %89 : vector<1x64xf32> to vector<8x64xf32>
    %91 = arith.addf %88, %90 : vector<8x64xf32>
    %c0_55 = arith.constant 0 : index
    %c0_56 = arith.constant 0 : index
    %92 = vector.load %arg12[%c0_55, %c0_56] : memref<64x32xf32, #tpu.memory_space<vmem>>, vector<64x32xf32>
    %cst_57 = arith.constant dense<0.000000e+00> : vector<8x32xf32>
    %93 = tpu.matmul %91, %92, %cst_57 {dimension_numbers = #tpu.dot_dimension_numbers<[1], [0], [0], [1], [0, 0, 1, 1], [], []>} : vector<8x64xf32>, vector<64x32xf32>, vector<8x32xf32> -> vector<8x32xf32>
    %c0_58 = arith.constant 0 : index
    %c0_59 = arith.constant 0 : index
    %94 = vector.load %arg13[%c0_58, %c0_59] : memref<1x32xf32, #tpu.memory_space<vmem>>, vector<1x32xf32>
    %95 = vector.broadcast %94 : vector<1x32xf32> to vector<8x32xf32>
    %96 = arith.addf %93, %95 : vector<8x32xf32>
    %cst_60 = arith.constant 0.000000e+00 : f32
    %97 = vector.broadcast %cst_60 : f32 to vector<8x32xf32>
    %98 = arith.maximumf %96, %97 : vector<8x32xf32>
    %c0_61 = arith.constant 0 : index
    %c0_62 = arith.constant 0 : index
    %99 = vector.load %arg14[%c0_61, %c0_62] : memref<32x128xf32, #tpu.memory_space<vmem>>, vector<32x128xf32>
    %cst_63 = arith.constant dense<0.000000e+00> : vector<8x128xf32>
    %100 = tpu.matmul %98, %99, %cst_63 {dimension_numbers = #tpu.dot_dimension_numbers<[1], [0], [0], [1], [0, 0, 1, 1], [], []>} : vector<8x32xf32>, vector<32x128xf32>, vector<8x128xf32> -> vector<8x128xf32>
    %c0_64 = arith.constant 0 : index
    %c0_65 = arith.constant 0 : index
    %101 = vector.load %arg15[%c0_64, %c0_65] : memref<1x128xf32, #tpu.memory_space<vmem>>, vector<1x128xf32>
    %102 = vector.broadcast %101 : vector<1x128xf32> to vector<8x128xf32>
    %103 = arith.addf %100, %102 : vector<8x128xf32>
    %104 = tpu.iota {dimensions = array<i32: 1>} : vector<8x128xi32>
    %c10_i32 = arith.constant 10 : i32
    %105 = vector.broadcast %c10_i32 : i32 to vector<8x128xi32>
    %106 = arith.cmpi slt, %104, %105 : vector<8x128xi32>
    %cst_66 = arith.constant -1.000000e+30 : f32
    %107 = vector.broadcast %cst_66 : f32 to vector<8x128xf32>
    %108 = arith.select %106, %103, %107 : vector<8x128xi1>, vector<8x128xf32>
    %cst_67 = arith.constant dense<0xFF800000> : vector<8xf32>
    %109 = vector.multi_reduction <maximumf>, %108, %cst_67 [1] : vector<8x128xf32> to vector<8xf32>
    %110 = vector.shape_cast %109 : vector<8xf32> to vector<8x1xf32>
    %111 = vector.broadcast %110 : vector<8x1xf32> to vector<8x128xf32>
    %112 = arith.subf %108, %111 : vector<8x128xf32>
    %113 = math.exp %112 : vector<8x128xf32>
    %cst_68 = arith.constant dense<0.000000e+00> : vector<8xf32>
    %114 = vector.multi_reduction <add>, %113, %cst_68 [1] : vector<8x128xf32> to vector<8xf32>
    %115 = vector.shape_cast %114 : vector<8xf32> to vector<8x1xf32>
    %116 = math.log %115 : vector<8x1xf32>
    %117 = vector.broadcast %116 : vector<8x1xf32> to vector<8x128xf32>
    %118 = arith.subf %112, %117 : vector<8x128xf32>
    %c0_69 = arith.constant 0 : index
    %c0_70 = arith.constant 0 : index
    %119 = vector.load %arg16[%c0_69, %c0_70] : memref<8x128xf32, #tpu.memory_space<vmem>>, vector<8x128xf32>
    tpu.vector_store %arg16[%c0_69, %c0_70], %118 {strides = array<i32>} : memref<8x128xf32, #tpu.memory_space<vmem>>, vector<8x128xf32>,
    return
  }
  func.func @transform_0(%arg0: i32) -> (i32, i32, i32) {
    %c0_i32 = arith.constant 0 : i32
    %c0_i32_0 = arith.constant 0 : i32
    %c0_i32_1 = arith.constant 0 : i32
    return %arg0, %c0_i32, %c0_i32_0 : i32, i32, i32
  }
  func.func @transform_1(%arg0: i32) -> (i32, i32, i32) {
    %c0_i32 = arith.constant 0 : i32
    %c0_i32_0 = arith.constant 0 : i32
    %c0_i32_1 = arith.constant 0 : i32
    return %arg0, %c0_i32, %c0_i32_0 : i32, i32, i32
  }
  func.func @transform_2(%arg0: i32) -> (i32, i32) {
    %c0_i32 = arith.constant 0 : i32
    %c0_i32_0 = arith.constant 0 : i32
    %c0_i32_1 = arith.constant 0 : i32
    return %c0_i32, %c0_i32_0 : i32, i32
  }
  func.func @transform_3(%arg0: i32) -> (i32, i32, i32) {
    %c0_i32 = arith.constant 0 : i32
    %c0_i32_0 = arith.constant 0 : i32
    %c0_i32_1 = arith.constant 0 : i32
    %c0_i32_2 = arith.constant 0 : i32
    return %c0_i32, %c0_i32_0, %c0_i32_1 : i32, i32, i32
  }
  func.func @transform_4(%arg0: i32) -> (i32, i32) {
    %c0_i32 = arith.constant 0 : i32
    %c0_i32_0 = arith.constant 0 : i32
    %c0_i32_1 = arith.constant 0 : i32
    return %c0_i32, %c0_i32_0 : i32, i32
  }
  func.func @transform_5(%arg0: i32) -> (i32, i32) {
    %c0_i32 = arith.constant 0 : i32
    %c0_i32_0 = arith.constant 0 : i32
    %c0_i32_1 = arith.constant 0 : i32
    return %c0_i32, %c0_i32_0 : i32, i32
  }
  func.func @transform_6(%arg0: i32) -> (i32, i32) {
    %c0_i32 = arith.constant 0 : i32
    %c0_i32_0 = arith.constant 0 : i32
    %c0_i32_1 = arith.constant 0 : i32
    return %c0_i32, %c0_i32_0 : i32, i32
  }
  func.func @transform_7(%arg0: i32) -> (i32, i32) {
    %c0_i32 = arith.constant 0 : i32
    %c0_i32_0 = arith.constant 0 : i32
    %c0_i32_1 = arith.constant 0 : i32
    return %c0_i32, %c0_i32_0 : i32, i32
  }
  func.func @transform_8(%arg0: i32) -> (i32, i32) {
    %c0_i32 = arith.constant 0 : i32
    %c0_i32_0 = arith.constant 0 : i32
    %c0_i32_1 = arith.constant 0 : i32
    return %c0_i32, %c0_i32_0 : i32, i32
  }
  func.func @transform_9(%arg0: i32) -> (i32, i32) {
    %c0_i32 = arith.constant 0 : i32
    %c0_i32_0 = arith.constant 0 : i32
    %c0_i32_1 = arith.constant 0 : i32
    return %c0_i32, %c0_i32_0 : i32, i32
  }
  func.func @transform_10(%arg0: i32) -> (i32, i32) {
    %c0_i32 = arith.constant 0 : i32
    %c0_i32_0 = arith.constant 0 : i32
    %c0_i32_1 = arith.constant 0 : i32
    return %c0_i32, %c0_i32_0 : i32, i32
  }
  func.func @transform_11(%arg0: i32) -> (i32, i32) {
    %c0_i32 = arith.constant 0 : i32
    %c0_i32_0 = arith.constant 0 : i32
    %c0_i32_1 = arith.constant 0 : i32
    return %c0_i32, %c0_i32_0 : i32, i32
  }
  func.func @transform_12(%arg0: i32) -> (i32, i32) {
    %c0_i32 = arith.constant 0 : i32
    %c0_i32_0 = arith.constant 0 : i32
    %c0_i32_1 = arith.constant 0 : i32
    return %c0_i32, %c0_i32_0 : i32, i32
  }
  func.func @transform_13(%arg0: i32) -> (i32, i32) {
    %c0_i32 = arith.constant 0 : i32
    %c0_i32_0 = arith.constant 0 : i32
    %c0_i32_1 = arith.constant 0 : i32
    return %c0_i32, %c0_i32_0 : i32, i32
  }
  func.func @transform_14(%arg0: i32) -> (i32, i32) {
    %c0_i32 = arith.constant 0 : i32
    %c0_i32_0 = arith.constant 0 : i32
    %c0_i32_1 = arith.constant 0 : i32
    return %c0_i32, %c0_i32_0 : i32, i32
  }
  func.func @transform_15(%arg0: i32) -> (i32, i32) {
    %c0_i32 = arith.constant 0 : i32
    %c0_i32_0 = arith.constant 0 : i32
    return %arg0, %c0_i32 : i32, i32
  }
}

</mosaic_0001>

<bundles_post_ra>
// kernel: tpu_custom_call.1
= control target key start
LH: loop header
LB: loop body
LE: loop exit
PB: predicated region body
PF: predicated region fallthrough
CT: control target
= control target key end

     0   :  { %s6010_s0 = inlined_call_operand.vmem [shape: f32[2,128,128], index: 0, kind: input, shape index: {}]   ;;  %s6011_s1 = inlined_call_operand.vmem [shape: f32[2,128,8], index: 1, kind: input, shape index: {}]   ;;  %s6012_s2 = inlined_call_operand.vmem [shape: f32[8,128], index: 2, kind: input, shape index: {}]   ;;  %s6013_s3 = inlined_call_operand.vmem [shape: f32[5,8,64], index: 3, kind: input, shape index: {}]   ;;  %s6014_s4 = inlined_call_operand.vmem [shape: f32[1,64], index: 4, kind: input, shape index: {}]   ;;  %s6015_s5 = inlined_call_operand.vmem [shape: f32[320,64], index: 5, kind: input, shape index: {}]   ;;  %s6016_s6 = inlined_call_operand.vmem [shape: f32[1,64], index: 6, kind: input, shape index: {}]   ;;  %s6017_s7 = inlined_call_operand.vmem [shape: f32[320,64], index: 7, kind: input, shape index: {}]   ;;  %s6018_s8 = inlined_call_operand.vmem [shape: f32[1,64], index: 8, kind: input, shape index: {}]   ;;  %s6019_s9 = inlined_call_operand.vmem [shape: f32[1,64], index: 9, kind: input, shape index: {}]   ;;  %s6020_s10 = inlined_call_operand.vmem [shape: f32[1,64], index: 10, kind: input, shape index: {}]   ;;  %s6021_s11 = inlined_call_operand.vmem [shape: f32[64,32], index: 11, kind: input, shape index: {}]   ;;  %s6022_s12 = inlined_call_operand.vmem [shape: f32[1,32], index: 12, kind: input, shape index: {}]   ;;  %s6023_s13 = inlined_call_operand.vmem [shape: f32[32,128], index: 13, kind: input, shape index: {}]   ;;  %s6024_s14 = inlined_call_operand.vmem [shape: f32[1,128], index: 14, kind: input, shape index: {}]   ;;  %s6025_s15 = inlined_call_operand.hbm [shape: f32[16,128], index: 15, kind: output, shape index: {}]  }
   0x1   :  { %6087 = sst [smem:[#allocation32_spill]] %s6010_s0 }
   0x2   :  { %6088 = sst [smem:[#allocation33_spill]] %s6011_s1 }
   0x3   :  { %6089 = sst [smem:[#allocation34_spill]] %s6012_s2 }
   0x4   :  { %6090 = sst [smem:[#allocation35_spill]] %s6013_s3 }
   0x5   :  { %6091 = sst [smem:[#allocation36_spill]] %s6014_s4 }
   0x6   :  { %6092 = sst [smem:[#allocation37_spill]] %s6015_s5 }
   0x7   :  { %20 = vsyncpa [#allocation3], 0 }
   0x8   :  { %22 = vsyncpa [#allocation3 + $0x1], 0  ;;  %s3844_s18 = smov 0   ;;  %s3846_s19 = smov 0  }
   0x9   :  { %s3848_s20 = smov 0   ;;  %s3850_s21 = smov 0  }
   0xa LB: > { %s3865_s22 = sadd.s32 4294967295, %s3761_s21   ;;  %s3396_s23 = sadd.s32 4294967294, %s3761_s21   ;;  %s3761_s21 = sphi %s3850_s21, %s6233_s21   ;;  %s3757_s20 = sphi %s3848_s20, %s6232_s20   ;;  %s3753_s19 = sphi %s3846_s19, %s6231_s19   ;;  %s3749_s18 = sphi %s3844_s18, %s6230_s18  }
   0xb   : > { %s3869_s24 = sadd.s32 1, %s3761_s21   ;;  %s360_s25 = sadd.s32 1, %s3757_s20 }
   0xc   : > { %s357_s26 = ssub.s32 %s3761_s21, %s3869_s24  ;;  %p370_p0 = scmp.ne.s32.totalorder %s3757_s20, %s3753_s19 }
   0xd   : > { %p358_p1 = scmp.eq.s32.totalorder %s357_s26, 0  ;;  %p371_p2 = scmp.eq.s32.totalorder %s3865_s22, 1 }
   0xe   : > { %p376_p3 = scmp.ne.s32.totalorder %s3753_s19, %s3749_s18  ;;  %p377_p4 = scmp.eq.s32.totalorder %s3396_s23, 1 }
   0xf   : > { %s3880_s27 = scalar_select %p358_p1, %s3757_s20, %s360_s25  }
  0x10   : > { %p3882_p5 = por %p371_p2, %p370_p0  ;;  %p3886_p6 = por %p377_p4, %p376_p3 }
  0x11   : > { %p3399_p7 = scmp.ge.s32.totalorder %s3761_s21, 1  ;;  %p450_p8 = scmp.lt.s32.totalorder %s3761_s21, 3 }
  0x13   : > { %p451_p9 = pnand %p3399_p7, %p450_p8 }
  0x15   : > { %454 = sbr.rel (%p451_p9) target bundleno = 4491 (0x118b), region = 80 }
  0x1a   : > { %p503_p10 = scmp.lt.s32.totalorder %s3865_s22, 1  ;;  %s6095_s1 = sld [smem:[#allocation33_spill]]  ;;  %vm616_vm0 = vcmask 64512   ;;  %vm2081_vm1 = vcmask 523264   ;;  %vm3270_vm2 = vcmask 261120  }
  0x1b   : > { %s6096_s0 = sld [smem:[#allocation32_spill]]  ;;  %s500_s26 = sand.u32 1, %s3753_s19  }
  0x1c   : > { %s3894_s30 = scalar_select %p503_p10, %s3865_s22, 1 }
  0x1d   : > { %s6097_s3 = sld [smem:[#allocation35_spill]]  ;;  %s3400_s17 = sshll.u32 %s500_s26, 3 }
  0x1e   : > { %s3523_s16 = sshll.u32 %s3894_s30, 7  ;;  %s6126_s4 = sld [smem:[#allocation36_spill]] }
  0x1f   : > { %s6162_s5 = sld [smem:[#allocation37_spill]]  ;;  %s3520_s30 = sshll.u32 %s3865_s22, 3 }
  0x20   : > { %s3902_s25 = scalar_lea.vmem %s6095_s1, %s3523_s16  ;;  %s6175_s1 = smov 64  }
  0x21   : > { %v3905_v0 = vld [vmem:[%s3902_s25 + $0x78] sm:$0xff]  ;;  %v3908_v1 = vld [vmem:[%s3902_s25 + $0x70] sm:$0xff]  ;;  %v3913_v2 = vld [vmem:[%s3902_s25 + $0x68] sm:$0xff]  ;;  %s3977_s23 = scalar_lea.vmem %s6096_s0, %s3523_s16  ;;  %s6229_s2 = sld [smem:[#allocation34_spill]] }
  0x22   : > { %551 = vmatpush.msra.mxu0 %v3905_v0  ;;  %3525 = vmatpush.msra.mxu3 %v3905_v0  ;;  %v3918_v3 = vld [vmem:[%s3902_s25 + $0x60] sm:$0xff]  ;;  %v3923_v4 = vld [vmem:[%s3902_s25 + $0x58] sm:$0xff]  ;;  %v3928_v5 = vld [vmem:[%s3902_s25 + $0x50] sm:$0xff]  ;;  %s3310_s16 = scalar_lea.sflag [#allocation3], %s500_s26 }
  0x23   : > { %v3933_v6 = vld [vmem:[%s3902_s25 + $0x48] sm:$0xff]  ;;  %v3938_v7 = vld [vmem:[%s3902_s25 + $0x40] sm:$0xff]  ;;  %v3943_v8 = vld [vmem:[%s3902_s25 + $0x38] sm:$0xff] }
  0x24   : > { %552 = vmatpush.msra.mxu0 %v3908_v1  ;;  %3526 = vmatpush.msra.mxu3 %v3908_v1  ;;  %v3948_v9 = vld [vmem:[%s3902_s25 + $0x30] sm:$0xff]  ;;  %v3953_v10 = vld [vmem:[%s3902_s25 + $0x28] sm:$0xff]  ;;  %v3958_v11 = vld [vmem:[%s3902_s25 + $0x20] sm:$0xff] }
  0x25   : > { %v3963_v12 = vld [vmem:[%s3902_s25 + $0x18] sm:$0xff]  ;;  %v3968_v13 = vld [vmem:[%s3902_s25 + $0x10] sm:$0xff]  ;;  %v3980_v14 = vld [vmem:[%s3902_s25 + $0x8] sm:$0xff] }
  0x26   : > { %553 = vmatpush.msra.mxu0 %v3913_v2  ;;  %3527 = vmatpush.msra.mxu3 %v3913_v2  ;;  %v3985_v15 = vld [vmem:[%s3902_s25] sm:$0xff]  ;;  %v4000_v18 = vld [vmem:[%s3977_s23 + $0x8] sm:$0xff]  ;;  %v4008_v20 = vld [vmem:[%s3977_s23 + $0x10] sm:$0xff]  ;;  %s6026_s25 = smov 64  }
  0x27   : > { %v3989_v16 = vld [vmem:[%s3977_s23] sm:$0xff]  ;;  %v4003_v19 = vld [vmem:[%s3977_s23 + $0x68] sm:$0xff]  ;;  %v4011_v21 = vld [vmem:[%s3977_s23 + $0x70] sm:$0xff] }
  0x28   : > { %554 = vmatpush.msra.mxu0 %v3918_v3  ;;  %3528 = vmatpush.msra.mxu3 %v3918_v3  ;;  %v3993_v17 = vld [vmem:[%s3977_s23 + $0x60] sm:$0xff]  ;;  %v4016_v22 = vld [vmem:[%s3977_s23 + $0x18] sm:$0xff]  ;;  %v4028_v25 = vld [vmem:[%s3977_s23 + $0x28] sm:$0xff] }
  0x29   : > { %v4019_v23 = vld [vmem:[%s3977_s23 + $0x78] sm:$0xff]  ;;  %v4024_v24 = vld [vmem:[%s3977_s23 + $0x20] sm:$0xff]  ;;  %v4032_v26 = vld [vmem:[%s3977_s23 + $0x30] sm:$0xff] }
  0x2a   : > { %555 = vmatpush.msra.mxu0 %v3923_v4  ;;  %3529 = vmatpush.msra.mxu3 %v3923_v4  ;;  %v4036_v27 = vld [vmem:[%s3977_s23 + $0x38] sm:$0xff]  ;;  %v545_v28 = vld [vmem:[%s6097_s3] sm:$0xff]  ;;  %v4051_v30 = vld [vmem:[%s3977_s23 + $0x48] sm:$0xff] }
  0x2b   : > { %793 = vmatpush.msra.mxu2 %v545_v28  ;;  %v4045_v29 = vld [vmem:[%s3977_s23 + $0x40] sm:$0xff]  ;;  %v4057_v31 = vld [vmem:[%s3977_s23 + $0x50] sm:$0xff]  ;;  %v4063_v32 = vld [vmem:[%s3977_s23 + $0x58] sm:$0xff] }
  0x2c   : > { %556 = vmatpush.msra.mxu0 %v3928_v5  ;;  %3530 = vmatpush.msra.mxu3 %v3928_v5  ;;  %v546_v33 = vld [vmem:[%s6097_s3 + $0x8] sm:$0xff]  ;;  %v547_v50 = vld [vmem:[%s6097_s3 + $0x10] sm:$0xff] }
  0x2d   : > { %3421 = vmatmul.msk.f32.vlgmr.msra.gmra.mxu2 %vm616_vm0, %v3985_v15  ;;  %680 = vmatpush.msra.mxu1 %v546_v33 }
  0x2e   : > { %557 = vmatpush.msra.mxu0 %v3933_v6  ;;  %3531 = vmatpush.msra.mxu3 %v3933_v6 }
  0x2f   : > { %1003 = vmatpush.msrb.mxu1 %v547_v50 }
  0x30   : > { %558 = vmatpush.msra.mxu0 %v3938_v7  ;;  %3532 = vmatpush.msra.mxu3 %v3938_v7 }
  0x32   : > { %559 = vmatpush.msra.mxu0 %v3943_v8  ;;  %3533 = vmatpush.msra.mxu3 %v3943_v8 }
  0x34   : > { %560 = vmatpush.msra.mxu0 %v3948_v9  ;;  %3534 = vmatpush.msra.mxu3 %v3948_v9 }
  0x35   : > { %3422 = vmatmul.msk.f32.gmra.mxu2 %vm616_vm0, %v3980_v14 }
  0x36   : > { %561 = vmatpush.msra.mxu0 %v3953_v10  ;;  %3535 = vmatpush.msra.mxu3 %v3953_v10 }
  0x38   : > { %562 = vmatpush.msra.mxu0 %v3958_v11  ;;  %3536 = vmatpush.msra.mxu3 %v3958_v11 }
  0x3a   : > { %563 = vmatpush.msra.mxu0 %v3963_v12  ;;  %3537 = vmatpush.msra.mxu3 %v3963_v12 }
  0x3c   : > { %564 = vmatpush.msra.mxu0 %v3968_v13  ;;  %3538 = vmatpush.msra.mxu3 %v3968_v13 }
  0x3d   : > { %3423 = vmatmul.msk.f32.gmra.mxu2 %vm616_vm0, %v3968_v13 }
  0x3e   : > { %565 = vmatpush.msra.mxu0 %v3980_v14  ;;  %3539 = vmatpush.msra.mxu3 %v3980_v14 }
  0x40   : > { %566 = vmatpush.msra.mxu0 %v3985_v15  ;;  %3540 = vmatpush.msra.mxu3 %v3985_v15 }
  0x41   : > { %567 = vmatmul.f32.vlgmr.msra.gmra.mxu0 %v3989_v16  ;;  %603 = vmatmul.f32.vlgmr.msra.gmra.mxu3 %v3993_v17 }
  0x45   : > { %3424 = vmatmul.msk.f32.gmra.mxu2 %vm616_vm0, %v3963_v12 }
  0x49   : > { %570 = vmatmul.f32.gmra.mxu0 %v4000_v18  ;;  %606 = vmatmul.f32.gmra.mxu3 %v4003_v19 }
  0x4d   : > { %3425 = vmatmul.msk.f32.gmra.mxu2 %vm616_vm0, %v3958_v11 }
  0x51   : > { %573 = vmatmul.f32.gmra.mxu0 %v4008_v20  ;;  %609 = vmatmul.f32.gmra.mxu3 %v4011_v21 }
  0x55   : > { %3426 = vmatmul.msk.f32.gmra.mxu2 %vm616_vm0, %v3953_v10 }
  0x59   : > { %576 = vmatmul.f32.gmra.mxu0 %v4016_v22  ;;  %612 = vmatmul.f32.gmra.mxu3 %v4019_v23 }
  0x5d   : > { %3427 = vmatmul.msk.f32.gmra.mxu2 %vm616_vm0, %v3948_v9 }
  0x61   : > { %579 = vmatmul.f32.gmra.mxu0 %v4024_v24 }
  0x65   : > { %3428 = vmatmul.msk.f32.gmra.mxu2 %vm616_vm0, %v3943_v8 }
  0x69   : > { %582 = vmatmul.f32.gmra.mxu0 %v4028_v25 }
  0x6d   : > { %3429 = vmatmul.msk.f32.gmra.mxu2 %vm616_vm0, %v3938_v7 }
  0x71   : > { %585 = vmatmul.f32.gmra.mxu0 %v4032_v26 }
  0x75   : > { %3430 = vmatmul.msk.f32.gmra.mxu2 %vm616_vm0, %v3933_v6 }
  0x79   : > { %588 = vmatmul.f32.gmra.mxu0 %v4036_v27 }
  0x7d   : > { %3431 = vmatmul.msk.f32.gmra.mxu2 %vm616_vm0, %v3928_v5 }
  0x81   : > { %591 = vmatmul.f32.gmra.mxu0 %v4045_v29 }
  0x85   : > { %3432 = vmatmul.msk.f32.gmra.mxu2 %vm616_vm0, %v3923_v4 }
  0x89   : > { %594 = vmatmul.f32.gmra.mxu0 %v4051_v30 }
  0x8d   : > { %3433 = vmatmul.msk.f32.gmra.mxu2 %vm616_vm0, %v3918_v3 }
  0x91   : > { %597 = vmatmul.f32.gmra.mxu0 %v4057_v31 }
  0x95   : > { %3434 = vmatmul.msk.f32.gmra.mxu2 %vm616_vm0, %v3913_v2 }
  0x99   : > { %600 = vmatmul.f32.gmra.mxu0 %v4063_v32 }
  0x9d   : > { %3435 = vmatmul.msk.f32.gmra.mxu2 %vm616_vm0, %v3908_v1 }
  0xa5   : > { %3436 = vmatmul.msk.f32.gmra.mxu2 %vm616_vm0, %v3905_v0 }
  0xbe   : > { %v4079_v34 = vpop.f32.mrf.mxu0 }
  0xbf   : > { %3405 = vmatmul.msk.f32.vlgmr.msra.gmra.mxu1 %vm616_vm0, %v4079_v34 }
  0xc4   : > { %v4085_v35 = vpop.f32.mrf.mxu3 }
  0xc6   : > { %v4087_v36 = vpop.f32.mrf.mxu0 }
  0xc7   : > { %3406 = vmatmul.msk.f32.gmra.mxu1 %vm616_vm0, %v4087_v36 }
  0xcc   : > { %v4093_v37 = vpop.f32.mrf.mxu3 }
  0xce   : > { %v4095_v38 = vpop.f32.mrf.mxu0 }
  0xcf   : > { %3407 = vmatmul.msk.f32.gmra.mxu1 %vm616_vm0, %v4095_v38 }
  0xd4   : > { %v4101_v39 = vpop.f32.mrf.mxu3 }
  0xd6   : > { %v4103_v40 = vpop.f32.mrf.mxu0 }
  0xd7   : > { %3408 = vmatmul.msk.f32.gmra.mxu1 %vm616_vm0, %v4103_v40 }
  0xdc   : > { %v4109_v41 = vpop.f32.mrf.mxu3 }
  0xdd   : > { %843 = vmatpush.msrb.mxu3 %v4109_v41 }
  0xde   : > { %v4112_v42 = vpop.f32.mrf.mxu0 }
  0xdf   : > { %3409 = vmatmul.msk.f32.gmra.mxu1 %vm616_vm0, %v4112_v42  ;;  %844 = vmatpush.msrb.mxu3 %v4101_v39 }
  0xe1   : > { %845 = vmatpush.msrb.mxu3 %v4093_v37 }
  0xe3   : > { %846 = vmatpush.msrb.mxu3 %v4085_v35 }
  0xe6   : > { %v4121_v43 = vpop.f32.mrf.mxu0 }
  0xe7   : > { %3410 = vmatmul.msk.f32.gmra.mxu1 %vm616_vm0, %v4121_v43 }
  0xee   : > { %v4127_v44 = vpop.f32.mrf.mxu0 }
  0xef   : > { %3411 = vmatmul.msk.f32.gmra.mxu1 %vm616_vm0, %v4127_v44 }
  0xf6   : > { %v4133_v45 = vpop.f32.mrf.mxu0 }
  0xf7   : > { %3412 = vmatmul.msk.f32.gmra.mxu1 %vm616_vm0, %v4133_v45 }
  0xfe   : > { %v4137_v46 = vpop.f32.mrf.mxu0 }
  0xff   : > { %3413 = vmatmul.msk.f32.gmra.mxu1 %vm616_vm0, %v4137_v46 }
 0x106   : > { %v4141_v47 = vpop.f32.mrf.mxu0 }
 0x107   : > { %3414 = vmatmul.msk.f32.gmra.mxu1 %vm616_vm0, %v4141_v47 }
 0x10e   : > { %v4145_v48 = vpop.f32.mrf.mxu0 }
 0x10f   : > { %3415 = vmatmul.msk.f32.gmra.mxu1 %vm616_vm0, %v4145_v48 }
 0x116   : > { %v4149_v49 = vpop.f32.mrf.mxu0 }
 0x117   : > { %3416 = vmatmul.msk.f32.gmra.mxu1 %vm616_vm0, %v4149_v49  ;;  %847 = vmatpush.msrb.mxu3 %v4149_v49 }
 0x119   : > { %848 = vmatpush.msrb.mxu3 %v4145_v48 }
 0x11b   : > { %849 = vmatpush.msrb.mxu3 %v4141_v47 }
 0x11d   : > { %850 = vmatpush.msrb.mxu3 %v4137_v46 }
 0x11f   : > { %3417 = vmatmul.msk.f32.gmra.mxu1 %vm616_vm0, %v4085_v35  ;;  %851 = vmatpush.msrb.mxu3 %v4133_v45 }
 0x121   : > { %852 = vmatpush.msrb.mxu3 %v4127_v44 }
 0x123   : > { %853 = vmatpush.msrb.mxu3 %v4121_v43 }
 0x125   : > { %854 = vmatpush.msrb.mxu3 %v4112_v42 }
 0x127   : > { %3418 = vmatmul.msk.f32.gmra.mxu1 %vm616_vm0, %v4093_v37  ;;  %855 = vmatpush.msrb.mxu3 %v4103_v40 }
 0x129   : > { %856 = vmatpush.msrb.mxu3 %v4095_v38 }
 0x12b   : > { %857 = vmatpush.msrb.mxu3 %v4087_v36 }
 0x12d   : > { %858 = vmatpush.msrb.mxu3 %v4079_v34 }
 0x12e   : > { %859 = vmatmul.f32.vlgmr.msrb.gmra.mxu3 %v3989_v16 }
 0x12f   : > { %3419 = vmatmul.msk.f32.gmra.mxu1 %vm616_vm0, %v4101_v39 }
 0x136   : > { %862 = vmatmul.f32.gmra.mxu3 %v4000_v18 }
 0x137   : > { %3420 = vmatmul.msk.f32.gmra.mxu1 %vm616_vm0, %v4109_v41 }
 0x13e   : > { %865 = vmatmul.f32.gmra.mxu3 %v4008_v20 }
 0x146   : > { %868 = vmatmul.f32.gmra.mxu3 %v4016_v22 }
 0x14e   : > { %871 = vmatmul.f32.gmra.mxu3 %v4024_v24 }
 0x156   : > { %874 = vmatmul.f32.gmra.mxu3 %v4028_v25 }
 0x15e   : > { %877 = vmatmul.f32.gmra.mxu3 %v4032_v26 }
 0x166   : > { %880 = vmatmul.f32.gmra.mxu3 %v4036_v27 }
 0x16e   : > { %883 = vmatmul.f32.gmra.mxu3 %v4045_v29 }
 0x176   : > { %886 = vmatmul.f32.gmra.mxu3 %v4051_v30 }
 0x17e   : > { %889 = vmatmul.f32.gmra.mxu3 %v4057_v31 }
 0x186   : > { %892 = vmatmul.f32.gmra.mxu3 %v4063_v32 }
 0x18e   : > { %895 = vmatmul.f32.gmra.mxu3 %v3993_v17 }
 0x196   : > { %898 = vmatmul.f32.gmra.mxu3 %v4003_v19 }
 0x19e   : > { %901 = vmatmul.f32.gmra.mxu3 %v4011_v21 }
 0x1a6   : > { %904 = vmatmul.f32.gmra.mxu3 %v4019_v23 }
 0x1b1   : > { %v860_v51 = vpop.f32.mrf.mxu3 }
 0x1b2   : > { %v908_v52 = vmul.f32 2.0, %v860_v51 }
 0x1b4   : > { %v4193_v53 = vsub.f32 %v908_v52, %v3985_v15 }
 0x1b6   : > { %3437 = vmatmul.msk.f32.vlgmr.msrb.gmra.mxu1 %vm616_vm0, %v4193_v53 }
 0x1b9   : > { %v863_v54 = vpop.f32.mrf.mxu3 }
 0x1ba   : > { %v909_v55 = vmul.f32 2.0, %v863_v54 }
 0x1bc   : > { %v4198_v56 = vsub.f32 %v909_v55, %v3980_v14 }
 0x1be   : > { %3438 = vmatmul.msk.f32.gmra.mxu1 %vm616_vm0, %v4198_v56 }
 0x1c1   : > { %v866_v57 = vpop.f32.mrf.mxu3 }
 0x1c2   : > { %v910_v58 = vmul.f32 2.0, %v866_v57 }
 0x1c4   : > { %v4203_v59 = vsub.f32 %v910_v58, %v3968_v13 }
 0x1c6   : > { %3439 = vmatmul.msk.f32.gmra.mxu1 %vm616_vm0, %v4203_v59 }
 0x1c9   : > { %v869_v60 = vpop.f32.mrf.mxu3 }
 0x1ca   : > { %v911_v61 = vmul.f32 2.0, %v869_v60 }
 0x1cc   : > { %v4208_v62 = vsub.f32 %v911_v61, %v3963_v12 }
 0x1ce   : > { %3440 = vmatmul.msk.f32.gmra.mxu1 %vm616_vm0, %v4208_v62 }
 0x1d1   : > { %v872_v63 = vpop.f32.mrf.mxu3 }
 0x1d2   : > { %v912_v14 = vmul.f32 2.0, %v872_v63 }
 0x1d4   : > { %v4213_v15 = vsub.f32 %v912_v14, %v3958_v11  ;;  %v4227_v11 = vpop.f32.mrf.mxu1 }
 0x1d5   : > { %6098 = vst [vmem:[#allocation5_spill] sm:$0xff] %v4227_v11 }
 0x1d6   : > { %3441 = vmatmul.msk.f32.gmra.mxu1 %vm616_vm0, %v4213_v15 }
 0x1d9   : > { %v875_v13 = vpop.f32.mrf.mxu3 }
 0x1da   : > { %v913_v28 = vmul.f32 2.0, %v875_v13 }
 0x1dc   : > { %v4218_v33 = vsub.f32 %v913_v28, %v3953_v10  ;;  %v4234_v57 = vpop.f32.mrf.mxu1 }
 0x1dd   : > { %6099 = vst [vmem:[#allocation6_spill] sm:$0xff] %v4234_v57 }
 0x1de   : > { %3442 = vmatmul.msk.f32.gmra.mxu1 %vm616_vm0, %v4218_v33 }
 0x1e1   : > { %v878_v12 = vpop.f32.mrf.mxu3 }
 0x1e2   : > { %v914_v50 = vmul.f32 2.0, %v878_v12 }
 0x1e4   : > { %v4223_v51 = vsub.f32 %v914_v50, %v3948_v9  ;;  %v4241_v63 = vpop.f32.mrf.mxu1 }
 0x1e5   : > { %6100 = vst [vmem:[#allocation7_spill] sm:$0xff] %v4241_v63  ;;  %v548_v63 = vld [vmem:[%s6097_s3 + $0x18] sm:$0xff] }
 0x1e6   : > { %3443 = vmatmul.msk.f32.gmra.mxu1 %vm616_vm0, %v4223_v51  ;;  %1229 = vmatpush.msrb.mxu0 %v548_v63 }
 0x1e9   : > { %v881_v52 = vpop.f32.mrf.mxu3 }
 0x1ea   : > { %v915_v54 = vmul.f32 2.0, %v881_v52 }
 0x1ec   : > { %v4230_v55 = vsub.f32 %v915_v54, %v3943_v8 }
 0x1ee   : > { %3444 = vmatmul.msk.f32.gmra.mxu1 %vm616_vm0, %v4230_v55 }
 0x1f1   : > { %v884_v10 = vpop.f32.mrf.mxu3 }
 0x1f2   : > { %v916_v58 = vmul.f32 2.0, %v884_v10 }
 0x1f4   : > { %v4237_v9 = vsub.f32 %v916_v58, %v3938_v7  ;;  %v4251_v7 = vpop.f32.mrf.mxu1 }
 0x1f5   : > { %6101 = vst [vmem:[#allocation8_spill] sm:$0xff] %v4251_v7 }
 0x1f6   : > { %3445 = vmatmul.msk.f32.gmra.mxu1 %vm616_vm0, %v4237_v9 }
 0x1f9   : > { %v887_v60 = vpop.f32.mrf.mxu3 }
 0x1fa   : > { %v917_v61 = vmul.f32 2.0, %v887_v60 }
 0x1fc   : > { %v4244_v8 = vsub.f32 %v917_v61, %v3933_v6  ;;  %v4260_v6 = vpop.f32.mrf.mxu1 }
 0x1fd   : > { %6102 = vst [vmem:[#allocation9_spill] sm:$0xff] %v4260_v6 }
 0x1fe   : > { %3446 = vmatmul.msk.f32.gmra.mxu1 %vm616_vm0, %v4244_v8 }
 0x201   : > { %v890_v14 = vpop.f32.mrf.mxu3 }
 0x202   : > { %v918_v13 = vmul.f32 2.0, %v890_v14 }
 0x204   : > { %v4249_v28 = vsub.f32 %v918_v13, %v3928_v5  ;;  %v4267_v60 = vpop.f32.mrf.mxu1 }
 0x205   : > { %6103 = vst [vmem:[#allocation10_spill] sm:$0xff] %v4267_v60 }
 0x206   : > { %3447 = vmatmul.msk.f32.gmra.mxu1 %vm616_vm0, %v4249_v28 }
 0x209   : > { %v893_v12 = vpop.f32.mrf.mxu3 }
 0x20a   : > { %v919_v50 = vmul.f32 2.0, %v893_v12 }
 0x20c   : > { %v4256_v52 = vsub.f32 %v919_v50, %v3923_v4  ;;  %v4274_v12 = vpop.f32.mrf.mxu1 }
 0x20d   : > { %6104 = vst [vmem:[#allocation11_spill] sm:$0xff] %v4274_v12 }
 0x20e   : > { %3448 = vmatmul.msk.f32.gmra.mxu1 %vm616_vm0, %v4256_v52 }
 0x211   : > { %v896_v54 = vpop.f32.mrf.mxu3 }
 0x212   : > { %v920_v10 = vmul.f32 2.0, %v896_v54 }
 0x214   : > { %v4263_v5 = vsub.f32 %v920_v10, %v3918_v3 }
 0x216   : > { %3449 = vmatmul.msk.f32.gmra.mxu1 %vm616_vm0, %v4263_v5 }
 0x219   : > { %v899_v58 = vpop.f32.mrf.mxu3 }
 0x21a   : > { %v921_v61 = vmul.f32 2.0, %v899_v58  ;;  %v4290_v58 = vpop.f32.mrf.mxu2 }
 0x21b   : > { %6106 = vst [vmem:[#allocation13_spill] sm:$0xff] %v4290_v58 }
 0x21c   : > { %v4270_v4 = vsub.f32 %v921_v61, %v3913_v2  ;;  %v4284_v2 = vpop.f32.mrf.mxu1 }
 0x21d   : > { %6105 = vst [vmem:[#allocation12_spill] sm:$0xff] %v4284_v2 }
 0x21e   : > { %3450 = vmatmul.msk.f32.gmra.mxu1 %vm616_vm0, %v4270_v4 }
 0x221   : > { %v902_v14 = vpop.f32.mrf.mxu3 }
 0x222   : > { %v922_v13 = vmul.f32 2.0, %v902_v14 }
 0x224   : > { %v4277_v3 = vsub.f32 %v922_v13, %v3908_v1 }
 0x226   : > { %3451 = vmatmul.msk.f32.gmra.mxu1 %vm616_vm0, %v4277_v3 }
 0x229   : > { %v905_v50 = vpop.f32.mrf.mxu3 }
 0x22a   : > { %v923_v54 = vmul.f32 2.0, %v905_v50 }
 0x22c   : > { %v4282_v10 = vsub.f32 %v923_v54, %v3905_v0  ;;  %v4297_v0 = vpop.f32.mrf.mxu2 }
 0x22d   : > { %6107 = vst [vmem:[#allocation14_spill] sm:$0xff] %v4297_v0 }
 0x22e   : > { %3452 = vmatmul.msk.f32.gmra.mxu1 %vm616_vm0, %v4282_v10  ;;  %1069 = vmatpush.msrb.mxu2 %v4282_v10 }
 0x230   : > { %1070 = vmatpush.msrb.mxu2 %v4277_v3 }
 0x232   : > { %1071 = vmatpush.msrb.mxu2 %v4270_v4 }
 0x234   : > { %1072 = vmatpush.msrb.mxu2 %v4263_v5  ;;  %v4304_v1 = vpop.f32.mrf.mxu2 }
 0x235   : > { %6108 = vst [vmem:[#allocation15_spill] sm:$0xff] %v4304_v1 }
 0x236   : > { %1073 = vmatpush.msrb.mxu2 %v4256_v52 }
 0x238   : > { %1074 = vmatpush.msrb.mxu2 %v4249_v28 }
 0x23a   : > { %1075 = vmatpush.msrb.mxu2 %v4244_v8 }
 0x23c   : > { %1076 = vmatpush.msrb.mxu2 %v4237_v9  ;;  %v4311_v61 = vpop.f32.mrf.mxu2 }
 0x23d   : > { %6109 = vst [vmem:[#allocation16_spill] sm:$0xff] %v4311_v61 }
 0x23e   : > { %1077 = vmatpush.msrb.mxu2 %v4230_v55 }
 0x240   : > { %1078 = vmatpush.msrb.mxu2 %v4223_v51 }
 0x242   : > { %1079 = vmatpush.msrb.mxu2 %v4218_v33 }
 0x244   : > { %1080 = vmatpush.msrb.mxu2 %v4213_v15  ;;  %v4314_v14 = vpop.f32.mrf.mxu2 }
 0x245   : > { %6110 = vst [vmem:[#allocation17_spill] sm:$0xff] %v4314_v14 }
 0x246   : > { %1081 = vmatpush.msrb.mxu2 %v4208_v62 }
 0x248   : > { %1082 = vmatpush.msrb.mxu2 %v4203_v59 }
 0x24a   : > { %1083 = vmatpush.msrb.mxu2 %v4198_v56 }
 0x24c   : > { %1084 = vmatpush.msrb.mxu2 %v4193_v53  ;;  %v4317_v13 = vpop.f32.mrf.mxu2 }
 0x24d   : > { %1085 = vmatmul.f32.vlgmr.msrb.gmra.mxu2 %v3989_v16  ;;  %6111 = vst [vmem:[#allocation18_spill] sm:$0xff] %v4317_v13 }
 0x254   : > { %v4321_v50 = vpop.f32.mrf.mxu2 }
 0x255   : > { %1088 = vmatmul.f32.gmra.mxu2 %v4000_v18  ;;  %6112 = vst [vmem:[#allocation19_spill] sm:$0xff] %v4321_v50 }
 0x25c   : > { %v4324_v54 = vpop.f32.mrf.mxu2 }
 0x25d   : > { %1091 = vmatmul.f32.gmra.mxu2 %v4008_v20  ;;  %6113 = vst [vmem:[#allocation20_spill] sm:$0xff] %v4324_v54 }
 0x264   : > { %v4327_v58 = vpop.f32.mrf.mxu2 }
 0x265   : > { %1094 = vmatmul.f32.gmra.mxu2 %v4016_v22  ;;  %6114 = vst [vmem:[#allocation21_spill] sm:$0xff] %v4327_v58 }
 0x26c   : > { %v4330_v11 = vpop.f32.mrf.mxu2 }
 0x26d   : > { %1097 = vmatmul.f32.gmra.mxu2 %v4024_v24  ;;  %6115 = vst [vmem:[#allocation22_spill] sm:$0xff] %v4330_v11 }
 0x274   : > { %v4334_v0 = vpop.f32.mrf.mxu2 }
 0x275   : > { %1100 = vmatmul.f32.gmra.mxu2 %v4028_v25  ;;  %6116 = vst [vmem:[#allocation23_spill] sm:$0xff] %v4334_v0 }
 0x27c   : > { %v4337_v57 = vpop.f32.mrf.mxu2 }
 0x27d   : > { %1103 = vmatmul.f32.gmra.mxu2 %v4032_v26 }
 0x284   : > { %v4340_v1 = vpop.f32.mrf.mxu2 }
 0x285   : > { %1106 = vmatmul.f32.gmra.mxu2 %v4036_v27 }
 0x28c   : > { %v4346_v61 = vpop.f32.mrf.mxu2 }
 0x28d   : > { %1109 = vmatmul.f32.gmra.mxu2 %v4045_v29 }
 0x294   : > { %v4350_v7 = vpop.f32.mrf.mxu2 }
 0x295   : > { %1112 = vmatmul.f32.gmra.mxu2 %v4051_v30 }
 0x29c   : > { %v4353_v14 = vpop.f32.mrf.mxu2 }
 0x29d   : > { %1115 = vmatmul.f32.gmra.mxu2 %v4057_v31 }
 0x2a5   : > { %1118 = vmatmul.f32.gmra.mxu2 %v4063_v32 }
 0x2ad   : > { %1121 = vmatmul.f32.gmra.mxu2 %v3993_v17 }
 0x2b5   : > { %1124 = vmatmul.f32.gmra.mxu2 %v4003_v19 }
 0x2bd   : > { %1127 = vmatmul.f32.gmra.mxu2 %v4011_v21 }
 0x2c5   : > { %1130 = vmatmul.f32.gmra.mxu2 %v4019_v23 }
 0x2d0   : > { %v1086_v6 = vpop.f32.mrf.mxu2 }
 0x2d1   : > { %v1134_v13 = vmul.f32 2.0, %v1086_v6 }
 0x2d3   : > { %v4356_v60 = vsub.f32 %v1134_v13, %v4079_v34 }
 0x2d5   : > { %3453 = vmatmul.msk.f32.vlgmr.msrb.gmra.mxu0 %vm616_vm0, %v4356_v60 }
 0x2d8   : > { %v1089_v50 = vpop.f32.mrf.mxu2 }
 0x2d9   : > { %v1135_v63 = vmul.f32 2.0, %v1089_v50 }
 0x2db   : > { %v4361_v12 = vsub.f32 %v1135_v63, %v4087_v36 }
 0x2dd   : > { %3454 = vmatmul.msk.f32.gmra.mxu0 %vm616_vm0, %v4361_v12 }
 0x2e0   : > { %v1092_v54 = vpop.f32.mrf.mxu2 }
 0x2e1   : > { %v1136_v2 = vmul.f32 2.0, %v1092_v54 }
 0x2e3   : > { %v4366_v58 = vsub.f32 %v1136_v2, %v4095_v38 }
 0x2e5   : > { %3455 = vmatmul.msk.f32.gmra.mxu0 %vm616_vm0, %v4366_v58 }
 0x2e8   : > { %v1095_v34 = vpop.f32.mrf.mxu2 }
 0x2e9   : > { %v1137_v6 = vmul.f32 2.0, %v1095_v34 }
 0x2eb   : > { %v1153_v13 = vsub.f32 %v1137_v6, %v4103_v40 }
 0x2ed   : > { %3456 = vmatmul.msk.f32.gmra.mxu0 %vm616_vm0, %v1153_v13 }
 0x2f0   : > { %v1098_v50 = vpop.f32.mrf.mxu2 }
 0x2f1   : > { %v1138_v36 = vmul.f32 2.0, %v1098_v50 }
 0x2f3   : > { %v1154_v63 = vsub.f32 %v1138_v36, %v4112_v42 }
 0x2f5   : > { %3457 = vmatmul.msk.f32.gmra.mxu0 %vm616_vm0, %v1154_v63 }
 0x2f8   : > { %v1101_v11 = vpop.f32.mrf.mxu2 }
 0x2f9   : > { %v1139_v54 = vmul.f32 2.0, %v1101_v11 }
 0x2fb   : > { %v1155_v38 = vsub.f32 %v1139_v54, %v4121_v43 }
 0x2fd   : > { %3458 = vmatmul.msk.f32.gmra.mxu0 %vm616_vm0, %v1155_v38 }
 0x300   : > { %v1104_v2 = vpop.f32.mrf.mxu2 }
 0x301   : > { %v1140_v0 = vmul.f32 2.0, %v1104_v2 }
 0x303   : > { %v1156_v34 = vsub.f32 %v1140_v0, %v4127_v44 }
 0x305   : > { %3459 = vmatmul.msk.f32.gmra.mxu0 %vm616_vm0, %v1156_v34 }
 0x308   : > { %v1107_v40 = vpop.f32.mrf.mxu2 }
 0x309   : > { %v1141_v6 = vmul.f32 2.0, %v1107_v40 }
 0x30b   : > { %v1157_v50 = vsub.f32 %v1141_v6, %v4133_v45 }
 0x30d   : > { %3460 = vmatmul.msk.f32.gmra.mxu0 %vm616_vm0, %v1157_v50 }
 0x310   : > { %v1110_v42 = vpop.f32.mrf.mxu2 }
 0x311   : > { %v1142_v36 = vmul.f32 2.0, %v1110_v42 }
 0x313   : > { %v1158_v11 = vsub.f32 %v1142_v36, %v4137_v46 }
 0x315   : > { %3461 = vmatmul.msk.f32.gmra.mxu0 %vm616_vm0, %v1158_v11 }
 0x318   : > { %v1113_v43 = vpop.f32.mrf.mxu2 }
 0x319   : > { %v1143_v54 = vmul.f32 2.0, %v1113_v43 }
 0x31b   : > { %v1159_v2 = vsub.f32 %v1143_v54, %v4141_v47 }
 0x31d   : > { %3462 = vmatmul.msk.f32.gmra.mxu0 %vm616_vm0, %v1159_v2 }
 0x320   : > { %v1116_v44 = vpop.f32.mrf.mxu2 }
 0x321   : > { %v1144_v0 = vmul.f32 2.0, %v1116_v44 }
 0x323   : > { %v1160_v40 = vsub.f32 %v1144_v0, %v4145_v48 }
 0x325   : > { %3463 = vmatmul.msk.f32.gmra.mxu0 %vm616_vm0, %v1160_v40 }
 0x328   : > { %v1119_v45 = vpop.f32.mrf.mxu2 }
 0x329   : > { %v1145_v6 = vmul.f32 2.0, %v1119_v45 }
 0x32b   : > { %v1161_v42 = vsub.f32 %v1145_v6, %v4149_v49 }
 0x32d   : > { %3464 = vmatmul.msk.f32.gmra.mxu0 %vm616_vm0, %v1161_v42 }
 0x330   : > { %v1122_v46 = vpop.f32.mrf.mxu2 }
 0x331   : > { %v1146_v36 = vmul.f32 2.0, %v1122_v46 }
 0x333   : > { %v1162_v43 = vsub.f32 %v1146_v36, %v4085_v35  ;;  %v4403_v35 = vpop.f32.mrf.mxu1 }
 0x335   : > { %3465 = vmatmul.msk.f32.gmra.mxu0 %vm616_vm0, %v1162_v43 }
 0x338   : > { %v1125_v47 = vpop.f32.mrf.mxu2 }
 0x339   : > { %v1147_v54 = vmul.f32 2.0, %v1125_v47 }
 0x33b   : > { %v1163_v44 = vsub.f32 %v1147_v54, %v4093_v37  ;;  %v4406_v37 = vpop.f32.mrf.mxu1 }
 0x33d   : > { %3466 = vmatmul.msk.f32.gmra.mxu0 %vm616_vm0, %v1163_v44 }
 0x340   : > { %v1128_v48 = vpop.f32.mrf.mxu2 }
 0x341   : > { %v1148_v0 = vmul.f32 2.0, %v1128_v48 }
 0x343   : > { %v1164_v45 = vsub.f32 %v1148_v0, %v4101_v39  ;;  %v4409_v39 = vpop.f32.mrf.mxu1 }
 0x345   : > { %3467 = vmatmul.msk.f32.gmra.mxu0 %vm616_vm0, %v1164_v45 }
 0x348   : > { %v1131_v49 = vpop.f32.mrf.mxu2 }
 0x349   : > { %v1149_v6 = vmul.f32 2.0, %v1131_v49 }
 0x34b   : > { %v1165_v46 = vsub.f32 %v1149_v6, %v4109_v41  ;;  %v4412_v41 = vpop.f32.mrf.mxu1 }
 0x34d   : > { %3468 = vmatmul.msk.f32.gmra.mxu0 %vm616_vm0, %v1165_v46  ;;  %1295 = vmatpush.msra.mxu3 %v1165_v46 }
 0x34f   : > { %1296 = vmatpush.msra.mxu3 %v1164_v45 }
 0x351   : > { %1297 = vmatpush.msra.mxu3 %v1163_v44 }
 0x353   : > { %1298 = vmatpush.msra.mxu3 %v1162_v43 }
 0x355   : > { %1299 = vmatpush.msra.mxu3 %v1161_v42 }
 0x357   : > { %1300 = vmatpush.msra.mxu3 %v1160_v40 }
 0x359   : > { %1301 = vmatpush.msra.mxu3 %v1159_v2 }
 0x35b   : > { %1302 = vmatpush.msra.mxu3 %v1158_v11 }
 0x35d   : > { %1303 = vmatpush.msra.mxu3 %v1157_v50 }
 0x35f   : > { %1304 = vmatpush.msra.mxu3 %v1156_v34 }
 0x361   : > { %1305 = vmatpush.msra.mxu3 %v1155_v38 }
 0x363   : > { %1306 = vmatpush.msra.mxu3 %v1154_v63 }
 0x365   : > { %1307 = vmatpush.msra.mxu3 %v1153_v13 }
 0x367   : > { %1308 = vmatpush.msra.mxu3 %v4366_v58 }
 0x369   : > { %1309 = vmatpush.msra.mxu3 %v4361_v12 }
 0x36b   : > { %1310 = vmatpush.msra.mxu3 %v4356_v60 }
 0x36c   : > { %1311 = vmatmul.f32.vlgmr.msra.gmra.mxu3 %v3989_v16  ;;  %v4416_v16 = vpop.f32.mrf.mxu1 }
 0x374   : > { %1314 = vmatmul.f32.gmra.mxu3 %v4000_v18  ;;  %v549_v18 = vld [vmem:[%s6097_s3 + $0x20] sm:$0xff]  ;;  %s3320_s3 = scalar_lea.hbm %s6025_s15, %s3520_s30  ;;  %s3719_s30 = scalar_lea.hbm %s6025_s15, 16 }
 0x375   : > { %1455 = vmatpush.msra.mxu1 %v549_v18 }
 0x37c   : > { %1317 = vmatmul.f32.gmra.mxu3 %v4008_v20  ;;  %v4422_v20 = vpop.f32.mrf.mxu1 }
 0x384   : > { %1320 = vmatmul.f32.gmra.mxu3 %v4016_v22  ;;  %v4425_v22 = vpop.f32.mrf.mxu1 }
 0x38c   : > { %1323 = vmatmul.f32.gmra.mxu3 %v4024_v24  ;;  %v4428_v24 = vpop.f32.mrf.mxu1 }
 0x394   : > { %1326 = vmatmul.f32.gmra.mxu3 %v4028_v25  ;;  %v4431_v25 = vpop.f32.mrf.mxu1 }
 0x395   : > { %6117 = vst [vmem:[#allocation24_spill] sm:$0xff] %v4431_v25 }
 0x39c   : > { %1329 = vmatmul.f32.gmra.mxu3 %v4032_v26  ;;  %v4435_v26 = vpop.f32.mrf.mxu1 }
 0x3a4   : > { %1332 = vmatmul.f32.gmra.mxu3 %v4036_v27  ;;  %v4438_v27 = vpop.f32.mrf.mxu1 }
 0x3ac   : > { %1335 = vmatmul.f32.gmra.mxu3 %v4045_v29 }
 0x3b4   : > { %1338 = vmatmul.f32.gmra.mxu3 %v4051_v30 }
 0x3bc   : > { %1341 = vmatmul.f32.gmra.mxu3 %v4057_v31  ;;  %v4440_v31 = vpop.f32.mrf.mxu1 }
 0x3c4   : > { %1344 = vmatmul.f32.gmra.mxu3 %v4063_v32  ;;  %v4445_v12 = vpop.f32.mrf.mxu1 }
 0x3cc   : > { %1347 = vmatmul.f32.gmra.mxu3 %v3993_v17  ;;  %v4450_v13 = vpop.f32.mrf.mxu1 }
 0x3d4   : > { %1350 = vmatmul.f32.gmra.mxu3 %v4003_v19  ;;  %v4454_v34 = vpop.f32.mrf.mxu1 }
 0x3dc   : > { %1353 = vmatmul.f32.gmra.mxu3 %v4011_v21  ;;  %v4458_v40 = vpop.f32.mrf.mxu1 }
 0x3e4   : > { %1356 = vmatmul.f32.gmra.mxu3 %v4019_v23  ;;  %v4463_v47 = vpop.f32.mrf.mxu1 }
 0x3ec   : > { %v4468_v48 = vpop.f32.mrf.mxu1 }
 0x3ef   : > { %v1312_v29 = vpop.f32.mrf.mxu3 }
 0x3f0   : > { %v1360_v30 = vmul.f32 2.0, %v1312_v29 }
 0x3f2   : > { %v1376_v32 = vsub.f32 %v1360_v30, %v4193_v53 }
 0x3f4   : > { %3469 = vmatmul.msk.f32.vlgmr.msra.gmra.mxu1 %vm616_vm0, %v1376_v32  ;;  %v4472_v49 = vpop.f32.mrf.mxu1 }
 0x3f7   : > { %v1315_v17 = vpop.f32.mrf.mxu3 }
 0x3f8   : > { %v1361_v60 = vmul.f32 2.0, %v1315_v17 }
 0x3fa   : > { %v1377_v19 = vsub.f32 %v1361_v60, %v4198_v56 }
 0x3fc   : > { %3470 = vmatmul.msk.f32.gmra.mxu1 %vm616_vm0, %v1377_v19  ;;  %v4476_v29 = vpop.f32.mrf.mxu1  ;;  %v4482_v19 = vpop.f32.mrf.mxu0 }
 0x3fd   : > { %6118 = vst [vmem:[#allocation25_spill] sm:$0xff] %v4482_v19 }
 0x3ff   : > { %v1318_v21 = vpop.f32.mrf.mxu3 }
 0x400   : > { %v1362_v23 = vmul.f32 2.0, %v1318_v21 }
 0x402   : > { %v1378_v58 = vsub.f32 %v1362_v23, %v4203_v59 }
 0x404   : > { %3471 = vmatmul.msk.f32.gmra.mxu1 %vm616_vm0, %v1378_v58  ;;  %v1041_v60 = vpop.f32.mrf.mxu1 }
 0x407   : > { %v1321_v63 = vpop.f32.mrf.mxu3 }
 0x408   : > { %v1363_v53 = vmul.f32 2.0, %v1321_v63 }
 0x40a   : > { %v1379_v38 = vsub.f32 %v1363_v53, %v4208_v62  ;;  %v4486_v53 = vpop.f32.mrf.mxu0 }
 0x40b   : > { %6119 = vst [vmem:[#allocation26_spill] sm:$0xff] %v4486_v53  ;;  %v829_v53 = vadd.f32 %v4337_v57, %v4412_v41  ;;  %v6127_v57 = vld [vmem:[#allocation22_spill] sm:$0xff] }
 0x40c   : > { %3472 = vmatmul.msk.f32.gmra.mxu1 %vm616_vm0, %v1379_v38  ;;  %v1044_v58 = vpop.f32.mrf.mxu1  ;;  %v823_v41 = vadd.f32 %v6127_v57, %v4406_v37  ;;  %v6130_v37 = vld [vmem:[#allocation12_spill] sm:$0xff] }
 0x40f   : > { %v1324_v56 = vpop.f32.mrf.mxu3 }
 0x410   : > { %v1364_v50 = vmul.f32 2.0, %v1324_v56 }
 0x412   : > { %v1380_v11 = vsub.f32 %v1364_v50, %v4213_v15 }
 0x414   : > { %3473 = vmatmul.msk.f32.gmra.mxu1 %vm616_vm0, %v1380_v11 }
 0x417   : > { %v1327_v2 = vpop.f32.mrf.mxu3 }
 0x418   : > { %v1365_v59 = vmul.f32 2.0, %v1327_v2  ;;  %v4491_v2 = vpop.f32.mrf.mxu0 }
 0x419   : > { %6120 = vst [vmem:[#allocation27_spill] sm:$0xff] %v4491_v2 }
 0x41a   : > { %v1381_v42 = vsub.f32 %v1365_v59, %v4218_v33 }
 0x41c   : > { %3474 = vmatmul.msk.f32.gmra.mxu1 %vm616_vm0, %v1381_v42 }
 0x41f   : > { %v1330_v36 = vpop.f32.mrf.mxu3 }
 0x420   : > { %v1366_v62 = vmul.f32 2.0, %v1330_v36 }
 0x422   : > { %v1382_v43 = vsub.f32 %v1366_v62, %v4223_v51  ;;  %v4496_v62 = vpop.f32.mrf.mxu0 }
 0x424   : > { %3475 = vmatmul.msk.f32.gmra.mxu1 %vm616_vm0, %v1382_v43 }
 0x427   : > { %v1333_v54 = vpop.f32.mrf.mxu3 }
 0x428   : > { %v1367_v15 = vmul.f32 2.0, %v1333_v54 }
 0x42a   : > { %v1383_v44 = vsub.f32 %v1367_v15, %v4230_v55  ;;  %v4500_v43 = vpop.f32.mrf.mxu0 }
 0x42c   : > { %3476 = vmatmul.msk.f32.gmra.mxu1 %vm616_vm0, %v1383_v44 }
 0x42f   : > { %v1336_v0 = vpop.f32.mrf.mxu3 }
 0x430   : > { %v1368_v33 = vmul.f32 2.0, %v1336_v0 }
 0x432   : > { %v1384_v45 = vsub.f32 %v1368_v33, %v4237_v9 }
 0x434   : > { %3477 = vmatmul.msk.f32.gmra.mxu1 %vm616_vm0, %v1384_v45 }
 0x437   : > { %v1339_v51 = vpop.f32.mrf.mxu3 }
 0x438   : > { %v1369_v6 = vmul.f32 2.0, %v1339_v51 }
 0x43a   : > { %v1385_v46 = vsub.f32 %v1369_v6, %v4244_v8 }
 0x43c   : > { %3478 = vmatmul.msk.f32.gmra.mxu1 %vm616_vm0, %v1385_v46 }
 0x43f   : > { %v1342_v18 = vpop.f32.mrf.mxu3 }
 0x440   : > { %v1370_v55 = vmul.f32 2.0, %v1342_v18 }
 0x442   : > { %v1386_v30 = vsub.f32 %v1370_v55, %v4249_v28 }
 0x444   : > { %3479 = vmatmul.msk.f32.gmra.mxu1 %vm616_vm0, %v1386_v30 }
 0x447   : > { %v1345_v32 = vpop.f32.mrf.mxu3 }
 0x448   : > { %v1371_v9 = vmul.f32 2.0, %v1345_v32 }
 0x44a   : > { %v1387_v17 = vsub.f32 %v1371_v9, %v4256_v52  ;;  %v1047_v52 = vpop.f32.mrf.mxu1 }
 0x44c   : > { %3480 = vmatmul.msk.f32.gmra.mxu1 %vm616_vm0, %v1387_v17 }
 0x44f   : > { %v1348_v8 = vpop.f32.mrf.mxu3 }
 0x450   : > { %v1372_v21 = vmul.f32 2.0, %v1348_v8 }
 0x452   : > { %v1388_v23 = vsub.f32 %v1372_v21, %v4263_v5  ;;  %v1050_v42 = vpop.f32.mrf.mxu1 }
 0x454   : > { %3481 = vmatmul.msk.f32.gmra.mxu1 %vm616_vm0, %v1388_v23 }
 0x457   : > { %v1351_v63 = vpop.f32.mrf.mxu3 }
 0x458   : > { %v1373_v28 = vmul.f32 2.0, %v1351_v63 }
 0x45a   : > { %v1389_v38 = vsub.f32 %v1373_v28, %v4270_v4 }
 0x45c   : > { %3482 = vmatmul.msk.f32.gmra.mxu1 %vm616_vm0, %v1389_v38 }
 0x45f   : > { %v1354_v56 = vpop.f32.mrf.mxu3 }
 0x460   : > { %v1374_v50 = vmul.f32 2.0, %v1354_v56 }
 0x462   : > { %v1390_v11 = vsub.f32 %v1374_v50, %v4277_v3  ;;  %v4504_v3 = vpop.f32.mrf.mxu0  ;;  %v838_v50 = vadd.f32 %v4350_v7, %v4425_v22 }
 0x464   : > { %3483 = vmatmul.msk.f32.gmra.mxu1 %vm616_vm0, %v1390_v11  ;;  %v835_v11 = vadd.f32 %v4346_v61, %v4422_v20  ;;  %v6125_v61 = vld [vmem:[#allocation23_spill] sm:$0xff] }
 0x465   : > { %v826_v20 = vadd.f32 %v6125_v61, %v4409_v39 }
 0x467   : > { %v1357_v5 = vpop.f32.mrf.mxu3 }
 0x468   : > { %v1375_v59 = vmul.f32 2.0, %v1357_v5  ;;  %v841_v5 = vadd.f32 %v4353_v14, %v4428_v24  ;;  %v1064_v14 = vadd.f32 %v4476_v29, %v829_v53  ;;  %v1062_v53 = vadd.f32 %v4468_v48, %v823_v41  ;;  %v6133_v48 = vld [vmem:[#allocation11_spill] sm:$0xff] }
 0x46a   : > { %v1391_v36 = vsub.f32 %v1375_v59, %v4282_v10  ;;  %v4510_v0 = vpop.f32.mrf.mxu0  ;;  %v1067_v59 = vadd.f32 %v1047_v52, %v838_v50  ;;  %v1068_v19 = vadd.f32 %v1050_v42, %v841_v5 }
 0x46c   : > { %3484 = vmatmul.msk.f32.gmra.mxu1 %vm616_vm0, %v1391_v36 }
 0x471   : > { %v4498_v4 = vpop.f32.mrf.mxu1 }
 0x472   : > { %6121 = vst [vmem:[#allocation28_spill] sm:$0xff] %v4498_v4  ;;  %v4514_v10 = vpop.f32.mrf.mxu0  ;;  %v832_v4 = vadd.f32 %v4340_v1, %v4416_v16  ;;  %v4538_v1 = vld [vmem:[%s6126_s4] ss:$0 sm:$0xff]  ;;  %s502_s4 = scalar_lea.vmem [#allocation2], %s3400_s17 }
 0x474   : > { %v1065_v25 = vadd.f32 %v1041_v60, %v832_v4  ;;  %v1063_v60 = vadd.f32 %v4472_v49, %v826_v20 }
 0x479   : > { %v4502_v54 = vpop.f32.mrf.mxu1 }
 0x47a   : > { %6122 = vst [vmem:[#allocation29_spill] sm:$0xff] %v4502_v54  ;;  %v1255_v51 = vpop.f32.mrf.mxu0  ;;  %v1066_v54 = vadd.f32 %v1044_v58, %v835_v11 }
 0x481   : > { %v4506_v15 = vpop.f32.mrf.mxu1 }
 0x482   : > { %6123 = vst [vmem:[#allocation30_spill] sm:$0xff] %v4506_v15  ;;  %v1258_v46 = vpop.f32.mrf.mxu0 }
 0x489   : > { %v4508_v44 = vpop.f32.mrf.mxu1 }
 0x48a   : > { %6124 = vst [vmem:[#allocation31_spill] sm:$0xff] %v4508_v44  ;;  %v1261_v30 = vpop.f32.mrf.mxu0 }
 0x48b   : > { %v1289_v4 = vadd.f32 %v1261_v30, %v1063_v60  ;;  %v6134_v30 = vld [vmem:[#allocation19_spill] sm:$0xff] }
 0x48c   : > { %v6142_v60 = vld [vmem:[#allocation15_spill] sm:$0xff] }
 0x491   : > { %v4512_v33 = vpop.f32.mrf.mxu1 }
 0x492   : > { %v1264_v9 = vpop.f32.mrf.mxu0 }
 0x499   : > { %v4516_v45 = vpop.f32.mrf.mxu1 }
 0x49a   : > { %v1267_v8 = vpop.f32.mrf.mxu0 }
 0x49b   : > { %v1291_v24 = vadd.f32 %v1267_v8, %v1065_v25  ;;  %v6128_v25 = vld [vmem:[#allocation21_spill] sm:$0xff]  ;;  %v1288_v8 = vadd.f32 %v1258_v46, %v1062_v53  ;;  %v6135_v46 = vld [vmem:[#allocation10_spill] sm:$0xff] }
 0x49c   : > { %v820_v29 = vadd.f32 %v6128_v25, %v4403_v35  ;;  %v6144_v25 = vld [vmem:[#allocation14_spill] sm:$0xff] }
 0x4a1   : > { %v4518_v6 = vpop.f32.mrf.mxu1 }
 0x4a2   : > { %v1270_v23 = vpop.f32.mrf.mxu0 }
 0x4a3   : > { %v1292_v44 = vadd.f32 %v1270_v23, %v1066_v54 }
 0x4a9   : > { %v4520_v18 = vpop.f32.mrf.mxu1 }
 0x4aa   : > { %v1273_v38 = vpop.f32.mrf.mxu0 }
 0x4ab   : > { %v1293_v15 = vadd.f32 %v1273_v38, %v1067_v59 }
 0x4b1   : > { %v1481_v55 = vpop.f32.mrf.mxu1 }
 0x4b2   : > { %v1276_v36 = vpop.f32.mrf.mxu0 }
 0x4b3   : > { %v1294_v7 = vadd.f32 %v1276_v36, %v1068_v19  ;;  %v1290_v19 = vadd.f32 %v1264_v9, %v1064_v14  ;;  %v1061_v9 = vadd.f32 %v4463_v47, %v820_v29 }
 0x4b5   : > { %v1287_v38 = vadd.f32 %v1255_v51, %v1061_v9  ;;  %v6137_v51 = vld [vmem:[#allocation9_spill] sm:$0xff] }
 0x4b7   : > { %v1513_v36 = vadd.f32 %v1481_v55, %v1287_v38  ;;  %v6139_v55 = vld [vmem:[#allocation8_spill] sm:$0xff] }
 0x4b9   : > { %v1484_v32 = vpop.f32.mrf.mxu1 }
 0x4c1   : > { %v1487_v17 = vpop.f32.mrf.mxu1 }
 0x4c2   : > { %v1515_v23 = vadd.f32 %v1487_v17, %v1289_v4  ;;  %v6136_v17 = vld [vmem:[#allocation18_spill] sm:$0xff] }
 0x4c3   : > { %v811_v11 = vadd.f32 %v6136_v17, %v6135_v46  ;;  %v6153_v46 = vld [vmem:[#allocation29_spill] sm:$0xff] }
 0x4c5   : > { %v1058_v61 = vadd.f32 %v4450_v13, %v811_v11  ;;  %v1532_v13 = vadd.f32 %v4538_v1, %v1513_v36 }
 0x4c7   : > { %v1284_v57 = vadd.f32 %v4504_v3, %v1058_v61 }
 0x4c9   : > { %v1490_v21 = vpop.f32.mrf.mxu1 }
 0x4ca   : > { %v1516_v54 = vadd.f32 %v1490_v21, %v1290_v19  ;;  %v814_v21 = vadd.f32 %v6134_v30, %v6133_v48  ;;  %v6150_v48 = vld [vmem:[#allocation26_spill] sm:$0xff] }
 0x4cc   : > { %v1535_v50 = vadd.f32 %v4538_v1, %v1516_v54  ;;  %v1059_v5 = vadd.f32 %v4454_v34, %v814_v21  ;;  %v6151_v21 = vld [vmem:[#allocation30_spill] sm:$0xff] }
 0x4ce   : > { %v1285_v20 = vadd.f32 %v4510_v0, %v1059_v5 }
 0x4d0   : > { %v1511_v41 = vadd.f32 %v4518_v6, %v1285_v20  ;;  %v6143_v6 = vld [vmem:[#allocation6_spill] sm:$0xff] }
 0x4d1   : > { %v1493_v63 = vpop.f32.mrf.mxu1  ;;  %v799_v29 = vadd.f32 %v6144_v25, %v6143_v6  ;;  %v4712_v6 = vld [vmem:[%s3977_s23 + $0x78] sm:$0xff] }
 0x4d2   : > { %v1517_v52 = vadd.f32 %v1493_v63, %v1291_v24  ;;  %v6140_v24 = vld [vmem:[#allocation16_spill] sm:$0xff]  ;;  %6161 = vst [vmem:[#allocation18_spill] sm:$0xff] %v4712_v6 }
 0x4d4   : > { %v1536_v63 = vadd.f32 %v4538_v1, %v1517_v52 }
 0x4d9   : > { %v1496_v28 = vpop.f32.mrf.mxu1 }
 0x4da   : > { %v1518_v16 = vadd.f32 %v1496_v28, %v1292_v44  ;;  %v6131_v44 = vld [vmem:[#allocation20_spill] sm:$0xff] }
 0x4db   : > { %v817_v49 = vadd.f32 %v6131_v44, %v6130_v37  ;;  %v1054_v44 = vadd.f32 %v4435_v26, %v799_v29 }
 0x4dd   : > { %v1060_v28 = vadd.f32 %v4458_v40, %v817_v49  ;;  %v4571_v40 = vmax.f32 %v1536_v63, 0.0  ;;  %v6147_v49 = vld [vmem:[#allocation27_spill] sm:$0xff]  ;;  %v1280_v30 = vadd.f32 %v6150_v48, %v1054_v44  ;;  %v1563_v48 = vld [vmem:[%s6162_s5 + $0x38] sm:$0xff] }
 0x4df   : > { %v1286_v59 = vadd.f32 %v4514_v10, %v1060_v28  ;;  %v4580_v10 = vmax.f32 %v1535_v50, 0.0  ;;  %v1506_v17 = vadd.f32 %v6153_v46, %v1280_v30  ;;  %v1562_v30 = vld [vmem:[%s6162_s5 + $0x30] sm:$0xff] }
 0x4e1   : > { %v1499_v56 = vpop.f32.mrf.mxu1  ;;  %v1512_v14 = vadd.f32 %v4520_v18, %v1286_v59  ;;  %v6141_v18 = vld [vmem:[#allocation7_spill] sm:$0xff]  ;;  %v6154_v59 = vld [vmem:[#allocation28_spill] sm:$0xff] }
 0x4e2   : > { %v1519_v22 = vadd.f32 %v1499_v56, %v1293_v15  ;;  %v1514_v56 = vadd.f32 %v1484_v32, %v1288_v8  ;;  %v6138_v32 = vld [vmem:[#allocation17_spill] sm:$0xff]  ;;  %v802_v19 = vadd.f32 %v6142_v60, %v6141_v18  ;;  %v6148_v8 = vld [vmem:[#allocation31_spill] sm:$0xff]  ;;  %v4688_v60 = vld [vmem:[%s3977_s23 + $0x48] sm:$0xff] }
 0x4e3   : > { %v4684_v18 = vld [vmem:[%s3977_s23 + $0x40] sm:$0xff]  ;;  %6155 = vst [vmem:[#allocation21_spill] sm:$0xff] %v4688_v60 }
 0x4e4   : > { %v1538_v39 = vadd.f32 %v4538_v1, %v1519_v22  ;;  %v808_v22 = vadd.f32 %v6138_v32, %v6137_v51  ;;  %v1533_v34 = vadd.f32 %v4538_v1, %v1514_v56  ;;  %v1055_v53 = vadd.f32 %v4438_v27, %v802_v19  ;;  %v6152_v56 = vld [vmem:[#allocation25_spill] sm:$0xff] }
 0x4e5   : > { %v1525_v32 = vadd.f32 %v4538_v1, %v1506_v17  ;;  %v4692_v19 = vld [vmem:[%s3977_s23 + $0x50] sm:$0xff]  ;;  %v1557_v17 = vld [vmem:[%s6162_s5 + $0x8] sm:$0xff] }
 0x4e6   : > { %v4556_v35 = vmax.f32 %v1538_v39, 0.0  ;;  %v4598_v3 = vmax.f32 %v1533_v34, 0.0  ;;  %v1281_v9 = vadd.f32 %v6147_v49, %v1055_v53  ;;  %6156 = vst [vmem:[#allocation12_spill] sm:$0xff] %v4692_v19  ;;  %v1569_v49 = vld [vmem:[%s6162_s5 + $0x68] sm:$0xff] }
 0x4e8   : > { %6132 = vst [vmem:[#allocation22_spill] sm:$0xff] %v4556_v35  ;;  %v1507_v28 = vadd.f32 %v6151_v21, %v1281_v9  ;;  %v1568_v9 = vld [vmem:[%s6162_s5 + $0x60] sm:$0xff] }
 0x4e9   : > { %v1502_v2 = vpop.f32.mrf.mxu1 }
 0x4ea   : > { %v1520_v58 = vadd.f32 %v1502_v2, %v1294_v7  ;;  %v1537_v2 = vadd.f32 %v4538_v1, %v1518_v16  ;;  %v1534_v7 = vadd.f32 %v4538_v1, %v1515_v23  ;;  %v805_v16 = vadd.f32 %v6140_v24, %v6139_v55  ;;  %v4652_v55 = vld [vmem:[%s3977_s23] sm:$0xff]  ;;  %v4660_v24 = vld [vmem:[%s3977_s23 + $0x10] sm:$0xff] }
 0x4ec   : > { %v1539_v42 = vadd.f32 %v4538_v1, %v1520_v58  ;;  %v4563_v47 = vmax.f32 %v1537_v2, 0.0  ;;  %v1057_v58 = vadd.f32 %v4445_v12, %v808_v22  ;;  %v4589_v0 = vmax.f32 %v1534_v7, 0.0  ;;  %v6146_v2 = vld [vmem:[#allocation13_spill] sm:$0xff] }
 0x4ed   : > { %v1056_v52 = vadd.f32 %v4440_v31, %v805_v16  ;;  %v1531_v12 = vadd.f32 %v4538_v1, %v1512_v14  ;;  %v1530_v31 = vadd.f32 %v4538_v1, %v1511_v41  ;;  %v1526_v7 = vadd.f32 %v4538_v1, %v1507_v28  ;;  %v4664_v16 = vld [vmem:[%s3977_s23 + $0x18] sm:$0xff]  ;;  %v4676_v41 = vld [vmem:[%s3977_s23 + $0x30] sm:$0xff]  ;;  %v1561_v28 = vld [vmem:[%s6162_s5 + $0x28] sm:$0xff] }
 0x4ee   : > { %v4549_v15 = vmax.f32 %v1539_v42, 0.0  ;;  %v1283_v39 = vadd.f32 %v4500_v43, %v1057_v58  ;;  %v1510_v42 = vadd.f32 %v4516_v45, %v1284_v57  ;;  %v4607_v43 = vmax.f32 %v1532_v13, 0.0  ;;  %v6145_v45 = vld [vmem:[#allocation5_spill] sm:$0xff]  ;;  %v4668_v58 = vld [vmem:[%s3977_s23 + $0x20] sm:$0xff]  ;;  %v4672_v57 = vld [vmem:[%s3977_s23 + $0x28] sm:$0xff] }
 0x4ef   : > { %v1282_v4 = vadd.f32 %v4496_v62, %v1056_v52  ;;  %v796_v37 = vadd.f32 %v6146_v2, %v6145_v45  ;;  %v4616_v62 = vmax.f32 %v1531_v12, 0.0  ;;  %v4623_v26 = vmax.f32 %v1530_v31, 0.0  ;;  %v4680_v13 = vld [vmem:[%s3977_s23 + $0x38] sm:$0xff]  ;;  %v4708_v12 = vld [vmem:[%s3977_s23 + $0x70] sm:$0xff] }
 0x4f0   : > { %6129 = vst [vmem:[#allocation23_spill] sm:$0xff] %v4549_v15  ;;  %1597 = vmatpush.msra.mxu2 %v4549_v15  ;;  %v1509_v54 = vadd.f32 %v4512_v33, %v1283_v39  ;;  %v1529_v27 = vadd.f32 %v4538_v1, %v1510_v42  ;;  %v6149_v33 = vld [vmem:[#allocation24_spill] sm:$0xff]  ;;  %v4642_v20 = vmax.f32 %v1526_v7, 0.0  ;;  %v4645_v14 = vmax.f32 %v1525_v32, 0.0  ;;  %v4696_v52 = vld [vmem:[%s3977_s23 + $0x58] sm:$0xff]  ;;  %v4700_v39 = vld [vmem:[%s3977_s23 + $0x60] sm:$0xff] }
 0x4f1   : > { %v1508_v23 = vadd.f32 %v6148_v8, %v1282_v4  ;;  %v1053_v63 = vadd.f32 %v6149_v33, %v796_v37  ;;  %6157 = vst [vmem:[#allocation20_spill] sm:$0xff] %v4696_v52  ;;  %v4704_v42 = vld [vmem:[%s3977_s23 + $0x68] sm:$0xff]  ;;  %v1571_v2 = vld [vmem:[%s6162_s5 + $0x78] sm:$0xff]  ;;  %v1570_v37 = vld [vmem:[%s6162_s5 + $0x70] sm:$0xff] }
 0x4f2   : > { %1598 = vmatpush.msra.mxu2 %v4556_v35  ;;  %v1528_v38 = vadd.f32 %v4538_v1, %v1509_v54  ;;  %v4629_v5 = vmax.f32 %v1529_v27, 0.0  ;;  %6158 = vst [vmem:[#allocation11_spill] sm:$0xff] %v4700_v39  ;;  %v1567_v8 = vld [vmem:[%s6162_s5 + $0x58] sm:$0xff]  ;;  %v1565_v33 = vld [vmem:[%s6162_s5 + $0x48] sm:$0xff] }
 0x4f3   : > { %v1279_v50 = vadd.f32 %v6152_v56, %v1053_v63  ;;  %v1527_v11 = vadd.f32 %v4538_v1, %v1508_v23  ;;  %6159 = vst [vmem:[#allocation19_spill] sm:$0xff] %v4704_v42  ;;  %v1566_v23 = vld [vmem:[%s6162_s5 + $0x50] sm:$0xff]  ;;  %v1564_v63 = vld [vmem:[%s6162_s5 + $0x40] sm:$0xff]  ;;  %v1559_v56 = vld [vmem:[%s6162_s5 + $0x18] sm:$0xff] }
 0x4f4   : > { %1599 = vmatpush.msra.mxu2 %v4563_v47  ;;  %v4634_v51 = vmax.f32 %v1528_v38, 0.0  ;;  %6160 = vst [vmem:[#allocation10_spill] sm:$0xff] %v4708_v12  ;;  %v1560_v38 = vld [vmem:[%s6162_s5 + $0x20] sm:$0xff] }
 0x4f5   : > { %v1505_v36 = vadd.f32 %v6154_v59, %v1279_v50  ;;  %v4638_v22 = vmax.f32 %v1527_v11, 0.0  ;;  %v1558_v50 = vld [vmem:[%s6162_s5 + $0x10] sm:$0xff]  ;;  %v1556_v11 = vld [vmem:[%s6162_s5] sm:$0xff] }
 0x4f6   : > { %1600 = vmatpush.msra.mxu2 %v4571_v40 }
 0x4f7   : > { %v1524_v61 = vadd.f32 %v4538_v1, %v1505_v36  ;;  %v4656_v1 = vld [vmem:[%s3977_s23 + $0x8] sm:$0xff] }
 0x4f8   : > { %1601 = vmatpush.msra.mxu2 %v4580_v10 }
 0x4f9   : > { %v4648_v34 = vmax.f32 %v1524_v61, 0.0 }
 0x4fa   : > { %1602 = vmatpush.msra.mxu2 %v4589_v0 }
 0x4fc   : > { %1603 = vmatpush.msra.mxu2 %v4598_v3 }
 0x4fe   : > { %1604 = vmatpush.msra.mxu2 %v4607_v43 }
 0x500   : > { %1605 = vmatpush.msra.mxu2 %v4616_v62 }
 0x502   : > { %1606 = vmatpush.msra.mxu2 %v4623_v26 }
 0x504   : > { %1607 = vmatpush.msra.mxu2 %v4629_v5 }
 0x506   : > { %1608 = vmatpush.msra.mxu2 %v4634_v51 }
 0x508   : > { %1609 = vmatpush.msra.mxu2 %v4638_v22 }
 0x50a   : > { %1610 = vmatpush.msra.mxu2 %v4642_v20 }
 0x50c   : > { %1611 = vmatpush.msra.mxu2 %v4645_v14 }
 0x50e   : > { %1612 = vmatpush.msra.mxu2 %v4648_v34 }
 0x50f   : > { %1613 = vmatmul.f32.vlgmr.msra.gmra.mxu2 %v4652_v55 }
 0x510   : > { %2165 = vmatpush.msrb.mxu2 %v1571_v2 }
 0x512   : > { %2166 = vmatpush.msrb.mxu2 %v1570_v37 }
 0x514   : > { %2167 = vmatpush.msrb.mxu2 %v1569_v49 }
 0x516   : > { %2168 = vmatpush.msrb.mxu2 %v1568_v9 }
 0x517   : > { %1616 = vmatmul.f32.gmra.mxu2 %v4656_v1 }
 0x518   : > { %2169 = vmatpush.msrb.mxu2 %v1567_v8 }
 0x51a   : > { %2170 = vmatpush.msrb.mxu2 %v1566_v23 }
 0x51c   : > { %2171 = vmatpush.msrb.mxu2 %v1565_v33 }
 0x51e   : > { %2172 = vmatpush.msrb.mxu2 %v1564_v63 }
 0x51f   : > { %1619 = vmatmul.f32.gmra.mxu2 %v4660_v24 }
 0x520   : > { %2173 = vmatpush.msrb.mxu2 %v1563_v48 }
 0x522   : > { %2174 = vmatpush.msrb.mxu2 %v1562_v30 }
 0x524   : > { %2175 = vmatpush.msrb.mxu2 %v1561_v28 }
 0x526   : > { %2176 = vmatpush.msrb.mxu2 %v1560_v38 }
 0x527   : > { %1622 = vmatmul.f32.gmra.mxu2 %v4664_v16 }
 0x528   : > { %2177 = vmatpush.msrb.mxu2 %v1559_v56 }
 0x52a   : > { %2178 = vmatpush.msrb.mxu2 %v1558_v50 }
 0x52c   : > { %2179 = vmatpush.msrb.mxu2 %v1557_v17 }
 0x52e   : > { %2180 = vmatpush.msrb.mxu2 %v1556_v11 }
 0x52f   : > { %1625 = vmatmul.f32.gmra.mxu2 %v4668_v58 }
 0x537   : > { %1628 = vmatmul.f32.gmra.mxu2 %v4672_v57 }
 0x53f   : > { %1631 = vmatmul.f32.gmra.mxu2 %v4676_v41 }
 0x547   : > { %1634 = vmatmul.f32.gmra.mxu2 %v4680_v13 }
 0x54f   : > { %1637 = vmatmul.f32.gmra.mxu2 %v4684_v18 }
 0x557   : > { %1640 = vmatmul.f32.gmra.mxu2 %v4688_v60 }
 0x55f   : > { %1643 = vmatmul.f32.gmra.mxu2 %v4692_v19 }
 0x567   : > { %1646 = vmatmul.f32.gmra.mxu2 %v4696_v52 }
 0x56f   : > { %1649 = vmatmul.f32.gmra.mxu2 %v4700_v39 }
 0x577   : > { %1652 = vmatmul.f32.gmra.mxu2 %v4704_v42 }
 0x57f   : > { %1655 = vmatmul.f32.gmra.mxu2 %v4708_v12 }
 0x587   : > { %1658 = vmatmul.f32.gmra.mxu2 %v4712_v6 }
 0x592   : > { %v4715_v25 = vpop.f32.mrf.mxu2 }
 0x593   : > { %1969 = vrot.lane.b32.xlu0 %v4715_v25, %s6026_s25 }
 0x59a   : > { %v4719_v29 = vpop.f32.mrf.mxu2 }
 0x5a2   : > { %v4721_v53 = vpop.f32.mrf.mxu2 }
 0x5aa   : > { %v4723_v4 = vpop.f32.mrf.mxu2 }
 0x5b2   : > { %v4725_v54 = vpop.f32.mrf.mxu2 }
 0x5ba   : > { %v4727_v31 = vpop.f32.mrf.mxu2 }
 0x5c2   : > { %v4729_v45 = vpop.f32.mrf.mxu2 }
 0x5ca   : > { %v4737_v44 = vpop.f32.mrf.mxu2 }
 0x5cb   : > { %6163 = vst [vmem:[#allocation9_spill] sm:$0xff] %v4737_v44 }
 0x5d2   : > { %v4751_v27 = vpop.f32.mrf.mxu2 }
 0x5d3   : > { %6164 = vst [vmem:[#allocation17_spill] sm:$0xff] %v4751_v27 }
 0x5da   : > { %v4765_v21 = vpop.f32.mrf.mxu2 }
 0x5db   : > { %6165 = vst [vmem:[#allocation8_spill] sm:$0xff] %v4765_v21 }
 0x5e2   : > { %v4779_v46 = vpop.f32.mrf.mxu2 }
 0x5e3   : > { %6166 = vst [vmem:[#allocation16_spill] sm:$0xff] %v4779_v46 }
 0x5ea   : > { %v4787_v59 = vpop.f32.mrf.mxu2 }
 0x5eb   : > { %6167 = vst [vmem:[#allocation7_spill] sm:$0xff] %v4787_v59 }
 0x5f2   : > { %v4789_v36 = vpop.f32.mrf.mxu2 }
 0x5f3   : > { %6168 = vst [vmem:[#allocation15_spill] sm:$0xff] %v4789_v36 }
 0x5fa   : > { %v4791_v7 = vpop.f32.mrf.mxu2 }
 0x5fb   : > { %6169 = vst [vmem:[#allocation6_spill] sm:$0xff] %v4791_v7 }
 0x602   : > { %v4793_v32 = vpop.f32.mrf.mxu2 }
 0x603   : > { %6170 = vst [vmem:[#allocation14_spill] sm:$0xff] %v4793_v32 }
 0x605   : > { %v1970_v61 = vpop.permute.xlu0 %1969 }
 0x606   : > { %v2082_v2 = vsel %vm2081_vm1, %v4648_v34, %v1970_v61 }
 0x607   : > { %2181 = vmatmul.f32.vlgmr.msrb.gmra.mxu2 %v2082_v2 }
 0x60a   : > { %v4797_v37 = vpop.f32.mrf.mxu2 }
 0x60b   : > { %6171 = vst [vmem:[#allocation5_spill] sm:$0xff] %v4797_v37  ;;  %1662 = vmatpush.msra.mxu0 %v4797_v37 }
 0x60d   : > { %1663 = vmatpush.msra.mxu0 %v4793_v32 }
 0x60f   : > { %1664 = vmatpush.msra.mxu0 %v4791_v7 }
 0x611   : > { %1665 = vmatpush.msra.mxu0 %v4789_v36 }
 0x613   : > { %1666 = vmatpush.msra.mxu0 %v4787_v59 }
 0x615   : > { %1667 = vmatpush.msra.mxu0 %v4779_v46 }
 0x617   : > { %1668 = vmatpush.msra.mxu0 %v4765_v21 }
 0x619   : > { %1669 = vmatpush.msra.mxu0 %v4751_v27 }
 0x61b   : > { %1670 = vmatpush.msra.mxu0 %v4737_v44 }
 0x61d   : > { %1671 = vmatpush.msra.mxu0 %v4729_v45 }
 0x61f   : > { %1672 = vmatpush.msra.mxu0 %v4727_v31 }
 0x621   : > { %1673 = vmatpush.msra.mxu0 %v4725_v54 }
 0x623   : > { %1674 = vmatpush.msra.mxu0 %v4723_v4 }
 0x625   : > { %1675 = vmatpush.msra.mxu0 %v4721_v53 }
 0x627   : > { %1676 = vmatpush.msra.mxu0 %v4719_v29 }
 0x629   : > { %1677 = vmatpush.msra.mxu0 %v4715_v25 }
 0x62a   : > { %1678 = vmatmul.f32.vlgmr.msra.gmra.mxu0 %v4652_v55 }
 0x632   : > { %1681 = vmatmul.f32.gmra.mxu0 %v4656_v1 }
 0x63a   : > { %1684 = vmatmul.f32.gmra.mxu0 %v4660_v24 }
 0x642   : > { %1687 = vmatmul.f32.gmra.mxu0 %v4664_v16 }
 0x64a   : > { %1690 = vmatmul.f32.gmra.mxu0 %v4668_v58 }
 0x652   : > { %1693 = vmatmul.f32.gmra.mxu0 %v4672_v57 }
 0x65a   : > { %1696 = vmatmul.f32.gmra.mxu0 %v4676_v41 }
 0x662   : > { %1699 = vmatmul.f32.gmra.mxu0 %v4680_v13 }
 0x66a   : > { %1702 = vmatmul.f32.gmra.mxu0 %v4684_v18 }
 0x672   : > { %1705 = vmatmul.f32.gmra.mxu0 %v4688_v60 }
 0x67a   : > { %1708 = vmatmul.f32.gmra.mxu0 %v4692_v19 }
 0x682   : > { %1711 = vmatmul.f32.gmra.mxu0 %v4696_v52 }
 0x68a   : > { %1714 = vmatmul.f32.gmra.mxu0 %v4700_v39 }
 0x692   : > { %1717 = vmatmul.f32.gmra.mxu0 %v4704_v42 }
 0x69a   : > { %1720 = vmatmul.f32.gmra.mxu0 %v4708_v12 }
 0x6a2   : > { %1723 = vmatmul.f32.gmra.mxu0 %v4712_v6 }
 0x6a7   : > { %v1679_v49 = vpop.f32.mrf.mxu0 }
 0x6af   : > { %v1682_v9 = vpop.f32.mrf.mxu0 }
 0x6b7   : > { %v1685_v8 = vpop.f32.mrf.mxu0 }
 0x6bf   : > { %v1688_v23 = vpop.f32.mrf.mxu0 }
 0x6c7   : > { %v1691_v33 = vpop.f32.mrf.mxu0 }
 0x6cf   : > { %v1694_v63 = vpop.f32.mrf.mxu0 }
 0x6d7   : > { %v1697_v48 = vpop.f32.mrf.mxu0 }
 0x6df   : > { %v1700_v30 = vpop.f32.mrf.mxu0 }
 0x6e7   : > { %v1703_v28 = vpop.f32.mrf.mxu0 }
 0x6ef   : > { %v1706_v38 = vpop.f32.mrf.mxu0 }
 0x6f7   : > { %v1709_v56 = vpop.f32.mrf.mxu0 }
 0x6f8   : > { %v1737_v44 = vmul.f32 2.0, %v1709_v56 }
 0x6ff   : > { %v1712_v50 = vpop.f32.mrf.mxu0 }
 0x700   : > { %v1738_v21 = vmul.f32 2.0, %v1712_v50  ;;  %v4851_v50 = vsub.f32 %v1737_v44, %v4589_v0  ;;  %v1731_v44 = vmul.f32 2.0, %v1691_v33 }
 0x707   : > { %v1715_v17 = vpop.f32.mrf.mxu0 }
 0x708   : > { %v1739_v59 = vmul.f32 2.0, %v1715_v17  ;;  %v4847_v17 = vsub.f32 %v1738_v21, %v4580_v10  ;;  %v1732_v21 = vmul.f32 2.0, %v1694_v63  ;;  %v4875_v63 = vsub.f32 %v1731_v44, %v4634_v51 }
 0x70f   : > { %v1718_v11 = vpop.f32.mrf.mxu0 }
 0x710   : > { %v1740_v7 = vmul.f32 2.0, %v1718_v11  ;;  %v1730_v11 = vmul.f32 2.0, %v1688_v23 }
 0x712   : > { %v4839_v27 = vsub.f32 %v1740_v7, %v4563_v47  ;;  %v1734_v7 = vmul.f32 2.0, %v1700_v30  ;;  %v4879_v33 = vsub.f32 %v1730_v11, %v4638_v22 }
 0x714   : > { %6174 = vst [vmem:[#allocation31_spill] sm:$0xff] %v4839_v27 }
 0x717   : > { %v1721_v61 = vpop.f32.mrf.mxu0 }
 0x718   : > { %v1741_v37 = vmul.f32 2.0, %v1721_v61  ;;  %v4843_v61 = vsub.f32 %v1739_v59, %v4571_v40  ;;  %v1733_v59 = vmul.f32 2.0, %v1697_v48  ;;  %v4871_v48 = vsub.f32 %v1732_v21, %v4629_v5 }
 0x71a   : > { %v4835_v46 = vsub.f32 %v1741_v37, %v4556_v35  ;;  %v1735_v37 = vmul.f32 2.0, %v1703_v28  ;;  %v4863_v28 = vsub.f32 %v1734_v7, %v4616_v62  ;;  %v4867_v30 = vsub.f32 %v1733_v59, %v4623_v26 }
 0x71c   : > { %6173 = vst [vmem:[#allocation27_spill] sm:$0xff] %v4835_v46 }
 0x71f   : > { %v1724_v2 = vpop.f32.mrf.mxu0 }
 0x720   : > { %v1742_v32 = vmul.f32 2.0, %v1724_v2  ;;  %v1729_v2 = vmul.f32 2.0, %v1685_v8 }
 0x722   : > { %v4832_v36 = vsub.f32 %v1742_v32, %v4549_v15  ;;  %v1736_v32 = vmul.f32 2.0, %v1706_v38  ;;  %v4859_v38 = vsub.f32 %v1735_v37, %v4607_v43  ;;  %v1727_v37 = vmul.f32 2.0, %v1679_v49 }
 0x723   : > { %v4883_v23 = vsub.f32 %v1729_v2, %v4642_v20 }
 0x724   : > { %6172 = vst [vmem:[#allocation13_spill] sm:$0xff] %v4832_v36  ;;  %1759 = vmatpush.msrb.mxu3 %v4832_v36  ;;  %v4855_v56 = vsub.f32 %v1736_v32, %v4598_v3  ;;  %v1728_v32 = vmul.f32 2.0, %v1682_v9  ;;  %v4891_v8 = vsub.f32 %v1727_v37, %v4648_v34 }
 0x726   : > { %1760 = vmatpush.msrb.mxu3 %v4835_v46  ;;  %v4887_v7 = vsub.f32 %v1728_v32, %v4645_v14 }
 0x728   : > { %1761 = vmatpush.msrb.mxu3 %v4839_v27  ;;  %v6184_v27 = vld [vmem:[#allocation5_spill] sm:$0xff] }
 0x72a   : > { %1762 = vmatpush.msrb.mxu3 %v4843_v61 }
 0x72c   : > { %1763 = vmatpush.msrb.mxu3 %v4847_v17 }
 0x72e   : > { %1764 = vmatpush.msrb.mxu3 %v4851_v50 }
 0x730   : > { %1765 = vmatpush.msrb.mxu3 %v4855_v56 }
 0x732   : > { %1766 = vmatpush.msrb.mxu3 %v4859_v38 }
 0x734   : > { %1767 = vmatpush.msrb.mxu3 %v4863_v28 }
 0x736   : > { %1768 = vmatpush.msrb.mxu3 %v4867_v30 }
 0x738   : > { %1769 = vmatpush.msrb.mxu3 %v4871_v48 }
 0x73a   : > { %1770 = vmatpush.msrb.mxu3 %v4875_v63 }
 0x73c   : > { %1771 = vmatpush.msrb.mxu3 %v4879_v33 }
 0x73e   : > { %1772 = vmatpush.msrb.mxu3 %v4883_v23 }
 0x740   : > { %1773 = vmatpush.msrb.mxu3 %v4887_v7 }
 0x742   : > { %1774 = vmatpush.msrb.mxu3 %v4891_v8 }
 0x743   : > { %1775 = vmatmul.f32.vlgmr.msrb.gmra.mxu3 %v4652_v55 }
 0x74b   : > { %1778 = vmatmul.f32.gmra.mxu3 %v4656_v1 }
 0x753   : > { %1781 = vmatmul.f32.gmra.mxu3 %v4660_v24 }
 0x75b   : > { %1784 = vmatmul.f32.gmra.mxu3 %v4664_v16 }
 0x763   : > { %1787 = vmatmul.f32.gmra.mxu3 %v4668_v58 }
 0x76b   : > { %1790 = vmatmul.f32.gmra.mxu3 %v4672_v57 }
 0x773   : > { %1793 = vmatmul.f32.gmra.mxu3 %v4676_v41 }
 0x77b   : > { %1796 = vmatmul.f32.gmra.mxu3 %v4680_v13 }
 0x783   : > { %1799 = vmatmul.f32.gmra.mxu3 %v4684_v18 }
 0x78b   : > { %1802 = vmatmul.f32.gmra.mxu3 %v4688_v60 }
 0x793   : > { %1805 = vmatmul.f32.gmra.mxu3 %v4692_v19 }
 0x79b   : > { %1808 = vmatmul.f32.gmra.mxu3 %v4696_v52 }
 0x7a3   : > { %1811 = vmatmul.f32.gmra.mxu3 %v4700_v39 }
 0x7ab   : > { %1814 = vmatmul.f32.gmra.mxu3 %v4704_v42 }
 0x7b3   : > { %1817 = vmatmul.f32.gmra.mxu3 %v4708_v12  ;;  %v6180_v12 = vld [vmem:[#allocation7_spill] sm:$0xff] }
 0x7bb   : > { %1820 = vmatmul.f32.gmra.mxu3 %v4712_v6  ;;  %v6179_v6 = vld [vmem:[#allocation16_spill] sm:$0xff] }
 0x7c6   : > { %v1776_v34 = vpop.f32.mrf.mxu3 }
 0x7c7   : > { %v1824_v49 = vmul.f32 2.0, %v1776_v34 }
 0x7c9   : > { %v4912_v9 = vsub.f32 %v1824_v49, %v4715_v25 }
 0x7cb   : > { %v3581_v59 = vpack.i.bf16 %v4912_v9, %v4719_v29 }
 0x7cd   : > { %3582 = vrot.lane.b32.xlu0 %v3581_v59, %s6175_s1 }
 0x7ce   : > { %v1779_v21 = vpop.f32.mrf.mxu3 }
 0x7cf   : > { %v1825_v44 = vmul.f32 2.0, %v1779_v21 }
 0x7d1   : > { %v4918_v11 = vsub.f32 %v1825_v44, %v4719_v29 }
 0x7d3   : > { %v3586_v2 = vpack.i.bf16 %v4918_v11, %v4721_v53 }
 0x7d5   : > { %3587 = vrot.lane.b32.xlu1 %v3586_v2, %s6175_s1 }
 0x7d6   : > { %v1782_v32 = vpop.f32.mrf.mxu3 }
 0x7d7   : > { %v1826_v37 = vmul.f32 2.0, %v1782_v32 }
 0x7d9   : > { %v4924_v25 = vsub.f32 %v1826_v37, %v4721_v53 }
 0x7db   : > { %v3591_v34 = vpack.i.bf16 %v4924_v25, %v4723_v4 }
 0x7dd   : > { %3592 = vrot.lane.b32.xlu1 %v3591_v34, %s6175_s1 }
 0x7de   : > { %v1785_v49 = vpop.f32.mrf.mxu3 }
 0x7df   : > { %v1827_v59 = vmul.f32 2.0, %v1785_v49 }
 0x7e1   : > { %v4930_v29 = vsub.f32 %v1827_v59, %v4723_v4 }
 0x7e3   : > { %v3596_v21 = vpack.i.bf16 %v4930_v29, %v4725_v54 }
 0x7e5   : > { %3597 = vrot.lane.b32.xlu2 %v3596_v21, %s6175_s1 }
 0x7e6   : > { %v1788_v44 = vpop.f32.mrf.mxu3 }
 0x7e7   : > { %v1828_v2 = vmul.f32 2.0, %v1788_v44  ;;  %v6176_v44 = vld [vmem:[#allocation9_spill] sm:$0xff] }
 0x7e9   : > { %v4936_v53 = vsub.f32 %v1828_v2, %v4725_v54 }
 0x7eb   : > { %v3601_v32 = vpack.i.bf16 %v4936_v53, %v4727_v31 }
 0x7ed   : > { %3602 = vrot.lane.b32.xlu2 %v3601_v32, %s6175_s1 }
 0x7ee   : > { %v1791_v37 = vpop.f32.mrf.mxu3 }
 0x7ef   : > { %v1829_v34 = vmul.f32 2.0, %v1791_v37 }
 0x7f1   : > { %v4942_v4 = vsub.f32 %v1829_v34, %v4727_v31  ;;  %v1587_v34 = vld [vmem:[%s6162_s5 + $0xf8] sm:$0xff] }
 0x7f2   : > { %2230 = vmatpush.msrb.mxu0 %v1587_v34  ;;  %v1583_v34 = vld [vmem:[%s6162_s5 + $0xd8] sm:$0xff] }
 0x7f3   : > { %v3606_v49 = vpack.i.bf16 %v4942_v4, %v4729_v45 }
 0x7f5   : > { %3607 = vrot.lane.b32.xlu0 %v3606_v49, %s6175_s1  ;;  %v6177_v49 = vld [vmem:[#allocation17_spill] sm:$0xff] }
 0x7f6   : > { %v1794_v59 = vpop.f32.mrf.mxu3 }
 0x7f7   : > { %v1830_v21 = vmul.f32 2.0, %v1794_v59 }
 0x7f9   : > { %v4948_v54 = vsub.f32 %v1830_v21, %v4729_v45  ;;  %v1586_v45 = vld [vmem:[%s6162_s5 + $0xf0] sm:$0xff] }
 0x7fa   : > { %2231 = vmatpush.msrb.mxu0 %v1586_v45 }
 0x7fb   : > { %v3611_v2 = vpack.i.bf16 %v4948_v54, %v6176_v44 }
 0x7fd   : > { %3612 = vrot.lane.b32.xlu1 %v3611_v2, %s6175_s1 }
 0x7fe   : > { %v1797_v32 = vpop.f32.mrf.mxu3 }
 0x7ff   : > { %v1831_v37 = vmul.f32 2.0, %v1797_v32 }
 0x801   : > { %v4954_v31 = vsub.f32 %v1831_v37, %v6176_v44  ;;  %v1585_v44 = vld [vmem:[%s6162_s5 + $0xe8] sm:$0xff]  ;;  %v1584_v37 = vld [vmem:[%s6162_s5 + $0xe0] sm:$0xff] }
 0x802   : > { %2232 = vmatpush.msrb.mxu0 %v1585_v44  ;;  %v1581_v44 = vld [vmem:[%s6162_s5 + $0xc8] sm:$0xff] }
 0x803   : > { %v3616_v59 = vpack.i.bf16 %v4954_v31, %v6177_v49 }
 0x804   : > { %2233 = vmatpush.msrb.mxu0 %v1584_v37 }
 0x805   : > { %3617 = vrot.lane.b32.xlu2 %v3616_v59, %s6175_s1  ;;  %v6178_v59 = vld [vmem:[#allocation8_spill] sm:$0xff] }
 0x806   : > { %v1800_v21 = vpop.f32.mrf.mxu3  ;;  %2234 = vmatpush.msrb.mxu0 %v1583_v34  ;;  %v1580_v34 = vld [vmem:[%s6162_s5 + $0xc0] sm:$0xff] }
 0x807   : > { %v1832_v2 = vmul.f32 2.0, %v1800_v21 }
 0x809   : > { %v4969_v32 = vsub.f32 %v1832_v2, %v6177_v49  ;;  %v1582_v49 = vld [vmem:[%s6162_s5 + $0xd0] sm:$0xff] }
 0x80a   : > { %2235 = vmatpush.msrb.mxu0 %v1582_v49 }
 0x80b   : > { %v3621_v45 = vpack.i.bf16 %v4969_v32, %v6178_v59 }
 0x80c   : > { %2236 = vmatpush.msrb.mxu0 %v1581_v44  ;;  %v1577_v44 = vld [vmem:[%s6162_s5 + $0xa8] sm:$0xff] }
 0x80d   : > { %3622 = vrot.lane.b32.xlu0 %v3621_v45, %s6175_s1  ;;  %v1579_v45 = vld [vmem:[%s6162_s5 + $0xb8] sm:$0xff] }
 0x80e   : > { %v1803_v21 = vpop.f32.mrf.mxu3  ;;  %2237 = vmatpush.msrb.mxu0 %v1580_v34 }
 0x80f   : > { %v1833_v2 = vmul.f32 2.0, %v1803_v21 }
 0x810   : > { %2238 = vmatpush.msrb.mxu0 %v1579_v45  ;;  %v1576_v45 = vld [vmem:[%s6162_s5 + $0xa0] sm:$0xff] }
 0x811   : > { %v4987_v37 = vsub.f32 %v1833_v2, %v6178_v59  ;;  %v1578_v59 = vld [vmem:[%s6162_s5 + $0xb0] sm:$0xff] }
 0x812   : > { %2239 = vmatpush.msrb.mxu0 %v1578_v59  ;;  %v1574_v59 = vld [vmem:[%s6162_s5 + $0x90] sm:$0xff] }
 0x813   : > { %v3626_v49 = vpack.i.bf16 %v4987_v37, %v6179_v6 }
 0x814   : > { %2240 = vmatpush.msrb.mxu0 %v1577_v44 }
 0x815   : > { %3627 = vrot.lane.b32.xlu1 %v3626_v49, %s6175_s1  ;;  %v1575_v49 = vld [vmem:[%s6162_s5 + $0x98] sm:$0xff] }
 0x816   : > { %v1806_v21 = vpop.f32.mrf.mxu3  ;;  %2241 = vmatpush.msrb.mxu0 %v1576_v45  ;;  %v1572_v45 = vld [vmem:[%s6162_s5 + $0x80] sm:$0xff] }
 0x817   : > { %v1834_v2 = vmul.f32 2.0, %v1806_v21 }
 0x818   : > { %2242 = vmatpush.msrb.mxu0 %v1575_v49 }
 0x819   : > { %v1850_v34 = vsub.f32 %v1834_v2, %v6179_v6  ;;  %v1573_v2 = vld [vmem:[%s6162_s5 + $0x88] sm:$0xff] }
 0x81a   : > { %2243 = vmatpush.msrb.mxu0 %v1574_v59 }
 0x81b   : > { %v3631_v42 = vpack.i.bf16 %v1850_v34, %v6180_v12 }
 0x81c   : > { %2244 = vmatpush.msrb.mxu0 %v1573_v2 }
 0x81d   : > { %3632 = vrot.lane.b32.xlu2 %v3631_v42, %s6175_s1  ;;  %v6181_v42 = vld [vmem:[#allocation15_spill] sm:$0xff] }
 0x81e   : > { %v1809_v21 = vpop.f32.mrf.mxu3  ;;  %2245 = vmatpush.msrb.mxu0 %v1572_v45 }
 0x81f   : > { %v1835_v6 = vmul.f32 2.0, %v1809_v21  ;;  %v6182_v21 = vld [vmem:[#allocation6_spill] sm:$0xff] }
 0x821   : > { %v1851_v44 = vsub.f32 %v1835_v6, %v6180_v12  ;;  %v6183_v6 = vld [vmem:[#allocation14_spill] sm:$0xff] }
 0x823   : > { %v3636_v49 = vpack.i.bf16 %v1851_v44, %v6181_v42 }
 0x825   : > { %3637 = vrot.lane.b32.xlu0 %v3636_v49, %s6175_s1 }
 0x826   : > { %v1812_v39 = vpop.f32.mrf.mxu3 }
 0x827   : > { %v1836_v36 = vmul.f32 2.0, %v1812_v39 }
 0x829   : > { %v1852_v59 = vsub.f32 %v1836_v36, %v6181_v42 }
 0x82b   : > { %v3641_v52 = vpack.i.bf16 %v1852_v59, %v6182_v21 }
 0x82d   : > { %3642 = vrot.lane.b32.xlu1 %v3641_v52, %s6175_s1 }
 0x82e   : > { %v1815_v2 = vpop.f32.mrf.mxu3 }
 0x82f   : > { %v1837_v19 = vmul.f32 2.0, %v1815_v2 }
 0x831   : > { %v1853_v12 = vsub.f32 %v1837_v19, %v6182_v21 }
 0x833   : > { %v3646_v46 = vpack.i.bf16 %v1853_v12, %v6183_v6 }
 0x835   : > { %3647 = vrot.lane.b32.xlu2 %v3646_v46, %s6175_s1 }
 0x836   : > { %v1818_v45 = vpop.f32.mrf.mxu3 }
 0x837   : > { %v1838_v15 = vmul.f32 2.0, %v1818_v45 }
 0x839   : > { %v1854_v49 = vsub.f32 %v1838_v15, %v6183_v6 }
 0x83b   : > { %v3651_v39 = vpack.i.bf16 %v1854_v49, %v6184_v27 }
 0x83d   : > { %3652 = vrot.lane.b32.xlu0 %v3651_v39, %s6175_s1 }
 0x83e   : > { %v1821_v36 = vpop.f32.mrf.mxu3 }
 0x83f   : > { %v1839_v42 = vmul.f32 2.0, %v1821_v36  ;;  %v3583_v60 = vpop.permute.xlu0 %3582 }
 0x840   : > { %v3585_v52 = vunpack.i.h.bf16 %v3583_v60  ;;  %v3584_v35 = vunpack.i.l.bf16 %v3583_v60 }
 0x841   : > { %v1855_v2 = vsub.f32 %v1839_v42, %v6184_v27 }
 0x842   : > { %v2083_v19 = vsel %vm2081_vm1, %v4645_v14, %v3584_v35  ;;  %v2098_v46 = vsel %vm2081_vm1, %v4891_v8, %v3585_v52 }
 0x843   : > { %2184 = vmatmul.f32.gmra.mxu2 %v2083_v19  ;;  %2246 = vmatmul.f32.vlgmr.msrb.gmra.mxu0 %v2098_v46 }
 0x844   : > { %2063 = vrot.lane.b32.xlu1 %v1855_v2, %s6175_s1  ;;  %1856 = vmatpush.msrb.mxu1 %v1855_v2 }
 0x846   : > { %1857 = vmatpush.msrb.mxu1 %v1854_v49  ;;  %v3598_v49 = vpop.permute.xlu2 %3597 }
 0x847   : > { %v3588_v15 = vpop.permute.xlu1 %3587 }
 0x848   : > { %v3590_v21 = vunpack.i.h.bf16 %v3588_v15  ;;  %v3589_v6 = vunpack.i.l.bf16 %v3588_v15  ;;  %1858 = vmatpush.msrb.mxu1 %v1853_v12 }
 0x84a   : > { %1859 = vmatpush.msrb.mxu1 %v1852_v59  ;;  %v2084_v60 = vsel %vm2081_vm1, %v4642_v20, %v3589_v6  ;;  %v2099_v35 = vsel %vm2081_vm1, %v4887_v7, %v3590_v21 }
 0x84b   : > { %2187 = vmatmul.f32.gmra.mxu2 %v2084_v60  ;;  %2249 = vmatmul.f32.gmra.mxu0 %v2099_v35 }
 0x84c   : > { %1860 = vmatpush.msrb.mxu1 %v1851_v44  ;;  %v3600_v44 = vunpack.i.h.bf16 %v3598_v49 }
 0x84e   : > { %1861 = vmatpush.msrb.mxu1 %v1850_v34  ;;  %v3599_v34 = vunpack.i.l.bf16 %v3598_v49 }
 0x84f   : > { %v3593_v14 = vpop.permute.xlu1 %3592 }
 0x850   : > { %v3595_v27 = vunpack.i.h.bf16 %v3593_v14  ;;  %v3594_v45 = vunpack.i.l.bf16 %v3593_v14  ;;  %1862 = vmatpush.msrb.mxu1 %v4987_v37  ;;  %v3603_v37 = vpop.permute.xlu2 %3602 }
 0x851   : > { %v3605_v12 = vunpack.i.h.bf16 %v3603_v37 }
 0x852   : > { %1863 = vmatpush.msrb.mxu1 %v4969_v32  ;;  %v2085_v59 = vsel %vm2081_vm1, %v4638_v22, %v3594_v45  ;;  %v2100_v20 = vsel %vm2081_vm1, %v4883_v23, %v3595_v27  ;;  %v2086_v32 = vsel %vm2081_vm1, %v4634_v51, %v3599_v34  ;;  %v2101_v22 = vsel %vm2081_vm1, %v4879_v33, %v3600_v44 }
 0x853   : > { %2190 = vmatmul.f32.gmra.mxu2 %v2085_v59  ;;  %2252 = vmatmul.f32.gmra.mxu0 %v2100_v20  ;;  %v2102_v51 = vsel %vm2081_vm1, %v4875_v63, %v3605_v12  ;;  %v6186_v12 = vld [vmem:[#allocation21_spill] sm:$0xff] }
 0x854   : > { %1864 = vmatpush.msrb.mxu1 %v4954_v31  ;;  %v3604_v31 = vunpack.i.l.bf16 %v3603_v37  ;;  %v6185_v37 = vld [vmem:[#allocation22_spill] sm:$0xff] }
 0x856   : > { %1865 = vmatpush.msrb.mxu1 %v4948_v54 }
 0x858   : > { %1866 = vmatpush.msrb.mxu1 %v4942_v4 }
 0x85a   : > { %1867 = vmatpush.msrb.mxu1 %v4936_v53  ;;  %v2087_v53 = vsel %vm2081_vm1, %v4629_v5, %v3604_v31 }
 0x85b   : > { %2193 = vmatmul.f32.gmra.mxu2 %v2086_v32  ;;  %2255 = vmatmul.f32.gmra.mxu0 %v2101_v22 }
 0x85c   : > { %1868 = vmatpush.msrb.mxu1 %v4930_v29 }
 0x85e   : > { %1869 = vmatpush.msrb.mxu1 %v4924_v25 }
 0x85f   : > { %v3618_v42 = vpop.permute.xlu2 %3617 }
 0x860   : > { %1870 = vmatpush.msrb.mxu1 %v4918_v11  ;;  %v3620_v52 = vunpack.i.h.bf16 %v3618_v42 }
 0x862   : > { %1871 = vmatpush.msrb.mxu1 %v4912_v9  ;;  %v2105_v2 = vsel %vm2081_vm1, %v4863_v28, %v3620_v52  ;;  %v1592_v52 = vld [vmem:[%s6162_s5 + $0x120] sm:$0xff] }
 0x863   : > { %1872 = vmatmul.f32.vlgmr.msrb.gmra.mxu1 %v4652_v55  ;;  %2196 = vmatmul.f32.gmra.mxu2 %v2087_v53 }
 0x864   : > { %2258 = vmatmul.f32.gmra.mxu0 %v2102_v51 }
 0x867   : > { %v3608_v4 = vpop.permute.xlu0 %3607 }
 0x868   : > { %v3610_v29 = vunpack.i.h.bf16 %v3608_v4  ;;  %v3609_v54 = vunpack.i.l.bf16 %v3608_v4 }
 0x86a   : > { %v2088_v25 = vsel %vm2081_vm1, %v4623_v26, %v3609_v54  ;;  %v2103_v11 = vsel %vm2081_vm1, %v4871_v48, %v3610_v29  ;;  %v3619_v26 = vunpack.i.l.bf16 %v3618_v42  ;;  %v6188_v29 = vld [vmem:[#allocation23_spill] sm:$0xff]  ;;  %v6192_v42 = vld [vmem:[#allocation13_spill] sm:$0xff] }
 0x86b   : > { %1875 = vmatmul.f32.gmra.mxu1 %v4656_v1  ;;  %2199 = vmatmul.f32.gmra.mxu2 %v2088_v25  ;;  %v6189_v25 = vld [vmem:[#allocation27_spill] sm:$0xff] }
 0x86c   : > { %2261 = vmatmul.f32.gmra.mxu0 %v2103_v11  ;;  %v2090_v1 = vsel %vm2081_vm1, %v4607_v43, %v3619_v26 }
 0x86f   : > { %v3613_v5 = vpop.permute.xlu1 %3612 }
 0x870   : > { %v3615_v55 = vunpack.i.h.bf16 %v3613_v5  ;;  %v3614_v9 = vunpack.i.l.bf16 %v3613_v5  ;;  %v6190_v5 = vld [vmem:[#allocation12_spill] sm:$0xff] }
 0x872   : > { %v2089_v39 = vsel %vm2081_vm1, %v4616_v62, %v3614_v9  ;;  %v2104_v36 = vsel %vm2081_vm1, %v4867_v30, %v3615_v55  ;;  %v1594_v55 = vld [vmem:[%s6162_s5 + $0x130] sm:$0xff] }
 0x873   : > { %1878 = vmatmul.f32.gmra.mxu1 %v4660_v24  ;;  %2202 = vmatmul.f32.gmra.mxu2 %v2089_v39  ;;  %v1593_v39 = vld [vmem:[%s6162_s5 + $0x128] sm:$0xff] }
 0x874   : > { %2264 = vmatmul.f32.gmra.mxu0 %v2104_v36  ;;  %v6191_v36 = vld [vmem:[#allocation20_spill] sm:$0xff] }
 0x877   : > { %v3633_v35 = vpop.permute.xlu2 %3632 }
 0x878   : > { %v3635_v14 = vunpack.i.h.bf16 %v3633_v35 }
 0x87a   : > { %v2108_v27 = vsel %vm2081_vm1, %v4851_v50, %v3635_v14 }
 0x87b   : > { %1881 = vmatmul.f32.gmra.mxu1 %v4664_v16  ;;  %2205 = vmatmul.f32.gmra.mxu2 %v2090_v1  ;;  %v1591_v1 = vld [vmem:[%s6162_s5 + $0x118] sm:$0xff] }
 0x87c   : > { %2267 = vmatmul.f32.gmra.mxu0 %v2105_v2  ;;  %v1590_v2 = vld [vmem:[%s6162_s5 + $0x110] sm:$0xff] }
 0x87f   : > { %v3623_v62 = vpop.permute.xlu0 %3622 }
 0x880   : > { %v3625_v19 = vunpack.i.h.bf16 %v3623_v62  ;;  %v3624_v46 = vunpack.i.l.bf16 %v3623_v62  ;;  %v1589_v62 = vld [vmem:[%s6162_s5 + $0x108] sm:$0xff] }
 0x882   : > { %v2091_v24 = vsel %vm2081_vm1, %v4598_v3, %v3624_v46  ;;  %v2106_v15 = vsel %vm2081_vm1, %v4859_v38, %v3625_v19  ;;  %v3634_v3 = vunpack.i.l.bf16 %v3633_v35  ;;  %v6193_v19 = vld [vmem:[#allocation11_spill] sm:$0xff] }
 0x883   : > { %1884 = vmatmul.f32.gmra.mxu1 %v4668_v58  ;;  %2208 = vmatmul.f32.gmra.mxu2 %v2091_v24  ;;  %v1588_v46 = vld [vmem:[%s6162_s5 + $0x100] sm:$0xff] }
 0x884   : > { %2270 = vmatmul.f32.gmra.mxu0 %v2106_v15  ;;  %v2093_v58 = vsel %vm2081_vm1, %v4580_v10, %v3634_v3  ;;  %v6194_v24 = vld [vmem:[#allocation19_spill] sm:$0xff]  ;;  %v6195_v15 = vld [vmem:[#allocation10_spill] sm:$0xff] }
 0x887   : > { %v3628_v43 = vpop.permute.xlu1 %3627 }
 0x888   : > { %v3630_v16 = vunpack.i.h.bf16 %v3628_v43  ;;  %v3629_v21 = vunpack.i.l.bf16 %v3628_v43  ;;  %v6196_v43 = vld [vmem:[#allocation18_spill] sm:$0xff] }
 0x88a   : > { %v2092_v6 = vsel %vm2081_vm1, %v4589_v0, %v3629_v21  ;;  %v2107_v60 = vsel %vm2081_vm1, %v4855_v56, %v3630_v16 }
 0x88b   : > { %1887 = vmatmul.f32.gmra.mxu1 %v4672_v57  ;;  %2211 = vmatmul.f32.gmra.mxu2 %v2092_v6 }
 0x88c   : > { %2273 = vmatmul.f32.gmra.mxu0 %v2107_v60 }
 0x88f   : > { %v3648_v32 = vpop.permute.xlu2 %3647 }
 0x890   : > { %v3650_v22 = vunpack.i.h.bf16 %v3648_v32 }
 0x893   : > { %1890 = vmatmul.f32.gmra.mxu1 %v4676_v41  ;;  %2214 = vmatmul.f32.gmra.mxu2 %v2093_v58 }
 0x894   : > { %2276 = vmatmul.f32.gmra.mxu0 %v2108_v27 }
 0x897   : > { %v3638_v0 = vpop.permute.xlu0 %3637 }
 0x898   : > { %v3640_v45 = vunpack.i.h.bf16 %v3638_v0  ;;  %v3639_v49 = vunpack.i.l.bf16 %v3638_v0 }
 0x89a   : > { %v2094_v57 = vsel %vm2081_vm1, %v4571_v40, %v3639_v49  ;;  %v2109_v59 = vsel %vm2081_vm1, %v4847_v17, %v3640_v45  ;;  %v1595_v40 = vld [vmem:[%s6162_s5 + $0x138] sm:$0xff] }
 0x89b   : > { %1893 = vmatmul.f32.gmra.mxu1 %v4680_v13  ;;  %2217 = vmatmul.f32.gmra.mxu2 %v2094_v57  ;;  %v3649_v13 = vunpack.i.l.bf16 %v3648_v32 }
 0x89c   : > { %2279 = vmatmul.f32.gmra.mxu0 %v2109_v59  ;;  %2303 = vmatpush.msra.mxu3 %v1595_v40 }
 0x89d   : > { %v2096_v31 = vsel %vm2081_vm1, %v6185_v37, %v3649_v13 }
 0x89e   : > { %2304 = vmatpush.msra.mxu3 %v1594_v55 }
 0x89f   : > { %v3643_v10 = vpop.permute.xlu1 %3642 }
 0x8a0   : > { %v3645_v41 = vunpack.i.h.bf16 %v3643_v10  ;;  %v3644_v20 = vunpack.i.l.bf16 %v3643_v10  ;;  %2305 = vmatpush.msra.mxu3 %v1593_v39 }
 0x8a2   : > { %v2095_v44 = vsel %vm2081_vm1, %v4563_v47, %v3644_v20  ;;  %v2110_v34 = vsel %vm2081_vm1, %v4843_v61, %v3645_v41  ;;  %v6187_v47 = vld [vmem:[#allocation31_spill] sm:$0xff]  ;;  %2306 = vmatpush.msra.mxu3 %v1592_v52 }
 0x8a3   : > { %1896 = vmatmul.f32.gmra.mxu1 %v4684_v18  ;;  %2220 = vmatmul.f32.gmra.mxu2 %v2095_v44  ;;  %v2111_v53 = vsel %vm2081_vm1, %v6187_v47, %v3650_v22 }
 0x8a4   : > { %2282 = vmatmul.f32.gmra.mxu0 %v2110_v34  ;;  %2307 = vmatpush.msra.mxu3 %v1591_v1 }
 0x8a6   : > { %2308 = vmatpush.msra.mxu3 %v1590_v2 }
 0x8a8   : > { %2309 = vmatpush.msra.mxu3 %v1589_v62 }
 0x8aa   : > { %2310 = vmatpush.msra.mxu3 %v1588_v46 }
 0x8ab   : > { %1899 = vmatmul.f32.gmra.mxu1 %v6186_v12  ;;  %2223 = vmatmul.f32.gmra.mxu2 %v2096_v31 }
 0x8ac   : > { %2285 = vmatmul.f32.gmra.mxu0 %v2111_v53 }
 0x8af   : > { %v3653_v18 = vpop.permute.xlu0 %3652 }
 0x8b0   : > { %v3655_v51 = vunpack.i.h.bf16 %v3653_v18  ;;  %v3654_v4 = vunpack.i.l.bf16 %v3653_v18 }
 0x8b2   : > { %v2097_v54 = vsel %vm2081_vm1, %v6188_v29, %v3654_v4  ;;  %v2112_v11 = vsel %vm2081_vm1, %v6189_v25, %v3655_v51  ;;  %v5173_v29 = vpop.f32.mrf.mxu2 }
 0x8b3   : > { %1902 = vmatmul.f32.gmra.mxu1 %v6190_v5  ;;  %2226 = vmatmul.f32.gmra.mxu2 %v2097_v54 }
 0x8b4   : > { %2288 = vmatmul.f32.gmra.mxu0 %v2112_v11 }
 0x8b6   : > { %v2064_v9 = vpop.permute.xlu1 %2063 }
 0x8b7   : > { %v2113_v26 = vsel %vm2081_vm1, %v6192_v42, %v2064_v9 }
 0x8bb   : > { %1905 = vmatmul.f32.gmra.mxu1 %v6191_v36 }
 0x8bc   : > { %2291 = vmatmul.f32.gmra.mxu0 %v2113_v26 }
 0x8c3   : > { %1908 = vmatmul.f32.gmra.mxu1 %v6193_v19 }
 0x8c6   : > { %v5179_v5 = vpop.f32.mrf.mxu2 }
 0x8cb   : > { %1911 = vmatmul.f32.gmra.mxu1 %v6194_v24 }
 0x8ce   : > { %v5186_v39 = vpop.f32.mrf.mxu2 }
 0x8d3   : > { %1914 = vmatmul.f32.gmra.mxu1 %v6195_v15 }
 0x8d6   : > { %v5192_v1 = vpop.f32.mrf.mxu2 }
 0x8db   : > { %1917 = vmatmul.f32.gmra.mxu1 %v6196_v43 }
 0x8de   : > { %v5198_v19 = vpop.f32.mrf.mxu2 }
 0x8e0   : > { %v1873_v16 = vpop.f32.mrf.mxu1 }
 0x8e1   : > { %v1921_v21 = vmul.f32 2.0, %v1873_v16 }
 0x8e3   : > { %v1937_v6 = vsub.f32 %v1921_v21, %v4891_v8 }
 0x8e5   : > { %3485 = vmatmul.msk.f32.vlgmr.msra.gmra.mxu3 %vm2081_vm1, %v1937_v6 }
 0x8e6   : > { %v5204_v24 = vpop.f32.mrf.mxu2 }
 0x8e8   : > { %v1876_v60 = vpop.f32.mrf.mxu1 }
 0x8e9   : > { %v1922_v35 = vmul.f32 2.0, %v1876_v60 }
 0x8eb   : > { %v1938_v3 = vsub.f32 %v1922_v35, %v4887_v7 }
 0x8ed   : > { %3486 = vmatmul.msk.f32.gmra.mxu3 %vm2081_vm1, %v1938_v3 }
 0x8f0   : > { %v1879_v14 = vpop.f32.mrf.mxu1 }
 0x8f1   : > { %v1923_v58 = vmul.f32 2.0, %v1879_v14 }
 0x8f3   : > { %v1939_v27 = vsub.f32 %v1923_v58, %v4883_v23 }
 0x8f5   : > { %3487 = vmatmul.msk.f32.gmra.mxu3 %vm2081_vm1, %v1939_v27 }
 0x8f8   : > { %v1882_v0 = vpop.f32.mrf.mxu1 }
 0x8f9   : > { %v1924_v45 = vmul.f32 2.0, %v1882_v0 }
 0x8fb   : > { %v1940_v49 = vsub.f32 %v1924_v45, %v4879_v33 }
 0x8fd   : > { %3488 = vmatmul.msk.f32.gmra.mxu3 %vm2081_vm1, %v1940_v49 }
 0x900   : > { %v1885_v8 = vpop.f32.mrf.mxu1 }
 0x901   : > { %v1925_v57 = vmul.f32 2.0, %v1885_v8 }
 0x903   : > { %v1941_v59 = vsub.f32 %v1925_v57, %v4875_v63 }
 0x905   : > { %3489 = vmatmul.msk.f32.gmra.mxu3 %vm2081_vm1, %v1941_v59 }
 0x908   : > { %v1888_v7 = vpop.f32.mrf.mxu1 }
 0x909   : > { %v1926_v10 = vmul.f32 2.0, %v1888_v7 }
 0x90b   : > { %v1942_v41 = vsub.f32 %v1926_v10, %v4871_v48 }
 0x90d   : > { %3490 = vmatmul.msk.f32.gmra.mxu3 %vm2081_vm1, %v1942_v41 }
 0x910   : > { %v1891_v23 = vpop.f32.mrf.mxu1 }
 0x911   : > { %v1927_v20 = vmul.f32 2.0, %v1891_v23 }
 0x913   : > { %v1943_v44 = vsub.f32 %v1927_v20, %v4867_v30 }
 0x915   : > { %3491 = vmatmul.msk.f32.gmra.mxu3 %vm2081_vm1, %v1943_v44 }
 0x918   : > { %v1894_v33 = vpop.f32.mrf.mxu1 }
 0x919   : > { %v1928_v34 = vmul.f32 2.0, %v1894_v33 }
 0x91b   : > { %v1944_v32 = vsub.f32 %v1928_v34, %v4863_v28 }
 0x91d   : > { %3492 = vmatmul.msk.f32.gmra.mxu3 %vm2081_vm1, %v1944_v32 }
 0x920   : > { %v1897_v63 = vpop.f32.mrf.mxu1 }
 0x921   : > { %v1929_v40 = vmul.f32 2.0, %v1897_v63 }
 0x923   : > { %v1945_v13 = vsub.f32 %v1929_v40, %v4859_v38 }
 0x925   : > { %3493 = vmatmul.msk.f32.gmra.mxu3 %vm2081_vm1, %v1945_v13 }
 0x928   : > { %v1900_v48 = vpop.f32.mrf.mxu1 }
 0x929   : > { %v1930_v22 = vmul.f32 2.0, %v1900_v48 }
 0x92b   : > { %v1946_v37 = vsub.f32 %v1930_v22, %v4855_v56  ;;  %v5176_v56 = vpop.f32.mrf.mxu0 }
 0x92d   : > { %3494 = vmatmul.msk.f32.gmra.mxu3 %vm2081_vm1, %v1946_v37 }
 0x930   : > { %v1903_v30 = vpop.f32.mrf.mxu1 }
 0x931   : > { %v1931_v31 = vmul.f32 2.0, %v1903_v30  ;;  %v5229_v30 = vld [vmem:[%s6016_s6] ss:$0 sm:$0xff] }
 0x933   : > { %v1947_v12 = vsub.f32 %v1931_v31, %v4851_v50 }
 0x935   : > { %3495 = vmatmul.msk.f32.gmra.mxu3 %vm2081_vm1, %v1947_v12 }
 0x938   : > { %v1906_v28 = vpop.f32.mrf.mxu1 }
 0x939   : > { %v1932_v53 = vmul.f32 2.0, %v1906_v28 }
 0x93b   : > { %v1948_v18 = vsub.f32 %v1932_v53, %v4847_v17  ;;  %v5182_v17 = vpop.f32.mrf.mxu0 }
 0x93d   : > { %3496 = vmatmul.msk.f32.gmra.mxu3 %vm2081_vm1, %v1948_v18 }
 0x940   : > { %v1909_v38 = vpop.f32.mrf.mxu1 }
 0x941   : > { %v1933_v51 = vmul.f32 2.0, %v1909_v38 }
 0x943   : > { %v1949_v4 = vsub.f32 %v1933_v51, %v4843_v61  ;;  %v5188_v52 = vpop.f32.mrf.mxu0 }
 0x945   : > { %3497 = vmatmul.msk.f32.gmra.mxu3 %vm2081_vm1, %v1949_v4 }
 0x948   : > { %v1912_v54 = vpop.f32.mrf.mxu1 }
 0x949   : > { %v1934_v50 = vmul.f32 2.0, %v1912_v54 }
 0x94b   : > { %v1950_v11 = vsub.f32 %v1934_v50, %v6187_v47  ;;  %v5194_v2 = vpop.f32.mrf.mxu0 }
 0x94d   : > { %3498 = vmatmul.msk.f32.gmra.mxu3 %vm2081_vm1, %v1950_v11 }
 0x950   : > { %v1915_v55 = vpop.f32.mrf.mxu1 }
 0x951   : > { %v1935_v9 = vmul.f32 2.0, %v1915_v55 }
 0x953   : > { %v1951_v61 = vsub.f32 %v1935_v9, %v6189_v25  ;;  %v5200_v25 = vpop.f32.mrf.mxu0 }
 0x955   : > { %3499 = vmatmul.msk.f32.gmra.mxu3 %vm2081_vm1, %v1951_v61 }
 0x958   : > { %v1918_v36 = vpop.f32.mrf.mxu1 }
 0x959   : > { %v1936_v26 = vmul.f32 2.0, %v1918_v36 }
 0x95b   : > { %v1952_v47 = vsub.f32 %v1936_v26, %v6192_v42  ;;  %v5206_v15 = vpop.f32.mrf.mxu0  ;;  %v5210_v42 = vpop.f32.mrf.mxu2 }
 0x95d   : > { %3500 = vmatmul.msk.f32.gmra.mxu3 %vm2081_vm1, %v1952_v47 }
 0x963   : > { %v5214_v21 = vpop.f32.mrf.mxu0  ;;  %v2203_v6 = vpop.f32.mrf.mxu2 }
 0x968   : > { %v5196_v62 = vpop.f32.mrf.mxu3 }
 0x96b   : > { %v5218_v35 = vpop.f32.mrf.mxu0  ;;  %v2206_v14 = vpop.f32.mrf.mxu2 }
 0x970   : > { %v5202_v46 = vpop.f32.mrf.mxu3 }
 0x973   : > { %v2271_v58 = vpop.f32.mrf.mxu0  ;;  %v2209_v0 = vpop.f32.mrf.mxu2 }
 0x974   : > { %v2210_v47 = vadd.f32 %v5229_v30, %v2209_v0  ;;  %v2201_v0 = vadd.f32 %v5229_v30, %v5210_v42 }
 0x976   : > { %v2266_v42 = vadd.f32 %v5214_v21, %v2201_v0 }
 0x978   : > { %v5208_v43 = vpop.f32.mrf.mxu3 }
 0x97b   : > { %v2274_v45 = vpop.f32.mrf.mxu0  ;;  %v2212_v8 = vpop.f32.mrf.mxu2 }
 0x97c   : > { %v2213_v9 = vadd.f32 %v5229_v30, %v2212_v8  ;;  %v2204_v8 = vadd.f32 %v5229_v30, %v2203_v6 }
 0x97e   : > { %v2269_v6 = vadd.f32 %v5218_v35, %v2204_v8 }
 0x980   : > { %v5212_v16 = vpop.f32.mrf.mxu3 }
 0x983   : > { %v2277_v59 = vpop.f32.mrf.mxu0  ;;  %v2215_v7 = vpop.f32.mrf.mxu2 }
 0x984   : > { %v2216_v54 = vadd.f32 %v5229_v30, %v2215_v7  ;;  %v2278_v7 = vadd.f32 %v2277_v59, %v2213_v9  ;;  %v2198_v59 = vadd.f32 %v5229_v30, %v5204_v24  ;;  %v2192_v24 = vadd.f32 %v5229_v30, %v5192_v1  ;;  %v5359_v9 = vld [vmem:[%s3977_s23 + $0x50] sm:$0xff] }
 0x985   : > { %v2186_v1 = vadd.f32 %v5229_v30, %v5179_v5 }
 0x986   : > { %v2263_v35 = vadd.f32 %v5206_v15, %v2198_v59  ;;  %v2257_v15 = vadd.f32 %v5194_v2, %v2192_v24  ;;  %v2385_v24 = vld [vmem:[%s6017_s7 + $0x48] sm:$0xff] }
 0x987   : > { %v2251_v5 = vadd.f32 %v5182_v17, %v2186_v1  ;;  %v2380_v1 = vld [vmem:[%s6017_s7 + $0x20] sm:$0xff] }
 0x988   : > { %v5216_v60 = vpop.f32.mrf.mxu3 }
 0x98b   : > { %v2280_v41 = vpop.f32.mrf.mxu0  ;;  %v2218_v20 = vpop.f32.mrf.mxu2 }
 0x98c   : > { %v2219_v18 = vadd.f32 %v5229_v30, %v2218_v20  ;;  %v2207_v20 = vadd.f32 %v5229_v30, %v2206_v14 }
 0x990   : > { %v5220_v3 = vpop.f32.mrf.mxu3 }
 0x993   : > { %v2283_v44 = vpop.f32.mrf.mxu0  ;;  %v2221_v34 = vpop.f32.mrf.mxu2 }
 0x994   : > { %v2222_v53 = vadd.f32 %v5229_v30, %v2221_v34  ;;  %v2284_v61 = vadd.f32 %v2283_v44, %v2219_v18  ;;  %v2275_v44 = vadd.f32 %v2274_v45, %v2210_v47  ;;  %v5371_v47 = vld [vmem:[%s3977_s23 + $0x68] sm:$0xff] }
 0x995   : > { %6200 = vst [vmem:[#allocation25_spill] sm:$0xff] %v5371_v47 }
 0x998   : > { %v5222_v27 = vpop.f32.mrf.mxu3 }
 0x99b   : > { %v2286_v32 = vpop.f32.mrf.mxu0  ;;  %v2224_v40 = vpop.f32.mrf.mxu2 }
 0x99c   : > { %v2225_v31 = vadd.f32 %v5229_v30, %v2224_v40  ;;  %v2287_v50 = vadd.f32 %v2286_v32, %v2222_v53  ;;  %v2281_v40 = vadd.f32 %v2280_v41, %v2216_v54  ;;  %v2272_v41 = vadd.f32 %v2271_v58, %v2207_v20  ;;  %v5343_v54 = vld [vmem:[%s3977_s23 + $0x30] sm:$0xff] }
 0x99d   : > { %v2183_v53 = vadd.f32 %v5229_v30, %v5173_v29 }
 0x9a0   : > { %v5224_v49 = vpop.f32.mrf.mxu3 }
 0x9a1   : > { %v2334_v58 = vadd.f32 %v5224_v49, %v2269_v6  ;;  %v2328_v49 = vadd.f32 %v5220_v3, %v2263_v35  ;;  %v2389_v6 = vld [vmem:[%s6017_s7 + $0x68] sm:$0xff]  ;;  %v2384_v35 = vld [vmem:[%s6017_s7 + $0x40] sm:$0xff] }
 0x9a3   : > { %v2289_v48 = vpop.f32.mrf.mxu0  ;;  %v2227_v22 = vpop.f32.mrf.mxu2  ;;  %v5292_v3 = vmax.f32 %v2328_v49, 0.0  ;;  %v2381_v49 = vld [vmem:[%s6017_s7 + $0x28] sm:$0xff] }
 0x9a4   : > { %v2228_v12 = vadd.f32 %v5229_v30, %v2227_v22  ;;  %v2290_v38 = vadd.f32 %v2289_v48, %v2225_v31 }
 0x9a8   : > { %v2336_v57 = vpop.f32.mrf.mxu3 }
 0x9a9   : > { %v2337_v45 = vadd.f32 %v2336_v57, %v2272_v41  ;;  %v2331_v57 = vadd.f32 %v5222_v27, %v2266_v42  ;;  %v2391_v41 = vld [vmem:[%s6017_s7 + $0x78] sm:$0xff]  ;;  %v2386_v42 = vld [vmem:[%s6017_s7 + $0x50] sm:$0xff] }
 0x9ab   : > { %v2292_v28 = vpop.f32.mrf.mxu0  ;;  %v5273_v31 = vmax.f32 %v2337_v45, 0.0  ;;  %v2388_v45 = vld [vmem:[%s6017_s7 + $0x60] sm:$0xff] }
 0x9ac   : > { %v2293_v51 = vadd.f32 %v2292_v28, %v2228_v12  ;;  %v5280_v12 = vmax.f32 %v2334_v58, 0.0  ;;  %v5287_v28 = vmax.f32 %v2331_v57, 0.0  ;;  %v2383_v57 = vld [vmem:[%s6017_s7 + $0x38] sm:$0xff] }
 0x9b0   : > { %v2339_v10 = vpop.f32.mrf.mxu3 }
 0x9b8   : > { %v2342_v23 = vpop.f32.mrf.mxu3 }
 0x9c0   : > { %v2345_v33 = vpop.f32.mrf.mxu3 }
 0x9c1   : > { %v2346_v32 = vadd.f32 %v2345_v33, %v2281_v40  ;;  %v2195_v33 = vadd.f32 %v5229_v30, %v5198_v19  ;;  %v2189_v19 = vadd.f32 %v5229_v30, %v5186_v39  ;;  %v5327_v30 = vld [vmem:[%s3977_s23 + $0x10] sm:$0xff] }
 0x9c2   : > { %v5375_v40 = vld [vmem:[%s3977_s23 + $0x70] sm:$0xff] }
 0x9c3   : > { %v5253_v14 = vmax.f32 %v2346_v32, 0.0  ;;  %v2260_v21 = vadd.f32 %v5200_v25, %v2195_v33  ;;  %v2254_v39 = vadd.f32 %v5188_v52, %v2189_v19  ;;  %v2322_v25 = vadd.f32 %v5212_v16, %v2257_v15  ;;  %6201 = vst [vmem:[#allocation29_spill] sm:$0xff] %v5375_v40  ;;  %v2387_v33 = vld [vmem:[%s6017_s7 + $0x58] sm:$0xff]  ;;  %v2382_v19 = vld [vmem:[%s6017_s7 + $0x30] sm:$0xff] }
 0x9c4   : > { %v2248_v52 = vadd.f32 %v5176_v56, %v2183_v53  ;;  %v2316_v16 = vadd.f32 %v5202_v46, %v2251_v5  ;;  %v5319_v46 = vld [vmem:[%s3977_s23] sm:$0xff]  ;;  %v2379_v15 = vld [vmem:[%s6017_s7 + $0x18] sm:$0xff] }
 0x9c5   : > { %v2325_v27 = vadd.f32 %v5216_v60, %v2260_v21  ;;  %v2319_v2 = vadd.f32 %v5208_v43, %v2254_v39  ;;  %v5304_v18 = vmax.f32 %v2322_v25, 0.0  ;;  %v2377_v25 = vld [vmem:[%s6017_s7 + $0x8] sm:$0xff]  ;;  %v2376_v53 = vld [vmem:[%s6017_s7] sm:$0xff] }
 0x9c6   : > { %v2313_v29 = vadd.f32 %v5196_v62, %v2248_v52  ;;  %v5311_v43 = vmax.f32 %v2316_v16, 0.0  ;;  %v5323_v62 = vld [vmem:[%s3977_s23 + $0x8] sm:$0xff] }
 0x9c7   : > { %v5299_v60 = vmax.f32 %v2325_v27, 0.0  ;;  %v5308_v17 = vmax.f32 %v2319_v2, 0.0  ;;  %v2378_v27 = vld [vmem:[%s6017_s7 + $0x10] sm:$0xff] }
 0x9c8   : > { %v2348_v63 = vpop.f32.mrf.mxu3  ;;  %v5314_v56 = vmax.f32 %v2313_v29, 0.0 }
 0x9c9   : > { %v2349_v34 = vadd.f32 %v2348_v63, %v2284_v61  ;;  %v2340_v63 = vadd.f32 %v2339_v10, %v2275_v44  ;;  %v5363_v61 = vld [vmem:[%s3977_s23 + $0x58] sm:$0xff] }
 0x9ca   : > { %6198 = vst [vmem:[#allocation26_spill] sm:$0xff] %v5363_v61 }
 0x9cb   : > { %v5266_v10 = vmax.f32 %v2340_v63, 0.0  ;;  %v2390_v63 = vld [vmem:[%s6017_s7 + $0x70] sm:$0xff] }
 0x9d0   : > { %v2351_v13 = vpop.f32.mrf.mxu3 }
 0x9d1   : > { %v2352_v36 = vadd.f32 %v2351_v13, %v2287_v50  ;;  %v2343_v13 = vadd.f32 %v2342_v23, %v2278_v7  ;;  %v5347_v50 = vld [vmem:[%s3977_s23 + $0x38] sm:$0xff] }
 0x9d3   : > { %v5244_v48 = vmax.f32 %v2352_v36, 0.0  ;;  %v5259_v23 = vmax.f32 %v2343_v13, 0.0  ;;  %v5367_v36 = vld [vmem:[%s3977_s23 + $0x60] sm:$0xff] }
 0x9d4   : > { %6199 = vst [vmem:[#allocation30_spill] sm:$0xff] %v5367_v36 }
 0x9d8   : > { %v2354_v37 = vpop.f32.mrf.mxu3 }
 0x9d9   : > { %v2355_v11 = vadd.f32 %v2354_v37, %v2290_v38  ;;  %v5248_v37 = vmax.f32 %v2349_v34, 0.0  ;;  %v5331_v38 = vld [vmem:[%s3977_s23 + $0x18] sm:$0xff] }
 0x9da   : > { %v5379_v34 = vld [vmem:[%s3977_s23 + $0x78] sm:$0xff] }
 0x9db   : > { %v5240_v22 = vmax.f32 %v2355_v11, 0.0  ;;  %v5351_v11 = vld [vmem:[%s3977_s23 + $0x40] sm:$0xff]  ;;  %6202 = vst [vmem:[#allocation28_spill] sm:$0xff] %v5379_v34 }
 0x9e0   : > { %v2357_v4 = vpop.f32.mrf.mxu3 }
 0x9e1   : > { %v2358_v55 = vadd.f32 %v2357_v4, %v2293_v51  ;;  %v5335_v51 = vld [vmem:[%s3977_s23 + $0x20] sm:$0xff]  ;;  %v5339_v4 = vld [vmem:[%s3977_s23 + $0x28] sm:$0xff] }
 0x9e3   : > { %v5237_v26 = vmax.f32 %v2358_v55, 0.0  ;;  %v5355_v55 = vld [vmem:[%s3977_s23 + $0x48] sm:$0xff]  ;;  %s3322_s23 = sshll.u32 %s502_s4, 4  ;;  %s3323_s23 = int_to_ptr.vmem [resolvable:$true] %s3322_s23 }
 0x9e5   : > { %6197 = vst [vmem:[#allocation24_spill] sm:$0xff] %v5237_v26  ;;  %2417 = vmatpush.msra.mxu1 %v5237_v26 }
 0x9e7   : > { %2418 = vmatpush.msra.mxu1 %v5240_v22 }
 0x9e9   : > { %2419 = vmatpush.msra.mxu1 %v5244_v48 }
 0x9eb   : > { %2420 = vmatpush.msra.mxu1 %v5248_v37 }
 0x9ed   : > { %2421 = vmatpush.msra.mxu1 %v5253_v14 }
 0x9ef   : > { %2422 = vmatpush.msra.mxu1 %v5259_v23 }
 0x9f1   : > { %2423 = vmatpush.msra.mxu1 %v5266_v10 }
 0x9f3   : > { %2424 = vmatpush.msra.mxu1 %v5273_v31 }
 0x9f5   : > { %2425 = vmatpush.msra.mxu1 %v5280_v12 }
 0x9f7   : > { %2426 = vmatpush.msra.mxu1 %v5287_v28 }
 0x9f9   : > { %2427 = vmatpush.msra.mxu1 %v5292_v3 }
 0x9fb   : > { %2428 = vmatpush.msra.mxu1 %v5299_v60 }
 0x9fd   : > { %2429 = vmatpush.msra.mxu1 %v5304_v18 }
 0x9ff   : > { %2430 = vmatpush.msra.mxu1 %v5308_v17 }
 0xa01   : > { %2431 = vmatpush.msra.mxu1 %v5311_v43 }
 0xa03   : > { %2432 = vmatpush.msra.mxu1 %v5314_v56 }
 0xa04   : > { %2433 = vmatmul.f32.vlgmr.msra.gmra.mxu1 %v5319_v46 }
 0xa05   : > { %2984 = vmatpush.msrb.mxu1 %v2391_v41 }
 0xa07   : > { %2985 = vmatpush.msrb.mxu1 %v2390_v63 }
 0xa09   : > { %2986 = vmatpush.msrb.mxu1 %v2389_v6 }
 0xa0b   : > { %2987 = vmatpush.msrb.mxu1 %v2388_v45 }
 0xa0c   : > { %2436 = vmatmul.f32.gmra.mxu1 %v5323_v62 }
 0xa0d   : > { %2988 = vmatpush.msrb.mxu1 %v2387_v33 }
 0xa0f   : > { %2989 = vmatpush.msrb.mxu1 %v2386_v42 }
 0xa11   : > { %2990 = vmatpush.msrb.mxu1 %v2385_v24 }
 0xa13   : > { %2991 = vmatpush.msrb.mxu1 %v2384_v35 }
 0xa14   : > { %2439 = vmatmul.f32.gmra.mxu1 %v5327_v30 }
 0xa15   : > { %2992 = vmatpush.msrb.mxu1 %v2383_v57 }
 0xa17   : > { %2993 = vmatpush.msrb.mxu1 %v2382_v19 }
 0xa19   : > { %2994 = vmatpush.msrb.mxu1 %v2381_v49 }
 0xa1b   : > { %2995 = vmatpush.msrb.mxu1 %v2380_v1 }
 0xa1c   : > { %2442 = vmatmul.f32.gmra.mxu1 %v5331_v38 }
 0xa1d   : > { %2996 = vmatpush.msrb.mxu1 %v2379_v15 }
 0xa1f   : > { %2997 = vmatpush.msrb.mxu1 %v2378_v27 }
 0xa21   : > { %2998 = vmatpush.msrb.mxu1 %v2377_v25 }
 0xa23   : > { %2999 = vmatpush.msrb.mxu1 %v2376_v53 }
 0xa24   : > { %2445 = vmatmul.f32.gmra.mxu1 %v5335_v51 }
 0xa2c   : > { %2448 = vmatmul.f32.gmra.mxu1 %v5339_v4 }
 0xa34   : > { %2451 = vmatmul.f32.gmra.mxu1 %v5343_v54 }
 0xa3c   : > { %2454 = vmatmul.f32.gmra.mxu1 %v5347_v50 }
 0xa44   : > { %2457 = vmatmul.f32.gmra.mxu1 %v5351_v11 }
 0xa4c   : > { %2460 = vmatmul.f32.gmra.mxu1 %v5355_v55 }
 0xa54   : > { %2463 = vmatmul.f32.gmra.mxu1 %v5359_v9 }
 0xa5c   : > { %2466 = vmatmul.f32.gmra.mxu1 %v5363_v61 }
 0xa64   : > { %2469 = vmatmul.f32.gmra.mxu1 %v5367_v36 }
 0xa6c   : > { %2472 = vmatmul.f32.gmra.mxu1 %v5371_v47 }
 0xa74   : > { %2475 = vmatmul.f32.gmra.mxu1 %v5375_v40 }
 0xa7c   : > { %2478 = vmatmul.f32.gmra.mxu1 %v5379_v34 }
 0xa81   : > { %v5382_v20 = vpop.f32.mrf.mxu1 }
 0xa82   : > { %2789 = vrot.lane.b32.xlu0 %v5382_v20, %s6175_s1 }
 0xa89   : > { %v5386_v7 = vpop.f32.mrf.mxu1 }
 0xa91   : > { %v5388_v32 = vpop.f32.mrf.mxu1 }
 0xa99   : > { %v5390_v8 = vpop.f32.mrf.mxu1 }
 0xaa1   : > { %v5392_v44 = vpop.f32.mrf.mxu1 }
 0xaa9   : > { %v5394_v13 = vpop.f32.mrf.mxu1 }
 0xab1   : > { %v5396_v0 = vpop.f32.mrf.mxu1 }
 0xab9   : > { %v5404_v59 = vpop.f32.mrf.mxu1 }
 0xaba   : > { %6203 = vst [vmem:[#allocation9_spill] sm:$0xff] %v5404_v59 }
 0xac1   : > { %v5418_v58 = vpop.f32.mrf.mxu1 }
 0xac2   : > { %6204 = vst [vmem:[#allocation17_spill] sm:$0xff] %v5418_v58 }
 0xac9   : > { %v5432_v21 = vpop.f32.mrf.mxu1 }
 0xaca   : > { %6205 = vst [vmem:[#allocation8_spill] sm:$0xff] %v5432_v21 }
 0xad1   : > { %v5446_v39 = vpop.f32.mrf.mxu1 }
 0xad2   : > { %6206 = vst [vmem:[#allocation16_spill] sm:$0xff] %v5446_v39 }
 0xad9   : > { %v5454_v5 = vpop.f32.mrf.mxu1 }
 0xada   : > { %6207 = vst [vmem:[#allocation7_spill] sm:$0xff] %v5454_v5 }
 0xae1   : > { %v5456_v2 = vpop.f32.mrf.mxu1 }
 0xae2   : > { %6208 = vst [vmem:[#allocation15_spill] sm:$0xff] %v5456_v2 }
 0xae9   : > { %v5458_v52 = vpop.f32.mrf.mxu1 }
 0xaea   : > { %6209 = vst [vmem:[#allocation6_spill] sm:$0xff] %v5458_v52 }
 0xaf1   : > { %v5460_v16 = vpop.f32.mrf.mxu1 }
 0xaf2   : > { %6210 = vst [vmem:[#allocation14_spill] sm:$0xff] %v5460_v16 }
 0xaf4   : > { %v2790_v29 = vpop.permute.xlu0 %2789 }
 0xaf5   : > { %v2901_v41 = vsel %vm2081_vm1, %v5314_v56, %v2790_v29 }
 0xaf6   : > { %3000 = vmatmul.f32.vlgmr.msrb.gmra.mxu1 %v2901_v41 }
 0xaf9   : > { %v5464_v63 = vpop.f32.mrf.mxu1 }
 0xafa   : > { %6211 = vst [vmem:[#allocation5_spill] sm:$0xff] %v5464_v63  ;;  %2482 = vmatpush.msra.mxu2 %v5464_v63 }
 0xafc   : > { %2483 = vmatpush.msra.mxu2 %v5460_v16 }
 0xafe   : > { %2484 = vmatpush.msra.mxu2 %v5458_v52 }
 0xb00   : > { %2485 = vmatpush.msra.mxu2 %v5456_v2 }
 0xb02   : > { %2486 = vmatpush.msra.mxu2 %v5454_v5 }
 0xb04   : > { %2487 = vmatpush.msra.mxu2 %v5446_v39 }
 0xb06   : > { %2488 = vmatpush.msra.mxu2 %v5432_v21 }
 0xb08   : > { %2489 = vmatpush.msra.mxu2 %v5418_v58 }
 0xb0a   : > { %2490 = vmatpush.msra.mxu2 %v5404_v59 }
 0xb0c   : > { %2491 = vmatpush.msra.mxu2 %v5396_v0 }
 0xb0e   : > { %2492 = vmatpush.msra.mxu2 %v5394_v13 }
 0xb10   : > { %2493 = vmatpush.msra.mxu2 %v5392_v44 }
 0xb12   : > { %2494 = vmatpush.msra.mxu2 %v5390_v8 }
 0xb14   : > { %2495 = vmatpush.msra.mxu2 %v5388_v32 }
 0xb16   : > { %2496 = vmatpush.msra.mxu2 %v5386_v7 }
 0xb18   : > { %2497 = vmatpush.msra.mxu2 %v5382_v20 }
 0xb19   : > { %2498 = vmatmul.f32.vlgmr.msra.gmra.mxu2 %v5319_v46 }
 0xb21   : > { %2501 = vmatmul.f32.gmra.mxu2 %v5323_v62 }
 0xb29   : > { %2504 = vmatmul.f32.gmra.mxu2 %v5327_v30 }
 0xb31   : > { %2507 = vmatmul.f32.gmra.mxu2 %v5331_v38 }
 0xb39   : > { %2510 = vmatmul.f32.gmra.mxu2 %v5335_v51 }
 0xb41   : > { %2513 = vmatmul.f32.gmra.mxu2 %v5339_v4 }
 0xb49   : > { %2516 = vmatmul.f32.gmra.mxu2 %v5343_v54 }
 0xb51   : > { %2519 = vmatmul.f32.gmra.mxu2 %v5347_v50 }
 0xb59   : > { %2522 = vmatmul.f32.gmra.mxu2 %v5351_v11 }
 0xb61   : > { %2525 = vmatmul.f32.gmra.mxu2 %v5355_v55 }
 0xb69   : > { %2528 = vmatmul.f32.gmra.mxu2 %v5359_v9 }
 0xb71   : > { %2531 = vmatmul.f32.gmra.mxu2 %v5363_v61 }
 0xb79   : > { %2534 = vmatmul.f32.gmra.mxu2 %v5367_v36 }
 0xb81   : > { %2537 = vmatmul.f32.gmra.mxu2 %v5371_v47 }
 0xb89   : > { %2540 = vmatmul.f32.gmra.mxu2 %v5375_v40 }
 0xb91   : > { %2543 = vmatmul.f32.gmra.mxu2 %v5379_v34 }
 0xb9c   : > { %v2499_v6 = vpop.f32.mrf.mxu2 }
 0xba4   : > { %v2502_v45 = vpop.f32.mrf.mxu2 }
 0xbac   : > { %v2505_v33 = vpop.f32.mrf.mxu2 }
 0xbb4   : > { %v2508_v42 = vpop.f32.mrf.mxu2 }
 0xbbc   : > { %v2511_v24 = vpop.f32.mrf.mxu2 }
 0xbc4   : > { %v2514_v35 = vpop.f32.mrf.mxu2 }
 0xbcc   : > { %v2517_v57 = vpop.f32.mrf.mxu2 }
 0xbd4   : > { %v2520_v19 = vpop.f32.mrf.mxu2 }
 0xbdc   : > { %v2523_v49 = vpop.f32.mrf.mxu2 }
 0xbe4   : > { %v2526_v1 = vpop.f32.mrf.mxu2 }
 0xbec   : > { %v2529_v15 = vpop.f32.mrf.mxu2 }
 0xbed   : > { %v2557_v59 = vmul.f32 2.0, %v2529_v15 }
 0xbf4   : > { %v2532_v27 = vpop.f32.mrf.mxu2 }
 0xbf5   : > { %v2558_v21 = vmul.f32 2.0, %v2532_v27  ;;  %v5518_v27 = vsub.f32 %v2557_v59, %v5259_v23  ;;  %v2551_v59 = vmul.f32 2.0, %v2511_v24 }
 0xbfc   : > { %v2535_v25 = vpop.f32.mrf.mxu2 }
 0xbfd   : > { %v2559_v5 = vmul.f32 2.0, %v2535_v25  ;;  %v5514_v25 = vsub.f32 %v2558_v21, %v5253_v14  ;;  %v2552_v21 = vmul.f32 2.0, %v2514_v35  ;;  %v5542_v35 = vsub.f32 %v2551_v59, %v5299_v60 }
 0xc04   : > { %v2538_v53 = vpop.f32.mrf.mxu2 }
 0xc05   : > { %v2560_v52 = vmul.f32 2.0, %v2538_v53  ;;  %v2550_v53 = vmul.f32 2.0, %v2508_v42 }
 0xc07   : > { %v5506_v58 = vsub.f32 %v2560_v52, %v5244_v48  ;;  %v2554_v52 = vmul.f32 2.0, %v2520_v19  ;;  %v5546_v24 = vsub.f32 %v2550_v53, %v5304_v18 }
 0xc0c   : > { %v2541_v29 = vpop.f32.mrf.mxu2 }
 0xc0d   : > { %v2561_v63 = vmul.f32 2.0, %v2541_v29  ;;  %v5510_v29 = vsub.f32 %v2559_v5, %v5248_v37  ;;  %v2553_v5 = vmul.f32 2.0, %v2517_v57  ;;  %v5538_v57 = vsub.f32 %v2552_v21, %v5292_v3 }
 0xc0f   : > { %v5502_v39 = vsub.f32 %v2561_v63, %v5240_v22  ;;  %v2555_v63 = vmul.f32 2.0, %v2523_v49  ;;  %v5530_v49 = vsub.f32 %v2554_v52, %v5280_v12  ;;  %v5534_v19 = vsub.f32 %v2553_v5, %v5287_v28 }
 0xc14   : > { %v2544_v41 = vpop.f32.mrf.mxu2 }
 0xc15   : > { %v2562_v16 = vmul.f32 2.0, %v2544_v41  ;;  %v2549_v41 = vmul.f32 2.0, %v2505_v33 }
 0xc17   : > { %v5499_v2 = vsub.f32 %v2562_v16, %v5237_v26  ;;  %v2556_v16 = vmul.f32 2.0, %v2526_v1  ;;  %v5526_v1 = vsub.f32 %v2555_v63, %v5273_v31  ;;  %v2547_v63 = vmul.f32 2.0, %v2499_v6 }
 0xc18   : > { %v5550_v42 = vsub.f32 %v2549_v41, %v5308_v17 }
 0xc19   : > { %6212 = vst [vmem:[#allocation22_spill] sm:$0xff] %v5499_v2  ;;  %2579 = vmatpush.msra.mxu0 %v5499_v2  ;;  %v5522_v15 = vsub.f32 %v2556_v16, %v5266_v10  ;;  %v2548_v16 = vmul.f32 2.0, %v2502_v45  ;;  %v5558_v33 = vsub.f32 %v2547_v63, %v5314_v56  ;;  %v6219_v2 = vld [vmem:[#allocation6_spill] sm:$0xff] }
 0xc1b   : > { %2580 = vmatpush.msra.mxu0 %v5502_v39  ;;  %v5554_v52 = vsub.f32 %v2548_v16, %v5311_v43 }
 0xc1d   : > { %2581 = vmatpush.msra.mxu0 %v5506_v58 }
 0xc1f   : > { %2582 = vmatpush.msra.mxu0 %v5510_v29 }
 0xc21   : > { %2583 = vmatpush.msra.mxu0 %v5514_v25 }
 0xc23   : > { %2584 = vmatpush.msra.mxu0 %v5518_v27 }
 0xc25   : > { %2585 = vmatpush.msra.mxu0 %v5522_v15 }
 0xc27   : > { %2586 = vmatpush.msra.mxu0 %v5526_v1 }
 0xc29   : > { %2587 = vmatpush.msra.mxu0 %v5530_v49 }
 0xc2b   : > { %2588 = vmatpush.msra.mxu0 %v5534_v19 }
 0xc2d   : > { %2589 = vmatpush.msra.mxu0 %v5538_v57 }
 0xc2f   : > { %2590 = vmatpush.msra.mxu0 %v5542_v35 }
 0xc31   : > { %2591 = vmatpush.msra.mxu0 %v5546_v24 }
 0xc33   : > { %2592 = vmatpush.msra.mxu0 %v5550_v42 }
 0xc35   : > { %2593 = vmatpush.msra.mxu0 %v5554_v52 }
 0xc37   : > { %2594 = vmatpush.msra.mxu0 %v5558_v33 }
 0xc38   : > { %2595 = vmatmul.f32.vlgmr.msra.gmra.mxu0 %v5319_v46 }
 0xc40   : > { %2598 = vmatmul.f32.gmra.mxu0 %v5323_v62 }
 0xc48   : > { %2601 = vmatmul.f32.gmra.mxu0 %v5327_v30 }
 0xc50   : > { %2604 = vmatmul.f32.gmra.mxu0 %v5331_v38 }
 0xc58   : > { %2607 = vmatmul.f32.gmra.mxu0 %v5335_v51 }
 0xc60   : > { %2610 = vmatmul.f32.gmra.mxu0 %v5339_v4 }
 0xc68   : > { %2613 = vmatmul.f32.gmra.mxu0 %v5343_v54 }
 0xc70   : > { %2616 = vmatmul.f32.gmra.mxu0 %v5347_v50 }
 0xc78   : > { %2619 = vmatmul.f32.gmra.mxu0 %v5351_v11 }
 0xc80   : > { %2622 = vmatmul.f32.gmra.mxu0 %v5355_v55 }
 0xc88   : > { %2625 = vmatmul.f32.gmra.mxu0 %v5359_v9 }
 0xc90   : > { %2628 = vmatmul.f32.gmra.mxu0 %v5363_v61 }
 0xc98   : > { %2631 = vmatmul.f32.gmra.mxu0 %v5367_v36  ;;  %v6218_v36 = vld [vmem:[#allocation15_spill] sm:$0xff] }
 0xca0   : > { %2634 = vmatmul.f32.gmra.mxu0 %v5371_v47  ;;  %v6217_v47 = vld [vmem:[#allocation7_spill] sm:$0xff] }
 0xca8   : > { %2637 = vmatmul.f32.gmra.mxu0 %v5375_v40 }
 0xcb0   : > { %2640 = vmatmul.f32.gmra.mxu0 %v5379_v34 }
 0xcb5   : > { %v2596_v56 = vpop.f32.mrf.mxu0 }
 0xcb6   : > { %v2644_v6 = vmul.f32 2.0, %v2596_v56 }
 0xcb8   : > { %v5579_v45 = vsub.f32 %v2644_v6, %v5382_v20 }
 0xcba   : > { %2853 = vrot.lane.b32.xlu2 %v5579_v45, %s6175_s1 }
 0xcbd   : > { %v2599_v5 = vpop.f32.mrf.mxu0 }
 0xcbe   : > { %v2645_v21 = vmul.f32 2.0, %v2599_v5 }
 0xcc0   : > { %v5584_v59 = vsub.f32 %v2645_v21, %v5386_v7  ;;  %v2406_v21 = vld [vmem:[%s6017_s7 + $0xf0] sm:$0xff] }
 0xcc2   : > { %2791 = vrot.lane.b32.xlu2 %v5386_v7, %s6175_s1  ;;  %2855 = vrot.lane.b32.xlu1 %v5584_v59, %s6175_s1 }
 0xcc5   : > { %v2602_v53 = vpop.f32.mrf.mxu0 }
 0xcc6   : > { %v2646_v41 = vmul.f32 2.0, %v2602_v53  ;;  %v2404_v53 = vld [vmem:[%s6017_s7 + $0xe0] sm:$0xff] }
 0xcc8   : > { %v5591_v16 = vsub.f32 %v2646_v41, %v5388_v32 }
 0xcca   : > { %2793 = vrot.lane.b32.xlu1 %v5388_v32, %s6175_s1  ;;  %2857 = vrot.lane.b32.xlu0 %v5591_v16, %s6175_s1  ;;  %v2407_v32 = vld [vmem:[%s6017_s7 + $0xf8] sm:$0xff] }
 0xccb   : > { %3049 = vmatpush.msrb.mxu2 %v2407_v32  ;;  %v2400_v32 = vld [vmem:[%s6017_s7 + $0xc0] sm:$0xff] }
 0xccd   : > { %v2605_v20 = vpop.f32.mrf.mxu0  ;;  %3050 = vmatpush.msrb.mxu2 %v2406_v21 }
 0xcce   : > { %v2647_v63 = vmul.f32 2.0, %v2605_v20 }
 0xcd0   : > { %v5598_v56 = vsub.f32 %v2647_v63, %v5390_v8  ;;  %v2403_v63 = vld [vmem:[%s6017_s7 + $0xd8] sm:$0xff] }
 0xcd2   : > { %2795 = vrot.lane.b32.xlu0 %v5390_v8, %s6175_s1  ;;  %2859 = vrot.lane.b32.xlu2 %v5598_v56, %s6175_s1  ;;  %v2405_v8 = vld [vmem:[%s6017_s7 + $0xe8] sm:$0xff] }
 0xcd3   : > { %3051 = vmatpush.msrb.mxu2 %v2405_v8 }
 0xcd5   : > { %v2608_v7 = vpop.f32.mrf.mxu0  ;;  %3052 = vmatpush.msrb.mxu2 %v2404_v53  ;;  %v2399_v53 = vld [vmem:[%s6017_s7 + $0xb8] sm:$0xff] }
 0xcd6   : > { %v2648_v6 = vmul.f32 2.0, %v2608_v7  ;;  %v2402_v7 = vld [vmem:[%s6017_s7 + $0xd0] sm:$0xff] }
 0xcd7   : > { %3053 = vmatpush.msrb.mxu2 %v2403_v63  ;;  %v2396_v63 = vld [vmem:[%s6017_s7 + $0xa0] sm:$0xff] }
 0xcd8   : > { %v5608_v5 = vsub.f32 %v2648_v6, %v5392_v44  ;;  %v2401_v6 = vld [vmem:[%s6017_s7 + $0xc8] sm:$0xff] }
 0xcd9   : > { %3054 = vmatpush.msrb.mxu2 %v2402_v7 }
 0xcda   : > { %2797 = vrot.lane.b32.xlu2 %v5392_v44, %s6175_s1  ;;  %2861 = vrot.lane.b32.xlu1 %v5608_v5, %s6175_s1 }
 0xcdb   : > { %3055 = vmatpush.msrb.mxu2 %v2401_v6 }
 0xcdd   : > { %v2611_v41 = vpop.f32.mrf.mxu0  ;;  %3056 = vmatpush.msrb.mxu2 %v2400_v32  ;;  %v2395_v32 = vld [vmem:[%s6017_s7 + $0x98] sm:$0xff] }
 0xcde   : > { %v2649_v20 = vmul.f32 2.0, %v2611_v41  ;;  %v2398_v41 = vld [vmem:[%s6017_s7 + $0xb0] sm:$0xff] }
 0xcdf   : > { %3057 = vmatpush.msrb.mxu2 %v2399_v53  ;;  %v2393_v53 = vld [vmem:[%s6017_s7 + $0x88] sm:$0xff] }
 0xce0   : > { %v5627_v44 = vsub.f32 %v2649_v20, %v5394_v13  ;;  %v2397_v20 = vld [vmem:[%s6017_s7 + $0xa8] sm:$0xff] }
 0xce1   : > { %3058 = vmatpush.msrb.mxu2 %v2398_v41  ;;  %v2392_v41 = vld [vmem:[%s6017_s7 + $0x80] sm:$0xff] }
 0xce2   : > { %2799 = vrot.lane.b32.xlu1 %v5394_v13, %s6175_s1  ;;  %2863 = vrot.lane.b32.xlu0 %v5627_v44, %s6175_s1 }
 0xce3   : > { %3059 = vmatpush.msrb.mxu2 %v2397_v20 }
 0xce5   : > { %v2614_v21 = vpop.f32.mrf.mxu0  ;;  %3060 = vmatpush.msrb.mxu2 %v2396_v63 }
 0xce6   : > { %v2650_v8 = vmul.f32 2.0, %v2614_v21 }
 0xce7   : > { %3061 = vmatpush.msrb.mxu2 %v2395_v32 }
 0xce8   : > { %v5646_v13 = vsub.f32 %v2650_v8, %v5396_v0  ;;  %v2394_v8 = vld [vmem:[%s6017_s7 + $0x90] sm:$0xff] }
 0xce9   : > { %3062 = vmatpush.msrb.mxu2 %v2394_v8  ;;  %v6215_v8 = vld [vmem:[#allocation8_spill] sm:$0xff] }
 0xcea   : > { %2801 = vrot.lane.b32.xlu0 %v5396_v0, %s6175_s1  ;;  %2865 = vrot.lane.b32.xlu2 %v5646_v13, %s6175_s1  ;;  %v6213_v0 = vld [vmem:[#allocation9_spill] sm:$0xff] }
 0xceb   : > { %3063 = vmatpush.msrb.mxu2 %v2393_v53 }
 0xced   : > { %v2617_v7 = vpop.f32.mrf.mxu0  ;;  %3064 = vmatpush.msrb.mxu2 %v2392_v41  ;;  %v6216_v41 = vld [vmem:[#allocation16_spill] sm:$0xff] }
 0xcee   : > { %v2651_v6 = vmul.f32 2.0, %v2617_v7  ;;  %v6214_v7 = vld [vmem:[#allocation17_spill] sm:$0xff] }
 0xcf0   : > { %v5665_v21 = vsub.f32 %v2651_v6, %v6213_v0 }
 0xcf2   : > { %2803 = vrot.lane.b32.xlu2 %v6213_v0, %s6175_s1  ;;  %2867 = vrot.lane.b32.xlu1 %v5665_v21, %s6175_s1 }
 0xcf5   : > { %v2620_v20 = vpop.f32.mrf.mxu0 }
 0xcf6   : > { %v2652_v63 = vmul.f32 2.0, %v2620_v20 }
 0xcf8   : > { %v2668_v6 = vsub.f32 %v2652_v63, %v6214_v7 }
 0xcfa   : > { %2805 = vrot.lane.b32.xlu1 %v6214_v7, %s6175_s1  ;;  %2869 = vrot.lane.b32.xlu0 %v2668_v6, %s6175_s1 }
 0xcfd   : > { %v2623_v32 = vpop.f32.mrf.mxu0 }
 0xcfe   : > { %v2653_v0 = vmul.f32 2.0, %v2623_v32 }
 0xd00   : > { %v2669_v34 = vsub.f32 %v2653_v0, %v6215_v8 }
 0xd02   : > { %2807 = vrot.lane.b32.xlu0 %v6215_v8, %s6175_s1  ;;  %2871 = vrot.lane.b32.xlu2 %v2669_v34, %s6175_s1 }
 0xd05   : > { %v2626_v53 = vpop.f32.mrf.mxu0 }
 0xd06   : > { %v2654_v40 = vmul.f32 2.0, %v2626_v53 }
 0xd08   : > { %v2670_v20 = vsub.f32 %v2654_v40, %v6216_v41 }
 0xd0a   : > { %2809 = vrot.lane.b32.xlu2 %v6216_v41, %s6175_s1  ;;  %2873 = vrot.lane.b32.xlu1 %v2670_v20, %s6175_s1 }
 0xd0d   : > { %v2629_v63 = vpop.f32.mrf.mxu0 }
 0xd0e   : > { %v2655_v7 = vmul.f32 2.0, %v2629_v63 }
 0xd10   : > { %v2671_v32 = vsub.f32 %v2655_v7, %v6217_v47 }
 0xd12   : > { %2811 = vrot.lane.b32.xlu1 %v6217_v47, %s6175_s1  ;;  %2875 = vrot.lane.b32.xlu0 %v2671_v32, %s6175_s1 }
 0xd14   : > { %v2854_v0 = vpop.permute.xlu2 %2853 }
 0xd15   : > { %v2917_v8 = vsel %vm2081_vm1, %v5558_v33, %v2854_v0  ;;  %v2632_v53 = vpop.f32.mrf.mxu0 }
 0xd16   : > { %v2656_v40 = vmul.f32 2.0, %v2632_v53  ;;  %3065 = vmatmul.f32.vlgmr.msrb.gmra.mxu2 %v2917_v8  ;;  %v6220_v53 = vld [vmem:[#allocation14_spill] sm:$0xff] }
 0xd18   : > { %v2672_v41 = vsub.f32 %v2656_v40, %v6218_v36 }
 0xd1a   : > { %2813 = vrot.lane.b32.xlu0 %v6218_v36, %s6175_s1  ;;  %2877 = vrot.lane.b32.xlu2 %v2672_v41, %s6175_s1 }
 0xd1c   : > { %v2792_v63 = vpop.permute.xlu2 %2791 }
 0xd1d   : > { %v2635_v7 = vpop.f32.mrf.mxu0  ;;  %v2902_v47 = vsel %vm2081_vm1, %v5311_v43, %v2792_v63  ;;  %v6221_v63 = vld [vmem:[#allocation5_spill] sm:$0xff] }
 0xd1e   : > { %v2657_v61 = vmul.f32 2.0, %v2635_v7  ;;  %3003 = vmatmul.f32.gmra.mxu1 %v2902_v47 }
 0xd20   : > { %v2673_v26 = vsub.f32 %v2657_v61, %v6219_v2 }
 0xd22   : > { %2815 = vrot.lane.b32.xlu2 %v6219_v2, %s6175_s1  ;;  %2879 = vrot.lane.b32.xlu1 %v2673_v26, %s6175_s1 }
 0xd25   : > { %v2638_v0 = vpop.f32.mrf.mxu0 }
 0xd26   : > { %v2658_v8 = vmul.f32 2.0, %v2638_v0 }
 0xd28   : > { %v2674_v36 = vsub.f32 %v2658_v8, %v6220_v53 }
 0xd2a   : > { %2817 = vrot.lane.b32.xlu1 %v6220_v53, %s6175_s1  ;;  %2881 = vrot.lane.b32.xlu0 %v2674_v36, %s6175_s1 }
 0xd2d   : > { %v2641_v40 = vpop.f32.mrf.mxu0 }
 0xd2e   : > { %v2659_v43 = vmul.f32 2.0, %v2641_v40 }
 0xd30   : > { %v2675_v7 = vsub.f32 %v2659_v43, %v6221_v63 }
 0xd32   : > { %2819 = vrot.lane.b32.xlu0 %v6221_v63, %s6175_s1  ;;  %2883 = vrot.lane.b32.xlu2 %v2675_v7, %s6175_s1  ;;  %s3324_s1 = sshll.u32 %s3320_s3, 4  ;;  %s3325_s1 = int_to_ptr.hbm [resolvable:$true] %s3324_s1 }
 0xd33   : > { %2676 = vmatpush.msrb.mxu3 %v2675_v7 }
 0xd34   : > { %v2856_v61 = vpop.permute.xlu1 %2855 }
 0xd35   : > { %2677 = vmatpush.msrb.mxu3 %v2674_v36  ;;  %v2918_v2 = vsel %vm2081_vm1, %v5554_v52, %v2856_v61  ;;  %v2860_v36 = vpop.permute.xlu2 %2859 }
 0xd36   : > { %3068 = vmatmul.f32.gmra.mxu2 %v2918_v2 }
 0xd37   : > { %2678 = vmatpush.msrb.mxu3 %v2673_v26 }
 0xd39   : > { %2679 = vmatpush.msrb.mxu3 %v2672_v41 }
 0xd3b   : > { %2680 = vmatpush.msrb.mxu3 %v2671_v32 }
 0xd3c   : > { %v2794_v47 = vpop.permute.xlu1 %2793  ;;  %v2858_v0 = vpop.permute.xlu0 %2857 }
 0xd3d   : > { %2681 = vmatpush.msrb.mxu3 %v2670_v20  ;;  %v2903_v8 = vsel %vm2081_vm1, %v5308_v17, %v2794_v47  ;;  %v2919_v53 = vsel %vm2081_vm1, %v5550_v42, %v2858_v0  ;;  %v2920_v20 = vsel %vm2081_vm1, %v5546_v24, %v2860_v36  ;;  %v2798_v17 = vpop.permute.xlu2 %2797 }
 0xd3e   : > { %3006 = vmatmul.f32.gmra.mxu1 %v2903_v8  ;;  %3071 = vmatmul.f32.gmra.mxu2 %v2919_v53 }
 0xd3f   : > { %2682 = vmatpush.msrb.mxu3 %v2669_v34 }
 0xd41   : > { %2683 = vmatpush.msrb.mxu3 %v2668_v6 }
 0xd43   : > { %2684 = vmatpush.msrb.mxu3 %v5665_v21 }
 0xd44   : > { %v2796_v40 = vpop.permute.xlu0 %2795 }
 0xd45   : > { %2685 = vmatpush.msrb.mxu3 %v5646_v13  ;;  %v2904_v26 = vsel %vm2081_vm1, %v5304_v18, %v2796_v40  ;;  %v2905_v13 = vsel %vm2081_vm1, %v5299_v60, %v2798_v17  ;;  %v2866_v60 = vpop.permute.xlu2 %2865 }
 0xd46   : > { %3009 = vmatmul.f32.gmra.mxu1 %v2904_v26  ;;  %3074 = vmatmul.f32.gmra.mxu2 %v2920_v20 }
 0xd47   : > { %2686 = vmatpush.msrb.mxu3 %v5627_v44 }
 0xd49   : > { %2687 = vmatpush.msrb.mxu3 %v5608_v5 }
 0xd4b   : > { %2688 = vmatpush.msrb.mxu3 %v5598_v56 }
 0xd4c   : > { %v2862_v34 = vpop.permute.xlu1 %2861 }
 0xd4d   : > { %2689 = vmatpush.msrb.mxu3 %v5591_v16  ;;  %v2921_v18 = vsel %vm2081_vm1, %v5542_v35, %v2862_v34 }
 0xd4e   : > { %3012 = vmatmul.f32.gmra.mxu1 %v2905_v13  ;;  %3077 = vmatmul.f32.gmra.mxu2 %v2921_v18  ;;  %v6223_v13 = vld [vmem:[#allocation22_spill] sm:$0xff] }
 0xd4f   : > { %2690 = vmatpush.msrb.mxu3 %v5584_v59 }
 0xd51   : > { %2691 = vmatpush.msrb.mxu3 %v5579_v45  ;;  %v2804_v45 = vpop.permute.xlu2 %2803 }
 0xd52   : > { %2692 = vmatmul.f32.vlgmr.msrb.gmra.mxu3 %v5319_v46  ;;  %v2923_v46 = vsel %vm2081_vm1, %v5534_v19, %v2866_v60  ;;  %v2908_v6 = vsel %vm2081_vm1, %v5280_v12, %v2804_v45  ;;  %v6225_v60 = vld [vmem:[#allocation30_spill] sm:$0xff]  ;;  %v5820_v45 = vld [vmem:[%s6018_s8] ss:$0 sm:$0xff] }
 0xd54   : > { %v2800_v5 = vpop.permute.xlu1 %2799  ;;  %v2864_v44 = vpop.permute.xlu0 %2863 }
 0xd55   : > { %v2906_v56 = vsel %vm2081_vm1, %v5292_v3, %v2800_v5  ;;  %v2922_v16 = vsel %vm2081_vm1, %v5538_v57, %v2864_v44  ;;  %v6224_v5 = vld [vmem:[#allocation26_spill] sm:$0xff]  ;;  %v5800_v44 = vpop.f32.mrf.mxu1 }
 0xd56   : > { %3015 = vmatmul.f32.gmra.mxu1 %v2906_v56  ;;  %3080 = vmatmul.f32.gmra.mxu2 %v2922_v16  ;;  %v2412_v56 = vld [vmem:[%s6017_s7 + $0x120] sm:$0xff] }
 0xd5a   : > { %2695 = vmatmul.f32.gmra.mxu3 %v5323_v62 }
 0xd5c   : > { %v2802_v21 = vpop.permute.xlu0 %2801 }
 0xd5d   : > { %v2907_v59 = vsel %vm2081_vm1, %v5287_v28, %v2802_v21  ;;  %v2411_v21 = vld [vmem:[%s6017_s7 + $0x118] sm:$0xff] }
 0xd5e   : > { %3018 = vmatmul.f32.gmra.mxu1 %v2907_v59  ;;  %3083 = vmatmul.f32.gmra.mxu2 %v2923_v46  ;;  %v2410_v46 = vld [vmem:[%s6017_s7 + $0x110] sm:$0xff] }
 0xd62   : > { %2698 = vmatmul.f32.gmra.mxu3 %v5327_v30  ;;  %v2872_v30 = vpop.permute.xlu2 %2871 }
 0xd64   : > { %v2868_v3 = vpop.permute.xlu1 %2867 }
 0xd65   : > { %v2924_v32 = vsel %vm2081_vm1, %v5530_v49, %v2868_v3  ;;  %v2409_v3 = vld [vmem:[%s6017_s7 + $0x108] sm:$0xff] }
 0xd66   : > { %3021 = vmatmul.f32.gmra.mxu1 %v2908_v6  ;;  %3086 = vmatmul.f32.gmra.mxu2 %v2924_v32  ;;  %v2408_v32 = vld [vmem:[%s6017_s7 + $0x100] sm:$0xff] }
 0xd6a   : > { %2701 = vmatmul.f32.gmra.mxu3 %v5331_v38  ;;  %v2926_v38 = vsel %vm2081_vm1, %v5522_v15, %v2872_v30  ;;  %v2810_v7 = vpop.permute.xlu2 %2809 }
 0xd6b   : > { %v2911_v61 = vsel %vm2081_vm1, %v5259_v23, %v2810_v7 }
 0xd6c   : > { %v2806_v28 = vpop.permute.xlu1 %2805  ;;  %v2870_v62 = vpop.permute.xlu0 %2869 }
 0xd6d   : > { %v2909_v41 = vsel %vm2081_vm1, %v5273_v31, %v2806_v28  ;;  %v2925_v43 = vsel %vm2081_vm1, %v5526_v1, %v2870_v62  ;;  %v6226_v62 = vld [vmem:[#allocation25_spill] sm:$0xff] }
 0xd6e   : > { %3024 = vmatmul.f32.gmra.mxu1 %v2909_v41  ;;  %3089 = vmatmul.f32.gmra.mxu2 %v2925_v43 }
 0xd72   : > { %2704 = vmatmul.f32.gmra.mxu3 %v5335_v51 }
 0xd74   : > { %v2808_v12 = vpop.permute.xlu0 %2807 }
 0xd75   : > { %v2910_v63 = vsel %vm2081_vm1, %v5266_v10, %v2808_v12 }
 0xd76   : > { %3027 = vmatmul.f32.gmra.mxu1 %v2910_v63  ;;  %3092 = vmatmul.f32.gmra.mxu2 %v2926_v38  ;;  %v6227_v63 = vld [vmem:[#allocation29_spill] sm:$0xff] }
 0xd7a   : > { %2707 = vmatmul.f32.gmra.mxu3 %v5339_v4  ;;  %v2878_v4 = vpop.permute.xlu2 %2877 }
 0xd7c   : > { %v2874_v31 = vpop.permute.xlu1 %2873 }
 0xd7d   : > { %v2927_v2 = vsel %vm2081_vm1, %v5518_v27, %v2874_v31 }
 0xd7e   : > { %3030 = vmatmul.f32.gmra.mxu1 %v2911_v61  ;;  %3095 = vmatmul.f32.gmra.mxu2 %v2927_v2  ;;  %v6228_v2 = vld [vmem:[#allocation28_spill] sm:$0xff] }
 0xd82   : > { %2710 = vmatmul.f32.gmra.mxu3 %v5343_v54  ;;  %v2929_v54 = vsel %vm2081_vm1, %v5510_v29, %v2878_v4  ;;  %v2816_v53 = vpop.permute.xlu2 %2815 }
 0xd83   : > { %v2914_v36 = vsel %vm2081_vm1, %v5244_v48, %v2816_v53 }
 0xd84   : > { %v2812_v10 = vpop.permute.xlu1 %2811  ;;  %v2876_v51 = vpop.permute.xlu0 %2875 }
 0xd85   : > { %v2912_v47 = vsel %vm2081_vm1, %v5253_v14, %v2812_v10  ;;  %v2928_v0 = vsel %vm2081_vm1, %v5514_v25, %v2876_v51 }
 0xd86   : > { %3033 = vmatmul.f32.gmra.mxu1 %v2912_v47  ;;  %3098 = vmatmul.f32.gmra.mxu2 %v2928_v0 }
 0xd8a   : > { %2713 = vmatmul.f32.gmra.mxu3 %v5347_v50 }
 0xd8c   : > { %v2814_v23 = vpop.permute.xlu0 %2813  ;;  %v2884_v20 = vpop.permute.xlu2 %2883 }
 0xd8d   : > { %v2913_v8 = vsel %vm2081_vm1, %v5248_v37, %v2814_v23  ;;  %v2415_v37 = vld [vmem:[%s6017_s7 + $0x138] sm:$0xff]  ;;  %v2932_v18 = vsel %vm2081_vm1, %v6223_v13, %v2884_v20 }
 0xd8e   : > { %3036 = vmatmul.f32.gmra.mxu1 %v2913_v8  ;;  %3101 = vmatmul.f32.gmra.mxu2 %v2929_v54 }
 0xd8f   : > { %3122 = vmatpush.msrb.mxu0 %v2415_v37 }
 0xd92   : > { %2716 = vmatmul.f32.gmra.mxu3 %v5351_v11 }
 0xd94   : > { %v2880_v14 = vpop.permute.xlu1 %2879 }
 0xd95   : > { %v2930_v40 = vsel %vm2081_vm1, %v5506_v58, %v2880_v14 }
 0xd96   : > { %3039 = vmatmul.f32.gmra.mxu1 %v2914_v36  ;;  %3104 = vmatmul.f32.gmra.mxu2 %v2930_v40 }
 0xd99   : > { %v5808_v16 = vpop.f32.mrf.mxu2 }
 0xd9a   : > { %2719 = vmatmul.f32.gmra.mxu3 %v5355_v55  ;;  %v6222_v55 = vld [vmem:[#allocation24_spill] sm:$0xff] }
 0xd9b   : > { %v3004_v59 = vpop.f32.mrf.mxu1 }
 0xd9c   : > { %v2818_v50 = vpop.permute.xlu1 %2817  ;;  %v2882_v26 = vpop.permute.xlu0 %2881  ;;  %v3005_v6 = vadd.f32 %v5820_v45, %v3004_v59 }
 0xd9d   : > { %v2915_v11 = vsel %vm2081_vm1, %v5240_v22, %v2818_v50  ;;  %v2931_v48 = vsel %vm2081_vm1, %v5502_v39, %v2882_v26  ;;  %v2414_v22 = vld [vmem:[%s6017_s7 + $0x130] sm:$0xff] }
 0xd9e   : > { %3042 = vmatmul.f32.gmra.mxu1 %v2915_v11  ;;  %3107 = vmatmul.f32.gmra.mxu2 %v2931_v48 }
 0xd9f   : > { %3123 = vmatpush.msrb.mxu0 %v2414_v22 }
 0xda2   : > { %2722 = vmatmul.f32.gmra.mxu3 %v5359_v9  ;;  %v2413_v9 = vld [vmem:[%s6017_s7 + $0x128] sm:$0xff] }
 0xda3   : > { %3124 = vmatpush.msrb.mxu0 %v2413_v9 }
 0xda4   : > { %v2820_v17 = vpop.permute.xlu0 %2819 }
 0xda5   : > { %v2916_v34 = vsel %vm2081_vm1, %v6222_v55, %v2820_v17  ;;  %3125 = vmatpush.msrb.mxu0 %v2412_v56 }
 0xda6   : > { %3045 = vmatmul.f32.gmra.mxu1 %v2916_v34  ;;  %3110 = vmatmul.f32.gmra.mxu2 %v2932_v18 }
 0xda7   : > { %3126 = vmatpush.msrb.mxu0 %v2411_v21 }
 0xda9   : > { %3127 = vmatpush.msrb.mxu0 %v2410_v46 }
 0xdaa   : > { %2725 = vmatmul.f32.gmra.mxu3 %v6224_v5 }
 0xdab   : > { %3128 = vmatpush.msrb.mxu0 %v2409_v3 }
 0xdad   : > { %3129 = vmatpush.msrb.mxu0 %v2408_v32 }
 0xdb2   : > { %2728 = vmatmul.f32.gmra.mxu3 %v6225_v60 }
 0xdb9   : > { %v3069_v28 = vpop.f32.mrf.mxu2 }
 0xdba   : > { %2731 = vmatmul.f32.gmra.mxu3 %v6226_v62  ;;  %v5830_v41 = vadd.f32 %v3069_v28, %v3005_v6 }
 0xdbb   : > { %v3007_v43 = vpop.f32.mrf.mxu1 }
 0xdbc   : > { %v3008_v30 = vadd.f32 %v5820_v45, %v3007_v43 }
 0xdc1   : > { %v3072_v12 = vpop.f32.mrf.mxu2 }
 0xdc2   : > { %2734 = vmatmul.f32.gmra.mxu3 %v6227_v63  ;;  %v5834_v38 = vadd.f32 %v3072_v12, %v3008_v30 }
 0xdc3   : > { %v3010_v7 = vpop.f32.mrf.mxu1 }
 0xdc4   : > { %v3011_v31 = vadd.f32 %v5820_v45, %v3010_v7 }
 0xdc9   : > { %v3075_v61 = vpop.f32.mrf.mxu2 }
 0xdca   : > { %2737 = vmatmul.f32.gmra.mxu3 %v6228_v2  ;;  %v5838_v10 = vadd.f32 %v3075_v61, %v3011_v31 }
 0xdcb   : > { %v3013_v51 = vpop.f32.mrf.mxu1 }
 0xdcc   : > { %v3014_v47 = vadd.f32 %v5820_v45, %v3013_v51 }
 0xdd1   : > { %v3078_v0 = vpop.f32.mrf.mxu2 }
 0xdd2   : > { %v5841_v4 = vadd.f32 %v3078_v0, %v3014_v47 }
 0xdd3   : > { %v3016_v23 = vpop.f32.mrf.mxu1 }
 0xdd4   : > { %v3017_v53 = vadd.f32 %v5820_v45, %v3016_v23 }
 0xdd5   : > { %v2693_v8 = vpop.f32.mrf.mxu3 }
 0xdd6   : > { %v2741_v54 = vmul.f32 2.0, %v2693_v8 }
 0xdd8   : > { %v2757_v14 = vsub.f32 %v2741_v54, %v5558_v33 }
 0xdd9   : > { %v3081_v36 = vpop.f32.mrf.mxu2 }
 0xdda   : > { %v5845_v40 = vadd.f32 %v3081_v36, %v3017_v53  ;;  %3501 = vmatmul.msk.f32.vlgmr.msrb.gmra.mxu0 %vm2081_vm1, %v2757_v14 }
 0xddb   : > { %v3019_v37 = vpop.f32.mrf.mxu1 }
 0xddc   : > { %v3020_v11 = vadd.f32 %v5820_v45, %v3019_v37 }
 0xddd   : > { %v2696_v50 = vpop.f32.mrf.mxu3 }
 0xdde   : > { %v2742_v26 = vmul.f32 2.0, %v2696_v50 }
 0xde0   : > { %v2758_v48 = vsub.f32 %v2742_v26, %v5554_v52 }
 0xde1   : > { %v3084_v20 = vpop.f32.mrf.mxu2 }
 0xde2   : > { %v5850_v17 = vadd.f32 %v3084_v20, %v3020_v11  ;;  %3502 = vmatmul.msk.f32.gmra.mxu0 %vm2081_vm1, %v2758_v48 }
 0xde3   : > { %v3022_v55 = vpop.f32.mrf.mxu1 }
 0xde4   : > { %v3023_v18 = vadd.f32 %v5820_v45, %v3022_v55 }
 0xde5   : > { %v2699_v34 = vpop.f32.mrf.mxu3 }
 0xde6   : > { %v2743_v33 = vmul.f32 2.0, %v2699_v34 }
 0xde8   : > { %v2759_v5 = vsub.f32 %v2743_v33, %v5550_v42 }
 0xde9   : > { %v3087_v22 = vpop.f32.mrf.mxu2 }
 0xdea   : > { %v5855_v9 = vadd.f32 %v3087_v22, %v3023_v18  ;;  %3503 = vmatmul.msk.f32.gmra.mxu0 %vm2081_vm1, %v2759_v5 }
 0xdeb   : > { %v3025_v56 = vpop.f32.mrf.mxu1 }
 0xdec   : > { %v3026_v21 = vadd.f32 %v5820_v45, %v3025_v56 }
 0xded   : > { %v2702_v60 = vpop.f32.mrf.mxu3 }
 0xdee   : > { %v2744_v52 = vmul.f32 2.0, %v2702_v60 }
 0xdf0   : > { %v2760_v59 = vsub.f32 %v2744_v52, %v5546_v24 }
 0xdf1   : > { %v3090_v46 = vpop.f32.mrf.mxu2 }
 0xdf2   : > { %v5860_v3 = vadd.f32 %v3090_v46, %v3026_v21  ;;  %3504 = vmatmul.msk.f32.gmra.mxu0 %vm2081_vm1, %v2760_v59 }
 0xdf3   : > { %v3028_v52 = vpop.f32.mrf.mxu1 }
 0xdf5   : > { %v2705_v6 = vpop.f32.mrf.mxu3 }
 0xdf6   : > { %v2745_v32 = vmul.f32 2.0, %v2705_v6 }
 0xdf8   : > { %v2761_v42 = vsub.f32 %v2745_v32, %v5542_v35 }
 0xdf9   : > { %v3093_v21 = vpop.f32.mrf.mxu2 }
 0xdfa   : > { %3505 = vmatmul.msk.f32.gmra.mxu0 %vm2081_vm1, %v2761_v42 }
 0xdfb   : > { %v3031_v46 = vpop.f32.mrf.mxu1 }
 0xdfd   : > { %v2708_v28 = vpop.f32.mrf.mxu3 }
 0xdfe   : > { %v2746_v62 = vmul.f32 2.0, %v2708_v28 }
 0xe00   : > { %v2762_v43 = vsub.f32 %v2746_v62, %v5538_v57 }
 0xe01   : > { %v3096_v32 = vpop.f32.mrf.mxu2 }
 0xe02   : > { %3506 = vmatmul.msk.f32.gmra.mxu0 %vm2081_vm1, %v2762_v43 }
 0xe03   : > { %v3034_v42 = vpop.f32.mrf.mxu1 }
 0xe05   : > { %v2711_v30 = vpop.f32.mrf.mxu3 }
 0xe06   : > { %v2747_v12 = vmul.f32 2.0, %v2711_v30 }
 0xe08   : > { %v2763_v24 = vsub.f32 %v2747_v12, %v5534_v19 }
 0xe09   : > { %v3099_v28 = vpop.f32.mrf.mxu2 }
 0xe0a   : > { %3507 = vmatmul.msk.f32.gmra.mxu0 %vm2081_vm1, %v2763_v24 }
 0xe0d   : > { %v2714_v63 = vpop.f32.mrf.mxu3 }
 0xe0e   : > { %v2748_v7 = vmul.f32 2.0, %v2714_v63 }
 0xe10   : > { %v2764_v31 = vsub.f32 %v2748_v7, %v5530_v49 }
 0xe11   : > { %v3102_v43 = vpop.f32.mrf.mxu2 }
 0xe12   : > { %3508 = vmatmul.msk.f32.gmra.mxu0 %vm2081_vm1, %v2764_v31 }
 0xe15   : > { %v2717_v35 = vpop.f32.mrf.mxu3 }
 0xe16   : > { %v2749_v61 = vmul.f32 2.0, %v2717_v35 }
 0xe18   : > { %v2765_v2 = vsub.f32 %v2749_v61, %v5526_v1 }
 0xe1a   : > { %3509 = vmatmul.msk.f32.gmra.mxu0 %vm2081_vm1, %v2765_v2 }
 0xe1d   : > { %v2720_v57 = vpop.f32.mrf.mxu3 }
 0xe1e   : > { %v2750_v51 = vmul.f32 2.0, %v2720_v57 }
 0xe20   : > { %v2766_v47 = vsub.f32 %v2750_v51, %v5522_v15 }
 0xe22   : > { %3510 = vmatmul.msk.f32.gmra.mxu0 %vm2081_vm1, %v2766_v47 }
 0xe25   : > { %v2723_v19 = vpop.f32.mrf.mxu3 }
 0xe26   : > { %v2751_v0 = vmul.f32 2.0, %v2723_v19 }
 0xe28   : > { %v2767_v23 = vsub.f32 %v2751_v0, %v5518_v27 }
 0xe2a   : > { %3511 = vmatmul.msk.f32.gmra.mxu0 %vm2081_vm1, %v2767_v23 }
 0xe2d   : > { %v2726_v49 = vpop.f32.mrf.mxu3 }
 0xe2e   : > { %v2752_v8 = vmul.f32 2.0, %v2726_v49 }
 0xe30   : > { %v2768_v54 = vsub.f32 %v2752_v8, %v5514_v25 }
 0xe32   : > { %3512 = vmatmul.msk.f32.gmra.mxu0 %vm2081_vm1, %v2768_v54  ;;  %v3035_v54 = vadd.f32 %v5820_v45, %v3034_v42  ;;  %v3660_v42 = vld [vmem:[%s6020_s10] ss:$0 sm:$0xff] }
 0xe35   : > { %v2729_v1 = vpop.f32.mrf.mxu3 }
 0xe36   : > { %v2753_v53 = vmul.f32 2.0, %v2729_v1 }
 0xe38   : > { %v2769_v14 = vsub.f32 %v2753_v53, %v5510_v29  ;;  %v3002_v29 = vadd.f32 %v5820_v45, %v5800_v44 }
 0xe3a   : > { %3513 = vmatmul.msk.f32.gmra.mxu0 %vm2081_vm1, %v2769_v14  ;;  %v3067_v20 = vadd.f32 %v5808_v16, %v3002_v29 }
 0xe3d   : > { %v2732_v15 = vpop.f32.mrf.mxu3 }
 0xe3e   : > { %v2754_v36 = vmul.f32 2.0, %v2732_v15  ;;  %v3032_v15 = vadd.f32 %v5820_v45, %v3031_v46 }
 0xe40   : > { %v2770_v37 = vsub.f32 %v2754_v36, %v5506_v58  ;;  %v3100_v36 = vadd.f32 %v3099_v28, %v3035_v54 }
 0xe42   : > { %3514 = vmatmul.msk.f32.gmra.mxu0 %vm2081_vm1, %v2770_v37 }
 0xe45   : > { %v2735_v27 = vpop.f32.mrf.mxu3 }
 0xe46   : > { %v2755_v50 = vmul.f32 2.0, %v2735_v27 }
 0xe48   : > { %v2771_v26 = vsub.f32 %v2755_v50, %v5502_v39  ;;  %v3029_v50 = vadd.f32 %v5820_v45, %v3028_v52 }
 0xe4a   : > { %3515 = vmatmul.msk.f32.gmra.mxu0 %vm2081_vm1, %v2771_v26  ;;  %v3097_v26 = vadd.f32 %v3096_v32, %v3032_v15  ;;  %v3265_v32 = vld [vmem:[%s6023_s13 + $0x18] sm:$0xff] }
 0xe4d   : > { %v2738_v25 = vpop.f32.mrf.mxu3 }
 0xe4e   : > { %v2756_v11 = vmul.f32 2.0, %v2738_v25 }
 0xe50   : > { %v2772_v48 = vsub.f32 %v2756_v11, %v6223_v13 }
 0xe52   : > { %3516 = vmatmul.msk.f32.gmra.mxu0 %vm2081_vm1, %v2772_v48  ;;  %v3094_v48 = vadd.f32 %v3093_v21, %v3029_v50 }
 0xe57   : > { %v3131_v58 = vpop.f32.mrf.mxu0 }
 0xe58   : > { %v5890_v55 = vadd.f32 %v3131_v58, %v3067_v20 }
 0xe5f   : > { %v3134_v34 = vpop.f32.mrf.mxu0 }
 0xe60   : > { %v5893_v33 = vadd.f32 %v3134_v34, %v5830_v41 }
 0xe62   : > { %v3180_v46 = vmax.f32 %v5893_v33, 0.0  ;;  %v3230_v33 = vld [vmem:[%s6021_s11 + $0x20] sm:$0xff] }
 0xe67   : > { %v3137_v39 = vpop.f32.mrf.mxu0 }
 0xe68   : > { %v5896_v18 = vadd.f32 %v3137_v39, %v5834_v38 }
 0xe6f   : > { %v3140_v5 = vpop.f32.mrf.mxu0 }
 0xe70   : > { %v5899_v13 = vadd.f32 %v3140_v5, %v5838_v10 }
 0xe72   : > { %v3182_v21 = vmax.f32 %v5899_v13, 0.0  ;;  %v3229_v13 = vld [vmem:[%s6021_s11 + $0x18] sm:$0xff] }
 0xe77   : > { %v3143_v22 = vpop.f32.mrf.mxu0 }
 0xe78   : > { %v5902_v44 = vadd.f32 %v3143_v22, %v5841_v4 }
 0xe7a   : > { %v3183_v52 = vmax.f32 %v5902_v44, 0.0  ;;  %v3233_v44 = vld [vmem:[%s6021_s11 + $0x38] sm:$0xff] }
 0xe7f   : > { %v3146_v16 = vpop.f32.mrf.mxu0 }
 0xe80   : > { %v5905_v56 = vadd.f32 %v3146_v16, %v5845_v40  ;;  %v3037_v40 = vpop.f32.mrf.mxu1 }
 0xe81   : > { %v3038_v0 = vadd.f32 %v5820_v45, %v3037_v40 }
 0xe83   : > { %v3103_v1 = vadd.f32 %v3102_v43, %v3038_v0  ;;  %v3264_v43 = vld [vmem:[%s6023_s13 + $0x10] sm:$0xff] }
 0xe87   : > { %v3149_v60 = vpop.f32.mrf.mxu0 }
 0xe88   : > { %v5908_v41 = vadd.f32 %v3149_v60, %v5850_v17  ;;  %v3040_v12 = vpop.f32.mrf.mxu1  ;;  %v3105_v17 = vpop.f32.mrf.mxu2  ;;  %v3184_v60 = vmax.f32 %v5905_v56, 0.0  ;;  %v3195_v56 = vld [vmem:[%s6229_s2] sm:$0xff]  ;;  %s3713_s2 = sshra.s32 %s3325_s1, 4  ;;  %s3714_s2 = int_to_ptr.hbm [resolvable:$true] %s3713_s2 }
 0xe89   : > { %v3041_v57 = vadd.f32 %v5820_v45, %v3040_v12  ;;  %v3262_v12 = vld [vmem:[%s6023_s13] sm:$0xff]  ;;  %s3715_s5 = scalar_lea.hbm %s3714_s2, 8  ;;  %p3720_p0 = scmp.lt.s32.totalorder %s3714_s2, %s6025_s15 }
 0xe8a   : > { %p3716_p11 = scmp.ne.s32.totalorder %s3714_s2, %s3715_s5  ;;  %p3721_p1 = scmp.lt.s32.totalorder %s3719_s30, %s3715_s5 }
 0xe8b   : > { %v3106_v23 = vadd.f32 %v3105_v17, %v3041_v57  ;;  %v3661_v17 = vld [vmem:[%s6022_s12] ss:$0 sm:$0xff] }
 0xe8c   : > { %p3717_p12 = pnand %p3716_p11, %p3882_p5  ;;  %p3722_p2 = por %p3721_p1, %p3720_p0 }
 0xe8e   : > { %p3718_p13 = pneg %p3717_p12 }
 0xe8f   : > { %v3152_v38 = vpop.f32.mrf.mxu0 }
 0xe90   : > { %v3153_v59 = vadd.f32 %v3152_v38, %v5855_v9  ;;  %v3043_v63 = vpop.f32.mrf.mxu1  ;;  %v3108_v31 = vpop.f32.mrf.mxu2  ;;  %v3181_v38 = vmax.f32 %v5896_v18, 0.0  ;;  %v3232_v18 = vld [vmem:[%s6021_s11 + $0x30] sm:$0xff]  ;;  %p3723_p3 = pnand %p3722_p2, %p3718_p13 }
 0xe91   : > { %v3044_v2 = vadd.f32 %v5820_v45, %v3043_v63 }
 0xe92   : > { %v3186_v16 = vmax.f32 %v3153_v59, 0.0  ;;  %v3179_v59 = vmax.f32 %v5890_v55, 0.0  ;;  %v3231_v55 = vld [vmem:[%s6021_s11 + $0x28] sm:$0xff] }
 0xe93   : > { %v3109_v51 = vadd.f32 %v3108_v31, %v3044_v2  ;;  %v3294_v31 = vlaneseq }
 0xe97   : > { %v3155_v10 = vpop.f32.mrf.mxu0 }
 0xe98   : > { %v3156_v6 = vadd.f32 %v3155_v10, %v5860_v3  ;;  %v3046_v9 = vpop.f32.mrf.mxu1  ;;  %v3111_v61 = vpop.f32.mrf.mxu2  ;;  %v3227_v10 = vld [vmem:[%s6021_s11 + $0x8] sm:$0xff] }
 0xe99   : > { %v3047_v3 = vadd.f32 %v5820_v45, %v3046_v9  ;;  %v3185_v45 = vmax.f32 %v5908_v41, 0.0  ;;  %v3228_v41 = vld [vmem:[%s6021_s11 + $0x10] sm:$0xff]  ;;  %v3662_v9 = vld [vmem:[%s6024_s14] ss:$0 sm:$0xff] }
 0xe9a   : > { %v3187_v22 = vmax.f32 %v3156_v6, 0.0  ;;  %v3226_v6 = vld [vmem:[%s6021_s11] sm:$0xff] }
 0xe9b   : > { %v3112_v47 = vadd.f32 %v3111_v61, %v3047_v3 }
 0xe9f   : > { %v3158_v4 = vpop.f32.mrf.mxu0 }
 0xea0   : > { %v3159_v58 = vadd.f32 %v3158_v4, %v3094_v48  ;;  %v3659_v4 = vld [vmem:[%s6019_s9] ss:$0 sm:$0xff] }
 0xea2   : > { %v3188_v5 = vmax.f32 %v3159_v58, 0.0 }
 0xea7   : > { %v3161_v62 = vpop.f32.mrf.mxu0 }
 0xea8   : > { %v3162_v29 = vadd.f32 %v3161_v62, %v3097_v26 }
 0xeaa   : > { %v3189_v39 = vmax.f32 %v3162_v29, 0.0 }
 0xeaf   : > { %v3164_v30 = vpop.f32.mrf.mxu0 }
 0xeb0   : > { %v3165_v25 = vadd.f32 %v3164_v30, %v3100_v36  ;;  %v3263_v30 = vld [vmem:[%s6023_s13 + $0x8] sm:$0xff] }
 0xeb2   : > { %v3190_v34 = vmax.f32 %v3165_v25, 0.0 }
 0xeb7   : > { %v3167_v24 = vpop.f32.mrf.mxu0 }
 0xeb8   : > { %v3168_v37 = vadd.f32 %v3167_v24, %v3103_v1 }
 0xeba   : > { %v3191_v20 = vmax.f32 %v3168_v37, 0.0 }
 0xebf   : > { %v3170_v7 = vpop.f32.mrf.mxu0 }
 0xec0   : > { %v3171_v53 = vadd.f32 %v3170_v7, %v3106_v23 }
 0xec2   : > { %v3192_v11 = vmax.f32 %v3171_v53, 0.0 }
 0xec7   : > { %v3173_v35 = vpop.f32.mrf.mxu0 }
 0xec8   : > { %v3174_v49 = vadd.f32 %v3173_v35, %v3109_v51  ;;  %v3295_v35 = vand.u32 127, %v3294_v31 }
 0xeca   : > { %v3193_v27 = vmax.f32 %v3174_v49, 0.0  ;;  %vm3296_vm3 = vcmp.lt.s32.totalorder %v3295_v35, 10 }
 0xecf   : > { %v3176_v19 = vpop.f32.mrf.mxu0 }
 0xed0   : > { %v3177_v8 = vadd.f32 %v3176_v19, %v3112_v47 }
 0xed2   : > { %v3194_v14 = vmax.f32 %v3177_v8, 0.0 }
 0xed4   : > { %3196 = vmatpush.msra.mxu3 %v3194_v14 }
 0xed6   : > { %3197 = vmatpush.msra.mxu3 %v3193_v27 }
 0xed8   : > { %3198 = vmatpush.msra.mxu3 %v3192_v11 }
 0xeda   : > { %3199 = vmatpush.msra.mxu3 %v3191_v20 }
 0xedc   : > { %3200 = vmatpush.msra.mxu3 %v3190_v34 }
 0xede   : > { %3201 = vmatpush.msra.mxu3 %v3189_v39 }
 0xee0   : > { %3202 = vmatpush.msra.mxu3 %v3188_v5 }
 0xee2   : > { %3203 = vmatpush.msra.mxu3 %v3187_v22 }
 0xee4   : > { %3204 = vmatpush.msra.mxu3 %v3186_v16 }
 0xee6   : > { %3205 = vmatpush.msra.mxu3 %v3185_v45 }
 0xee8   : > { %3206 = vmatpush.msra.mxu3 %v3184_v60 }
 0xeea   : > { %3207 = vmatpush.msra.mxu3 %v3183_v52 }
 0xeec   : > { %3208 = vmatpush.msra.mxu3 %v3182_v21 }
 0xeee   : > { %3209 = vmatpush.msra.mxu3 %v3181_v38 }
 0xef0   : > { %3210 = vmatpush.msra.mxu3 %v3180_v46 }
 0xef2   : > { %3211 = vmatpush.msra.mxu3 %v3179_v59 }
 0xef3   : > { %3212 = vmatmul.f32.vlgmr.msra.gmra.mxu3 %v3195_v56 }
 0xef4   : > { %3249 = vmatpush.msrb.mxu3 %v3233_v44 }
 0xef6   : > { %3250 = vmatpush.msrb.mxu3 %v3232_v18 }
 0xef8   : > { %3251 = vmatpush.msrb.mxu3 %v3231_v55 }
 0xefa   : > { %3252 = vmatpush.msrb.mxu3 %v3230_v33 }
 0xefc   : > { %3253 = vmatpush.msrb.mxu3 %v3229_v13 }
 0xefe   : > { %3254 = vmatpush.msrb.mxu3 %v3228_v41 }
 0xf00   : > { %3255 = vmatpush.msrb.mxu3 %v3227_v10 }
 0xf02   : > { %3256 = vmatpush.msrb.mxu3 %v3226_v6 }
 0xf04   : > { %3286 = vmatpush.msra.mxu3 %v3265_v32 }
 0xf06   : > { %3287 = vmatpush.msra.mxu3 %v3264_v43 }
 0xf08   : > { %3288 = vmatpush.msra.mxu3 %v3263_v30 }
 0xf0a   : > { %3289 = vmatpush.msra.mxu3 %v3262_v12 }
 0xf76   : > { %v3213_v28 = vpop.f32.mrf.mxu3 }
 0xf77   : > { %v3220_v62 = vmul.f32 %v3659_v4, %v3213_v28 }
 0xf79   : > { %v3225_v40 = vadd.f32 %v3660_v42, %v3220_v62 }
 0xf7b   : > { %3517 = vmatmul.msk.f32.vlgmr.msrb.gmra.mxu3 %vm2081_vm1, %v3225_v40 }
 0xffe   : > { %v3258_v24 = vpop.f32.mrf.mxu3 }
 0xfff   : > { %v3259_v63 = vadd.f32 %v3661_v17, %v3258_v24 }
0x1001   : > { %v3261_v7 = vmax.f32 %v3259_v63, 0.0 }
0x1003   : > { %3518 = vmatmul.msk.f32.vlgmr.msra.gmra.mxu3 %vm3270_vm2, %v3261_v7 }
0x1086   : > { %v3291_v61 = vpop.f32.mrf.mxu3 }
0x1087   : > { %v3292_v2 = vadd.f32 %v3662_v9, %v3291_v61 }
0x1089   : > { %v3297_v3 = vsel %vm3296_vm3, %v3292_v2, -1e+30 }
0x108a   : > { %3298 = vmax.xlane.f32.xlu1 %v3297_v3 }
0x10fd   : > { %v3299_v57 = vpop.xlane.xlu1 %3298 }
0x10fe   : > { %v3300_v51 = vsub.f32 %v3297_v3, %v3299_v57 }
0x1100   : > { %v3301_v47 = vmul.f32 1.442695, %v3300_v51 }
0x1102   : > { %3663 = vpow2.f32 %v3301_v47 }
0x1108   : > { %v3664_v19 = vpop.eup %3663 }
0x1109   : > { %3303 = vadd.xlane.f32.xlu2 %v3664_v19 }
0x117c   : > { %v3304_v0 = vpop.xlane.xlu2 %3303 }
0x117d   : > { %3665 = vlog2.f32 %v3304_v0 }
0x1183   : > { %v3666_v23 = vpop.eup %3665 }
0x1184   : > { %v3306_v49 = vmul.f32 0.6931472, %v3666_v23 }
0x1186   : > { %v3307_v8 = vsub.f32 %v3300_v51, %v3306_v49 }
0x1188   : > { %3308 = vst [vmem:[%s502_s4] sm:$0xff] %v3307_v8 }
0x1189   : > { %3726 = shalt.err (!%p3723_p3)
}
0x118a   : > { %3541 = dma.vmem_to_hbm [thread:$0]  (%p3882_p5), %s3323_s23, 128, %s3325_s1, %s3310_s16  }
0x118b PF: > { %p3547_p4 = scmp.ge.s32.totalorder %s3761_s21, 2  ;;  %s3336_s26 = sand.u32 1, %s3749_s18  }
0x118c   : > { %s3337_s3 = scalar_lea.sflag [#allocation3], %s3336_s26 }
0x118d   : > { %p3544_p7 = pnand %p3547_p4, %p3886_p6 }
0x118f   : > { %p3545_p8 = pneg %p3544_p7 }
0x1191   : > { %3744 = dma.done.wait (%p3545_p8), %s3337_s3, 128  }
0x1192   : > { %3746 = vsyncadd (%p3545_p8), %s3337_s3, 4294967168  ;;  %p25_p9 = scmp.ge.s32.totalorder %s3869_s24, 4   ;;  %s6230_s18 = smov %s3753_s19 }
0x1193   : > { %s6231_s19 = smov %s3757_s20  ;;  %s6232_s20 = smov %s3880_s27 }
0x1194   : > { %s6233_s21 = smov %s3869_s24  ;;  %27 = sbr.rel (!%p25_p9) target bundleno = 10 (0xa), region = 118 }
0x1199   :  { %3343 = vsyncpa [#allocation3], 1 }
0x119a   :  { %3345 = vsyncpa [#allocation3 + $0x1], 1 }

</bundles_post_ra>
